<compile_context>
chip_gen: v5e
topology: v5e:2x2
jax: 0.10.0
libtpu: 0.0.40
codegen_flags: <defaults>
</compile_context>

<pallas_src>
import jax
import jax.numpy as jnp
from jax.experimental import pallas as pl
from jax.experimental.pallas import tpu as pltpu


# ---------------------------------------------------------------------------
# Fused forward-pass kernel (one grid step == one image)
# ---------------------------------------------------------------------------
def _simple_cnn_kernel(x_ref, w1_ref, b1_ref, w2_ref, b2_ref,
                       wfc1_ref, bfc1_ref, wfc2_ref, bfc2_ref,
                       o_ref, x2_ref, f_ref):
    f32 = jnp.float32

    # ---------------- conv1 (3x3, pad=1) + bias + ReLU ----------------------
    # x: (8, 992) = (Cin_pad, 31*32) zero-padded flat image.  Output kept "wide"
    # with row stride 32: a1[c, h*32 + w], valid for h, w in [0, 28); the junk
    # columns w in [28, 32) are never consumed downstream.
    x1 = x_ref[0]                                              # (8, 992) bf16
    acc1 = jnp.zeros((16, 896), f32)
    for kh in range(3):
        for kw in range(3):
            off = kh * 32 + kw
            acc1 += jnp.dot(w1_ref[3 * kh + kw], x1[:, off:off + 896],
                            preferred_element_type=f32)
    a1 = jnp.maximum(acc1 + b1_ref[...], 0.0)                  # (16, 896)

    # ---------------- maxpool 2x2, stride 2 (in-kernel) ---------------------
    m1 = jnp.maximum(a1[:, :895], a1[:, 1:])                   # max over (w, w+1)
    p1 = jnp.maximum(m1[:, :863], m1[:, 32:])                  # max over (h, h+1)
    # pooled value for (ho, wo) sits at p1[:, 64*ho + 2*wo], ho, wo in [0, 14)

    # ---- stride-2 down-sample + zero re-pad into the conv2 input buffer ----
    # x2 buffer is (16, 272) = (C1, 17*16): rows 1..14 / cols 1..14 of each 16-wide
    # row hold the 14x14 pooled map; everything else stays zero (conv2's padding).
    x2_ref[...] = jnp.zeros_like(x2_ref)
    e27 = (jax.lax.broadcasted_iota(jnp.int32, (27, 14), 0) ==
           2 * jax.lax.broadcasted_iota(jnp.int32, (27, 14), 1)).astype(f32)
    for ho in range(14):
        win = p1[:, 64 * ho: 64 * ho + 27]                     # (16, 27)
        row = jnp.dot(win, e27, preferred_element_type=f32)    # picks even cols -> (16, 14)
        x2_ref[:, 16 * (ho + 1) + 1: 16 * (ho + 1) + 15] = row

    # ---------------- conv2 (3x3, pad=1) + bias + ReLU ----------------------
    x2 = x2_ref[...].astype(jnp.bfloat16)                      # (16, 272)
    acc2 = jnp.zeros((32, 224), f32)
    for kh in range(3):
        for kw in range(3):
            off = kh * 16 + kw
            acc2 += jnp.dot(w2_ref[3 * kh + kw], x2[:, off:off + 224],
                            preferred_element_type=f32)
    a2 = jnp.maximum(acc2 + b2_ref[...], 0.0)                  # (32, 224), row stride 16

    # ---------------- maxpool 2x2, stride 2 ---------------------------------
    m2 = jnp.maximum(a2[:, :223], a2[:, 1:])
    p2 = jnp.maximum(m2[:, :207], m2[:, 16:])                  # pooled at p2[:, 32*ho + 2*wo]

    # ---- compact the 7x7 pooled map into (32, 49) per-channel features -----
    e13 = (jax.lax.broadcasted_iota(jnp.int32, (13, 7), 0) ==
           2 * jax.lax.broadcasted_iota(jnp.int32, (13, 7), 1)).astype(f32)
    for ho in range(7):
        win = p2[:, 32 * ho: 32 * ho + 13]                     # (32, 13)
        f_ref[:, 7 * ho: 7 * ho + 7] = jnp.dot(win, e13, preferred_element_type=f32)

    # ---------------- fc1 (+ReLU) and fc2, fused ----------------------------
    # fc1 accumulates over the 32 channel blocks: wfc1[c] is the (49, 128) slice of
    # torch's fc1 weight that multiplies channel c's 7x7 patch (torch flatten order
    # c*49 + h*7 + w), so no in-kernel flatten / transpose is needed.
    h1 = bfc1_ref[...]                                         # (1, 128) f32
    for c in range(32):
        fc = f_ref[pl.ds(c, 1), :].astype(jnp.bfloat16)        # (1, 49)
        h1 += jnp.dot(fc, wfc1_ref[c], preferred_element_type=f32)
    h1 = jnp.maximum(h1, 0.0).astype(jnp.bfloat16)
    out = jnp.dot(h1, wfc2_ref[...], preferred_element_type=f32) + bfc2_ref[...]
    o_ref[0] = out                                             # (1, 128); cols >= 2 are zero


# ---------------------------------------------------------------------------
# Parameter re-layout (pure data movement, outside the kernel)
# ---------------------------------------------------------------------------
def _prep_params(p):
    bf16 = jnp.bfloat16
    # conv kernels: torch (Cout, Cin, kh, kw) -> (kh*3+kw, Cout, Cin); conv1 Cin padded 3->8.
    w1 = jnp.pad(p["w_conv1"], ((0, 0), (0, 5), (0, 0), (0, 0)))
    w1 = jnp.transpose(w1, (2, 3, 0, 1)).reshape(9, 16, 8).astype(bf16)
    w2 = jnp.transpose(p["w_conv2"], (2, 3, 0, 1)).reshape(9, 32, 16).astype(bf16)
    b1 = p["b_conv1"].reshape(16, 1).astype(jnp.float32)
    b2 = p["b_conv2"].reshape(32, 1).astype(jnp.float32)
    # fc1: torch (128, 32*49) with column index c*49 + s  ->  (32, 49, 128)
    wfc1 = jnp.transpose(p["w_fc1"].reshape(128, 32, 49), (1, 2, 0)).astype(bf16)
    bfc1 = p["b_fc1"].reshape(1, 128).astype(jnp.float32)
    # fc2: torch (2, 128) -> (128, 128), zero-padded so the kernel store is lane-dense
    wfc2 = jnp.zeros((128, 128), jnp.float32).at[:, :2].set(p["w_fc2"].T).astype(bf16)
    bfc2 = jnp.zeros((1, 128), jnp.float32).at[0, :2].set(p["b_fc2"])
    return w1, b1, w2, b2, wfc1, bfc1, wfc2, bfc2


def simple_cnn_forward(x_nchw, params):
    B = x_nchw.shape[0]
    # Zero-pad: channels 3->8 (clean MXU contraction), H 28->31 (1 top / 2 bottom),
    # W 28->32 (1 left / 3 right, 32 = row stride of the wide layout); flatten to (8, 992).
    xp = jnp.pad(x_nchw, ((0, 0), (0, 5), (1, 2), (1, 3)))
    x1 = xp.reshape(B, 8, 31 * 32).astype(jnp.bfloat16)
    w1, b1, w2, b2, wfc1, bfc1, wfc2, bfc2 = _prep_params(params)

    def full(*shape):
        return pl.BlockSpec(shape, lambda b, _s=shape: (0,) * len(_s))

    out = pl.pallas_call(
        _simple_cnn_kernel,
        out_shape=jax.ShapeDtypeStruct((B, 1, 128), jnp.float32),
        grid=(B,),
        in_specs=[
            pl.BlockSpec((1, 8, 992), lambda b: (b, 0, 0)),    # image (one per grid step)
            full(9, 16, 8), full(16, 1),                       # conv1 weights / bias
            full(9, 32, 16), full(32, 1),                      # conv2 weights / bias
            full(32, 49, 128), full(1, 128),                   # fc1 weights / bias
            full(128, 128), full(1, 128),                      # fc2 (padded) weights / bias
        ],
        out_specs=pl.BlockSpec((1, 1, 128), lambda b: (b, 0, 0)),
        scratch_shapes=[
            pltpu.VMEM((16, 272), jnp.float32),   # zero-padded conv2 input (17x16 per channel)
            pltpu.VMEM((32, 49), jnp.float32),    # flattened 32 x (7*7) features
        ],
        compiler_params=pltpu.CompilerParams(
            dimension_semantics=("parallel",),
        ),
    )(x1, w1, b1, w2, b2, wfc1, bfc1, wfc2, bfc2)
    return out[:, 0, :2]


# ---------------------------------------------------------------------------
# Deterministic parameter init in PyTorch layout (uniform(-1/sqrt(fan_in), ..))
# ---------------------------------------------------------------------------
def init_params(key):
    ks = jax.random.split(key, 8)

    def uinit(k, shape, fan_in):
        bound = 1.0 / jnp.sqrt(jnp.float32(fan_in))
        return jax.random.uniform(k, shape, jnp.float32, -bound, bound)

    return {
        "w_conv1": uinit(ks[0], (16, 3, 3, 3), 3 * 9),      # (Cout, Cin, kh, kw)
        "b_conv1": uinit(ks[1], (16,), 3 * 9),
        "w_conv2": uinit(ks[2], (32, 16, 3, 3), 16 * 9),
        "b_conv2": uinit(ks[3], (32,), 16 * 9),
        "w_fc1": uinit(ks[4], (128, 32 * 7 * 7), 32 * 49),  # (out, in) like torch
        "b_fc1": uinit(ks[5], (128,), 32 * 49),
        "w_fc2": uinit(ks[6], (2, 128), 128),
        "b_fc2": uinit(ks[7], (2,), 128),
    }


if __name__ == "__main__":
    key = jax.random.PRNGKey(0)
    k_x, k_p = jax.random.split(key)

    # Input must be 28x28 spatially so that two 2x2 pools yield 32*7*7 features.
    x = jax.random.normal(k_x, (2, 3, 28, 28), jnp.float32)   # NCHW, like torch
    params = init_params(k_p)

    out = jax.jit(simple_cnn_forward)(x, params)
    out = jax.block_until_ready(out)

    assert out.shape == (2, 2) and out.dtype == jnp.float32
    assert bool(jnp.all(jnp.isfinite(out)))
    print("KERNEL_OK")
</pallas_src>

<mosaic_0001>
module attributes {stable_mosaic.version = 11 : i64} {
  func.func @_simple_cnn_kernel(%arg0: i32, %arg1: memref<1x8x992xbf16, #tpu.memory_space<vmem>>, %arg2: memref<9x16x8xbf16, #tpu.memory_space<vmem>>, %arg3: memref<16x1xf32, #tpu.memory_space<vmem>>, %arg4: memref<9x32x16xbf16, #tpu.memory_space<vmem>>, %arg5: memref<32x1xf32, #tpu.memory_space<vmem>>, %arg6: memref<32x49x128xbf16, #tpu.memory_space<vmem>>, %arg7: memref<1x128xf32, #tpu.memory_space<vmem>>, %arg8: memref<128x128xbf16, #tpu.memory_space<vmem>>, %arg9: memref<1x128xf32, #tpu.memory_space<vmem>>, %arg10: memref<1x1x128xf32, #tpu.memory_space<vmem>>, %arg11: memref<16x272xf32, #tpu.memory_space<vmem>>, %arg12: memref<32x49xf32, #tpu.memory_space<vmem>>) attributes {dimension_semantics = [#tpu.dimension_semantics<parallel>], iteration_bounds = array<i64: 2>, scalar_prefetch = 0 : i64, scratch_operands = 2 : i64, tpu.core_type = #tpu.core_type<tc>, window_params = [{transform_indices = @transform_0, window_bounds = array<i64: 1, 8, 992>}, {pipeline_mode = #tpu.pipeline_mode<synchronous>, transform_indices = @transform_1, window_bounds = array<i64: 9, 16, 8>}, {pipeline_mode = #tpu.pipeline_mode<synchronous>, transform_indices = @transform_2, window_bounds = array<i64: 16, 1>}, {pipeline_mode = #tpu.pipeline_mode<synchronous>, transform_indices = @transform_3, window_bounds = array<i64: 9, 32, 16>}, {pipeline_mode = #tpu.pipeline_mode<synchronous>, transform_indices = @transform_4, window_bounds = array<i64: 32, 1>}, {pipeline_mode = #tpu.pipeline_mode<synchronous>, transform_indices = @transform_5, window_bounds = array<i64: 32, 49, 128>}, {pipeline_mode = #tpu.pipeline_mode<synchronous>, transform_indices = @transform_6, window_bounds = array<i64: 1, 128>}, {pipeline_mode = #tpu.pipeline_mode<synchronous>, transform_indices = @transform_7, window_bounds = array<i64: 128, 128>}, {pipeline_mode = #tpu.pipeline_mode<synchronous>, transform_indices = @transform_8, window_bounds = array<i64: 1, 128>}, {transform_indices = @transform_9, window_bounds = array<i64: 1, 1, 128>}]} {
    %c0 = arith.constant 0 : index
    %c0_0 = arith.constant 0 : index
    %c0_1 = arith.constant 0 : index
    %0 = vector.load %arg1[%c0, %c0_0, %c0_1] : memref<1x8x992xbf16, #tpu.memory_space<vmem>>, vector<1x8x992xbf16>
    %1 = vector.shape_cast %0 : vector<1x8x992xbf16> to vector<8x992xbf16>
    %cst = arith.constant 0.000000e+00 : f32
    %2 = vector.broadcast %cst : f32 to vector<16x896xf32>
    %c0_2 = arith.constant 0 : index
    %c0_3 = arith.constant 0 : index
    %c0_4 = arith.constant 0 : index
    %3 = vector.load %arg2[%c0_2, %c0_3, %c0_4] : memref<9x16x8xbf16, #tpu.memory_space<vmem>>, vector<1x16x8xbf16>
    %4 = vector.shape_cast %3 : vector<1x16x8xbf16> to vector<16x8xbf16>
    %5 = vector.extract_strided_slice %1 {offsets = [0, 0], sizes = [8, 896], strides = [1, 1]} : vector<8x992xbf16> to vector<8x896xbf16>
    %cst_5 = arith.constant dense<0.000000e+00> : vector<16x896xf32>
    %6 = tpu.matmul %4, %5, %cst_5 {dimension_numbers = #tpu.dot_dimension_numbers<[1], [0], [0], [1], [0, 0, 1, 1], [], []>} : vector<16x8xbf16>, vector<8x896xbf16>, vector<16x896xf32> -> vector<16x896xf32>
    %7 = arith.addf %2, %6 : vector<16x896xf32>
    %c1 = arith.constant 1 : index
    %c0_6 = arith.constant 0 : index
    %c0_7 = arith.constant 0 : index
    %8 = vector.load %arg2[%c1, %c0_6, %c0_7] : memref<9x16x8xbf16, #tpu.memory_space<vmem>>, vector<1x16x8xbf16>
    %9 = vector.shape_cast %8 : vector<1x16x8xbf16> to vector<16x8xbf16>
    %10 = vector.extract_strided_slice %1 {offsets = [0, 1], sizes = [8, 896], strides = [1, 1]} : vector<8x992xbf16> to vector<8x896xbf16>
    %cst_8 = arith.constant dense<0.000000e+00> : vector<16x896xf32>
    %11 = tpu.matmul %9, %10, %cst_8 {dimension_numbers = #tpu.dot_dimension_numbers<[1], [0], [0], [1], [0, 0, 1, 1], [], []>} : vector<16x8xbf16>, vector<8x896xbf16>, vector<16x896xf32> -> vector<16x896xf32>
    %12 = arith.addf %7, %11 : vector<16x896xf32>
    %c2 = arith.constant 2 : index
    %c0_9 = arith.constant 0 : index
    %c0_10 = arith.constant 0 : index
    %13 = vector.load %arg2[%c2, %c0_9, %c0_10] : memref<9x16x8xbf16, #tpu.memory_space<vmem>>, vector<1x16x8xbf16>
    %14 = vector.shape_cast %13 : vector<1x16x8xbf16> to vector<16x8xbf16>
    %15 = vector.extract_strided_slice %1 {offsets = [0, 2], sizes = [8, 896], strides = [1, 1]} : vector<8x992xbf16> to vector<8x896xbf16>
    %cst_11 = arith.constant dense<0.000000e+00> : vector<16x896xf32>
    %16 = tpu.matmul %14, %15, %cst_11 {dimension_numbers = #tpu.dot_dimension_numbers<[1], [0], [0], [1], [0, 0, 1, 1], [], []>} : vector<16x8xbf16>, vector<8x896xbf16>, vector<16x896xf32> -> vector<16x896xf32>
    %17 = arith.addf %12, %16 : vector<16x896xf32>
    %c3 = arith.constant 3 : index
    %c0_12 = arith.constant 0 : index
    %c0_13 = arith.constant 0 : index
    %18 = vector.load %arg2[%c3, %c0_12, %c0_13] : memref<9x16x8xbf16, #tpu.memory_space<vmem>>, vector<1x16x8xbf16>
    %19 = vector.shape_cast %18 : vector<1x16x8xbf16> to vector<16x8xbf16>
    %20 = vector.extract_strided_slice %1 {offsets = [0, 32], sizes = [8, 896], strides = [1, 1]} : vector<8x992xbf16> to vector<8x896xbf16>
    %cst_14 = arith.constant dense<0.000000e+00> : vector<16x896xf32>
    %21 = tpu.matmul %19, %20, %cst_14 {dimension_numbers = #tpu.dot_dimension_numbers<[1], [0], [0], [1], [0, 0, 1, 1], [], []>} : vector<16x8xbf16>, vector<8x896xbf16>, vector<16x896xf32> -> vector<16x896xf32>
    %22 = arith.addf %17, %21 : vector<16x896xf32>
    %c4 = arith.constant 4 : index
    %c0_15 = arith.constant 0 : index
    %c0_16 = arith.constant 0 : index
    %23 = vector.load %arg2[%c4, %c0_15, %c0_16] : memref<9x16x8xbf16, #tpu.memory_space<vmem>>, vector<1x16x8xbf16>
    %24 = vector.shape_cast %23 : vector<1x16x8xbf16> to vector<16x8xbf16>
    %25 = vector.extract_strided_slice %1 {offsets = [0, 33], sizes = [8, 896], strides = [1, 1]} : vector<8x992xbf16> to vector<8x896xbf16>
    %cst_17 = arith.constant dense<0.000000e+00> : vector<16x896xf32>
    %26 = tpu.matmul %24, %25, %cst_17 {dimension_numbers = #tpu.dot_dimension_numbers<[1], [0], [0], [1], [0, 0, 1, 1], [], []>} : vector<16x8xbf16>, vector<8x896xbf16>, vector<16x896xf32> -> vector<16x896xf32>
    %27 = arith.addf %22, %26 : vector<16x896xf32>
    %c5 = arith.constant 5 : index
    %c0_18 = arith.constant 0 : index
    %c0_19 = arith.constant 0 : index
    %28 = vector.load %arg2[%c5, %c0_18, %c0_19] : memref<9x16x8xbf16, #tpu.memory_space<vmem>>, vector<1x16x8xbf16>
    %29 = vector.shape_cast %28 : vector<1x16x8xbf16> to vector<16x8xbf16>
    %30 = vector.extract_strided_slice %1 {offsets = [0, 34], sizes = [8, 896], strides = [1, 1]} : vector<8x992xbf16> to vector<8x896xbf16>
    %cst_20 = arith.constant dense<0.000000e+00> : vector<16x896xf32>
    %31 = tpu.matmul %29, %30, %cst_20 {dimension_numbers = #tpu.dot_dimension_numbers<[1], [0], [0], [1], [0, 0, 1, 1], [], []>} : vector<16x8xbf16>, vector<8x896xbf16>, vector<16x896xf32> -> vector<16x896xf32>
    %32 = arith.addf %27, %31 : vector<16x896xf32>
    %c6 = arith.constant 6 : index
    %c0_21 = arith.constant 0 : index
    %c0_22 = arith.constant 0 : index
    %33 = vector.load %arg2[%c6, %c0_21, %c0_22] : memref<9x16x8xbf16, #tpu.memory_space<vmem>>, vector<1x16x8xbf16>
    %34 = vector.shape_cast %33 : vector<1x16x8xbf16> to vector<16x8xbf16>
    %35 = vector.extract_strided_slice %1 {offsets = [0, 64], sizes = [8, 896], strides = [1, 1]} : vector<8x992xbf16> to vector<8x896xbf16>
    %cst_23 = arith.constant dense<0.000000e+00> : vector<16x896xf32>
    %36 = tpu.matmul %34, %35, %cst_23 {dimension_numbers = #tpu.dot_dimension_numbers<[1], [0], [0], [1], [0, 0, 1, 1], [], []>} : vector<16x8xbf16>, vector<8x896xbf16>, vector<16x896xf32> -> vector<16x896xf32>
    %37 = arith.addf %32, %36 : vector<16x896xf32>
    %c7 = arith.constant 7 : index
    %c0_24 = arith.constant 0 : index
    %c0_25 = arith.constant 0 : index
    %38 = vector.load %arg2[%c7, %c0_24, %c0_25] : memref<9x16x8xbf16, #tpu.memory_space<vmem>>, vector<1x16x8xbf16>
    %39 = vector.shape_cast %38 : vector<1x16x8xbf16> to vector<16x8xbf16>
    %40 = vector.extract_strided_slice %1 {offsets = [0, 65], sizes = [8, 896], strides = [1, 1]} : vector<8x992xbf16> to vector<8x896xbf16>
    %cst_26 = arith.constant dense<0.000000e+00> : vector<16x896xf32>
    %41 = tpu.matmul %39, %40, %cst_26 {dimension_numbers = #tpu.dot_dimension_numbers<[1], [0], [0], [1], [0, 0, 1, 1], [], []>} : vector<16x8xbf16>, vector<8x896xbf16>, vector<16x896xf32> -> vector<16x896xf32>
    %42 = arith.addf %37, %41 : vector<16x896xf32>
    %c8 = arith.constant 8 : index
    %c0_27 = arith.constant 0 : index
    %c0_28 = arith.constant 0 : index
    %43 = vector.load %arg2[%c8, %c0_27, %c0_28] : memref<9x16x8xbf16, #tpu.memory_space<vmem>>, vector<1x16x8xbf16>
    %44 = vector.shape_cast %43 : vector<1x16x8xbf16> to vector<16x8xbf16>
    %45 = vector.extract_strided_slice %1 {offsets = [0, 66], sizes = [8, 896], strides = [1, 1]} : vector<8x992xbf16> to vector<8x896xbf16>
    %cst_29 = arith.constant dense<0.000000e+00> : vector<16x896xf32>
    %46 = tpu.matmul %44, %45, %cst_29 {dimension_numbers = #tpu.dot_dimension_numbers<[1], [0], [0], [1], [0, 0, 1, 1], [], []>} : vector<16x8xbf16>, vector<8x896xbf16>, vector<16x896xf32> -> vector<16x896xf32>
    %47 = arith.addf %42, %46 : vector<16x896xf32>
    %c0_30 = arith.constant 0 : index
    %c0_31 = arith.constant 0 : index
    %48 = vector.load %arg3[%c0_30, %c0_31] : memref<16x1xf32, #tpu.memory_space<vmem>>, vector<16x1xf32>
    %49 = vector.broadcast %48 : vector<16x1xf32> to vector<16x896xf32>
    %50 = arith.addf %47, %49 : vector<16x896xf32>
    %cst_32 = arith.constant 0.000000e+00 : f32
    %51 = vector.broadcast %cst_32 : f32 to vector<16x896xf32>
    %52 = arith.maximumf %50, %51 : vector<16x896xf32>
    %53 = vector.extract_strided_slice %52 {offsets = [0, 0], sizes = [16, 895], strides = [1, 1]} : vector<16x896xf32> to vector<16x895xf32>
    %54 = vector.extract_strided_slice %52 {offsets = [0, 1], sizes = [16, 895], strides = [1, 1]} : vector<16x896xf32> to vector<16x895xf32>
    %55 = arith.maximumf %53, %54 : vector<16x895xf32>
    %56 = vector.extract_strided_slice %55 {offsets = [0, 0], sizes = [16, 863], strides = [1, 1]} : vector<16x895xf32> to vector<16x863xf32>
    %57 = vector.extract_strided_slice %55 {offsets = [0, 32], sizes = [16, 863], strides = [1, 1]} : vector<16x895xf32> to vector<16x863xf32>
    %58 = arith.maximumf %56, %57 : vector<16x863xf32>
    %cst_33 = arith.constant 0.000000e+00 : f32
    %59 = vector.broadcast %cst_33 : f32 to vector<16x272xf32>
    %c0_34 = arith.constant 0 : index
    %c0_35 = arith.constant 0 : index
    %60 = vector.load %arg11[%c0_34, %c0_35] : memref<16x272xf32, #tpu.memory_space<vmem>>, vector<16x272xf32>
    tpu.vector_store %arg11[%c0_34, %c0_35], %59 {strides = array<i32>} : memref<16x272xf32, #tpu.memory_space<vmem>>, vector<16x272xf32>,
    %61 = tpu.iota {dimensions = array<i32: 0>} : vector<27x14xi32>
    %62 = tpu.iota {dimensions = array<i32: 1>} : vector<27x14xi32>
    %c2_i32 = arith.constant 2 : i32
    %63 = vector.broadcast %c2_i32 : i32 to vector<27x14xi32>
    %64 = arith.muli %63, %62 : vector<27x14xi32>
    %65 = arith.cmpi eq, %61, %64 : vector<27x14xi32>
    %66 = arith.extui %65 : vector<27x14xi1> to vector<27x14xi32>
    %67 = arith.sitofp %66 : vector<27x14xi32> to vector<27x14xf32>
    %68 = vector.extract_strided_slice %58 {offsets = [0, 0], sizes = [16, 27], strides = [1, 1]} : vector<16x863xf32> to vector<16x27xf32>
    %cst_36 = arith.constant dense<0.000000e+00> : vector<16x14xf32>
    %69 = tpu.matmul %68, %67, %cst_36 {dimension_numbers = #tpu.dot_dimension_numbers<[1], [0], [0], [1], [0, 0, 1, 1], [], []>} : vector<16x27xf32>, vector<27x14xf32>, vector<16x14xf32> -> vector<16x14xf32>
    %c0_37 = arith.constant 0 : index
    %c17 = arith.constant 17 : index
    %70 = vector.load %arg11[%c0_37, %c17] : memref<16x272xf32, #tpu.memory_space<vmem>>, vector<16x14xf32>
    tpu.vector_store %arg11[%c0_37, %c17], %69 {strides = array<i32>} : memref<16x272xf32, #tpu.memory_space<vmem>>, vector<16x14xf32>,
    %71 = vector.extract_strided_slice %58 {offsets = [0, 64], sizes = [16, 27], strides = [1, 1]} : vector<16x863xf32> to vector<16x27xf32>
    %cst_38 = arith.constant dense<0.000000e+00> : vector<16x14xf32>
    %72 = tpu.matmul %71, %67, %cst_38 {dimension_numbers = #tpu.dot_dimension_numbers<[1], [0], [0], [1], [0, 0, 1, 1], [], []>} : vector<16x27xf32>, vector<27x14xf32>, vector<16x14xf32> -> vector<16x14xf32>
    %c0_39 = arith.constant 0 : index
    %c33 = arith.constant 33 : index
    %73 = vector.load %arg11[%c0_39, %c33] : memref<16x272xf32, #tpu.memory_space<vmem>>, vector<16x14xf32>
    tpu.vector_store %arg11[%c0_39, %c33], %72 {strides = array<i32>} : memref<16x272xf32, #tpu.memory_space<vmem>>, vector<16x14xf32>,
    %74 = vector.extract_strided_slice %58 {offsets = [0, 128], sizes = [16, 27], strides = [1, 1]} : vector<16x863xf32> to vector<16x27xf32>
    %cst_40 = arith.constant dense<0.000000e+00> : vector<16x14xf32>
    %75 = tpu.matmul %74, %67, %cst_40 {dimension_numbers = #tpu.dot_dimension_numbers<[1], [0], [0], [1], [0, 0, 1, 1], [], []>} : vector<16x27xf32>, vector<27x14xf32>, vector<16x14xf32> -> vector<16x14xf32>
    %c0_41 = arith.constant 0 : index
    %c49 = arith.constant 49 : index
    %76 = vector.load %arg11[%c0_41, %c49] : memref<16x272xf32, #tpu.memory_space<vmem>>, vector<16x14xf32>
    tpu.vector_store %arg11[%c0_41, %c49], %75 {strides = array<i32>} : memref<16x272xf32, #tpu.memory_space<vmem>>, vector<16x14xf32>,
    %77 = vector.extract_strided_slice %58 {offsets = [0, 192], sizes = [16, 27], strides = [1, 1]} : vector<16x863xf32> to vector<16x27xf32>
    %cst_42 = arith.constant dense<0.000000e+00> : vector<16x14xf32>
    %78 = tpu.matmul %77, %67, %cst_42 {dimension_numbers = #tpu.dot_dimension_numbers<[1], [0], [0], [1], [0, 0, 1, 1], [], []>} : vector<16x27xf32>, vector<27x14xf32>, vector<16x14xf32> -> vector<16x14xf32>
    %c0_43 = arith.constant 0 : index
    %c65 = arith.constant 65 : index
    %79 = vector.load %arg11[%c0_43, %c65] : memref<16x272xf32, #tpu.memory_space<vmem>>, vector<16x14xf32>
    tpu.vector_store %arg11[%c0_43, %c65], %78 {strides = array<i32>} : memref<16x272xf32, #tpu.memory_space<vmem>>, vector<16x14xf32>,
    %80 = vector.extract_strided_slice %58 {offsets = [0, 256], sizes = [16, 27], strides = [1, 1]} : vector<16x863xf32> to vector<16x27xf32>
    %cst_44 = arith.constant dense<0.000000e+00> : vector<16x14xf32>
    %81 = tpu.matmul %80, %67, %cst_44 {dimension_numbers = #tpu.dot_dimension_numbers<[1], [0], [0], [1], [0, 0, 1, 1], [], []>} : vector<16x27xf32>, vector<27x14xf32>, vector<16x14xf32> -> vector<16x14xf32>
    %c0_45 = arith.constant 0 : index
    %c81 = arith.constant 81 : index
    %82 = vector.load %arg11[%c0_45, %c81] : memref<16x272xf32, #tpu.memory_space<vmem>>, vector<16x14xf32>
    tpu.vector_store %arg11[%c0_45, %c81], %81 {strides = array<i32>} : memref<16x272xf32, #tpu.memory_space<vmem>>, vector<16x14xf32>,
    %83 = vector.extract_strided_slice %58 {offsets = [0, 320], sizes = [16, 27], strides = [1, 1]} : vector<16x863xf32> to vector<16x27xf32>
    %cst_46 = arith.constant dense<0.000000e+00> : vector<16x14xf32>
    %84 = tpu.matmul %83, %67, %cst_46 {dimension_numbers = #tpu.dot_dimension_numbers<[1], [0], [0], [1], [0, 0, 1, 1], [], []>} : vector<16x27xf32>, vector<27x14xf32>, vector<16x14xf32> -> vector<16x14xf32>
    %c0_47 = arith.constant 0 : index
    %c97 = arith.constant 97 : index
    %85 = vector.load %arg11[%c0_47, %c97] : memref<16x272xf32, #tpu.memory_space<vmem>>, vector<16x14xf32>
    tpu.vector_store %arg11[%c0_47, %c97], %84 {strides = array<i32>} : memref<16x272xf32, #tpu.memory_space<vmem>>, vector<16x14xf32>,
    %86 = vector.extract_strided_slice %58 {offsets = [0, 384], sizes = [16, 27], strides = [1, 1]} : vector<16x863xf32> to vector<16x27xf32>
    %cst_48 = arith.constant dense<0.000000e+00> : vector<16x14xf32>
    %87 = tpu.matmul %86, %67, %cst_48 {dimension_numbers = #tpu.dot_dimension_numbers<[1], [0], [0], [1], [0, 0, 1, 1], [], []>} : vector<16x27xf32>, vector<27x14xf32>, vector<16x14xf32> -> vector<16x14xf32>
    %c0_49 = arith.constant 0 : index
    %c113 = arith.constant 113 : index
    %88 = vector.load %arg11[%c0_49, %c113] : memref<16x272xf32, #tpu.memory_space<vmem>>, vector<16x14xf32>
    tpu.vector_store %arg11[%c0_49, %c113], %87 {strides = array<i32>} : memref<16x272xf32, #tpu.memory_space<vmem>>, vector<16x14xf32>,
    %89 = vector.extract_strided_slice %58 {offsets = [0, 448], sizes = [16, 27], strides = [1, 1]} : vector<16x863xf32> to vector<16x27xf32>
    %cst_50 = arith.constant dense<0.000000e+00> : vector<16x14xf32>
    %90 = tpu.matmul %89, %67, %cst_50 {dimension_numbers = #tpu.dot_dimension_numbers<[1], [0], [0], [1], [0, 0, 1, 1], [], []>} : vector<16x27xf32>, vector<27x14xf32>, vector<16x14xf32> -> vector<16x14xf32>
    %c0_51 = arith.constant 0 : index
    %c129 = arith.constant 129 : index
    %91 = vector.load %arg11[%c0_51, %c129] : memref<16x272xf32, #tpu.memory_space<vmem>>, vector<16x14xf32>
    tpu.vector_store %arg11[%c0_51, %c129], %90 {strides = array<i32>} : memref<16x272xf32, #tpu.memory_space<vmem>>, vector<16x14xf32>,
    %92 = vector.extract_strided_slice %58 {offsets = [0, 512], sizes = [16, 27], strides = [1, 1]} : vector<16x863xf32> to vector<16x27xf32>
    %cst_52 = arith.constant dense<0.000000e+00> : vector<16x14xf32>
    %93 = tpu.matmul %92, %67, %cst_52 {dimension_numbers = #tpu.dot_dimension_numbers<[1], [0], [0], [1], [0, 0, 1, 1], [], []>} : vector<16x27xf32>, vector<27x14xf32>, vector<16x14xf32> -> vector<16x14xf32>
    %c0_53 = arith.constant 0 : index
    %c145 = arith.constant 145 : index
    %94 = vector.load %arg11[%c0_53, %c145] : memref<16x272xf32, #tpu.memory_space<vmem>>, vector<16x14xf32>
    tpu.vector_store %arg11[%c0_53, %c145], %93 {strides = array<i32>} : memref<16x272xf32, #tpu.memory_space<vmem>>, vector<16x14xf32>,
    %95 = vector.extract_strided_slice %58 {offsets = [0, 576], sizes = [16, 27], strides = [1, 1]} : vector<16x863xf32> to vector<16x27xf32>
    %cst_54 = arith.constant dense<0.000000e+00> : vector<16x14xf32>
    %96 = tpu.matmul %95, %67, %cst_54 {dimension_numbers = #tpu.dot_dimension_numbers<[1], [0], [0], [1], [0, 0, 1, 1], [], []>} : vector<16x27xf32>, vector<27x14xf32>, vector<16x14xf32> -> vector<16x14xf32>
    %c0_55 = arith.constant 0 : index
    %c161 = arith.constant 161 : index
    %97 = vector.load %arg11[%c0_55, %c161] : memref<16x272xf32, #tpu.memory_space<vmem>>, vector<16x14xf32>
    tpu.vector_store %arg11[%c0_55, %c161], %96 {strides = array<i32>} : memref<16x272xf32, #tpu.memory_space<vmem>>, vector<16x14xf32>,
    %98 = vector.extract_strided_slice %58 {offsets = [0, 640], sizes = [16, 27], strides = [1, 1]} : vector<16x863xf32> to vector<16x27xf32>
    %cst_56 = arith.constant dense<0.000000e+00> : vector<16x14xf32>
    %99 = tpu.matmul %98, %67, %cst_56 {dimension_numbers = #tpu.dot_dimension_numbers<[1], [0], [0], [1], [0, 0, 1, 1], [], []>} : vector<16x27xf32>, vector<27x14xf32>, vector<16x14xf32> -> vector<16x14xf32>
    %c0_57 = arith.constant 0 : index
    %c177 = arith.constant 177 : index
    %100 = vector.load %arg11[%c0_57, %c177] : memref<16x272xf32, #tpu.memory_space<vmem>>, vector<16x14xf32>
    tpu.vector_store %arg11[%c0_57, %c177], %99 {strides = array<i32>} : memref<16x272xf32, #tpu.memory_space<vmem>>, vector<16x14xf32>,
    %101 = vector.extract_strided_slice %58 {offsets = [0, 704], sizes = [16, 27], strides = [1, 1]} : vector<16x863xf32> to vector<16x27xf32>
    %cst_58 = arith.constant dense<0.000000e+00> : vector<16x14xf32>
    %102 = tpu.matmul %101, %67, %cst_58 {dimension_numbers = #tpu.dot_dimension_numbers<[1], [0], [0], [1], [0, 0, 1, 1], [], []>} : vector<16x27xf32>, vector<27x14xf32>, vector<16x14xf32> -> vector<16x14xf32>
    %c0_59 = arith.constant 0 : index
    %c193 = arith.constant 193 : index
    %103 = vector.load %arg11[%c0_59, %c193] : memref<16x272xf32, #tpu.memory_space<vmem>>, vector<16x14xf32>
    tpu.vector_store %arg11[%c0_59, %c193], %102 {strides = array<i32>} : memref<16x272xf32, #tpu.memory_space<vmem>>, vector<16x14xf32>,
    %104 = vector.extract_strided_slice %58 {offsets = [0, 768], sizes = [16, 27], strides = [1, 1]} : vector<16x863xf32> to vector<16x27xf32>
    %cst_60 = arith.constant dense<0.000000e+00> : vector<16x14xf32>
    %105 = tpu.matmul %104, %67, %cst_60 {dimension_numbers = #tpu.dot_dimension_numbers<[1], [0], [0], [1], [0, 0, 1, 1], [], []>} : vector<16x27xf32>, vector<27x14xf32>, vector<16x14xf32> -> vector<16x14xf32>
    %c0_61 = arith.constant 0 : index
    %c209 = arith.constant 209 : index
    %106 = vector.load %arg11[%c0_61, %c209] : memref<16x272xf32, #tpu.memory_space<vmem>>, vector<16x14xf32>
    tpu.vector_store %arg11[%c0_61, %c209], %105 {strides = array<i32>} : memref<16x272xf32, #tpu.memory_space<vmem>>, vector<16x14xf32>,
    %107 = vector.extract_strided_slice %58 {offsets = [0, 832], sizes = [16, 27], strides = [1, 1]} : vector<16x863xf32> to vector<16x27xf32>
    %cst_62 = arith.constant dense<0.000000e+00> : vector<16x14xf32>
    %108 = tpu.matmul %107, %67, %cst_62 {dimension_numbers = #tpu.dot_dimension_numbers<[1], [0], [0], [1], [0, 0, 1, 1], [], []>} : vector<16x27xf32>, vector<27x14xf32>, vector<16x14xf32> -> vector<16x14xf32>
    %c0_63 = arith.constant 0 : index
    %c225 = arith.constant 225 : index
    %109 = vector.load %arg11[%c0_63, %c225] : memref<16x272xf32, #tpu.memory_space<vmem>>, vector<16x14xf32>
    tpu.vector_store %arg11[%c0_63, %c225], %108 {strides = array<i32>} : memref<16x272xf32, #tpu.memory_space<vmem>>, vector<16x14xf32>,
    %c0_64 = arith.constant 0 : index
    %c0_65 = arith.constant 0 : index
    %110 = vector.load %arg11[%c0_64, %c0_65] : memref<16x272xf32, #tpu.memory_space<vmem>>, vector<16x272xf32>
    %111 = arith.truncf %110 : vector<16x272xf32> to vector<16x272xbf16>
    %cst_66 = arith.constant 0.000000e+00 : f32
    %112 = vector.broadcast %cst_66 : f32 to vector<32x224xf32>
    %c0_67 = arith.constant 0 : index
    %c0_68 = arith.constant 0 : index
    %c0_69 = arith.constant 0 : index
    %113 = vector.load %arg4[%c0_67, %c0_68, %c0_69] : memref<9x32x16xbf16, #tpu.memory_space<vmem>>, vector<1x32x16xbf16>
    %114 = vector.shape_cast %113 : vector<1x32x16xbf16> to vector<32x16xbf16>
    %115 = vector.extract_strided_slice %111 {offsets = [0, 0], sizes = [16, 224], strides = [1, 1]} : vector<16x272xbf16> to vector<16x224xbf16>
    %cst_70 = arith.constant dense<0.000000e+00> : vector<32x224xf32>
    %116 = tpu.matmul %114, %115, %cst_70 {dimension_numbers = #tpu.dot_dimension_numbers<[1], [0], [0], [1], [0, 0, 1, 1], [], []>} : vector<32x16xbf16>, vector<16x224xbf16>, vector<32x224xf32> -> vector<32x224xf32>
    %117 = arith.addf %112, %116 : vector<32x224xf32>
    %c1_71 = arith.constant 1 : index
    %c0_72 = arith.constant 0 : index
    %c0_73 = arith.constant 0 : index
    %118 = vector.load %arg4[%c1_71, %c0_72, %c0_73] : memref<9x32x16xbf16, #tpu.memory_space<vmem>>, vector<1x32x16xbf16>
    %119 = vector.shape_cast %118 : vector<1x32x16xbf16> to vector<32x16xbf16>
    %120 = vector.extract_strided_slice %111 {offsets = [0, 1], sizes = [16, 224], strides = [1, 1]} : vector<16x272xbf16> to vector<16x224xbf16>
    %cst_74 = arith.constant dense<0.000000e+00> : vector<32x224xf32>
    %121 = tpu.matmul %119, %120, %cst_74 {dimension_numbers = #tpu.dot_dimension_numbers<[1], [0], [0], [1], [0, 0, 1, 1], [], []>} : vector<32x16xbf16>, vector<16x224xbf16>, vector<32x224xf32> -> vector<32x224xf32>
    %122 = arith.addf %117, %121 : vector<32x224xf32>
    %c2_75 = arith.constant 2 : index
    %c0_76 = arith.constant 0 : index
    %c0_77 = arith.constant 0 : index
    %123 = vector.load %arg4[%c2_75, %c0_76, %c0_77] : memref<9x32x16xbf16, #tpu.memory_space<vmem>>, vector<1x32x16xbf16>
    %124 = vector.shape_cast %123 : vector<1x32x16xbf16> to vector<32x16xbf16>
    %125 = vector.extract_strided_slice %111 {offsets = [0, 2], sizes = [16, 224], strides = [1, 1]} : vector<16x272xbf16> to vector<16x224xbf16>
    %cst_78 = arith.constant dense<0.000000e+00> : vector<32x224xf32>
    %126 = tpu.matmul %124, %125, %cst_78 {dimension_numbers = #tpu.dot_dimension_numbers<[1], [0], [0], [1], [0, 0, 1, 1], [], []>} : vector<32x16xbf16>, vector<16x224xbf16>, vector<32x224xf32> -> vector<32x224xf32>
    %127 = arith.addf %122, %126 : vector<32x224xf32>
    %c3_79 = arith.constant 3 : index
    %c0_80 = arith.constant 0 : index
    %c0_81 = arith.constant 0 : index
    %128 = vector.load %arg4[%c3_79, %c0_80, %c0_81] : memref<9x32x16xbf16, #tpu.memory_space<vmem>>, vector<1x32x16xbf16>
    %129 = vector.shape_cast %128 : vector<1x32x16xbf16> to vector<32x16xbf16>
    %130 = vector.extract_strided_slice %111 {offsets = [0, 16], sizes = [16, 224], strides = [1, 1]} : vector<16x272xbf16> to vector<16x224xbf16>
    %cst_82 = arith.constant dense<0.000000e+00> : vector<32x224xf32>
    %131 = tpu.matmul %129, %130, %cst_82 {dimension_numbers = #tpu.dot_dimension_numbers<[1], [0], [0], [1], [0, 0, 1, 1], [], []>} : vector<32x16xbf16>, vector<16x224xbf16>, vector<32x224xf32> -> vector<32x224xf32>
    %132 = arith.addf %127, %131 : vector<32x224xf32>
    %c4_83 = arith.constant 4 : index
    %c0_84 = arith.constant 0 : index
    %c0_85 = arith.constant 0 : index
    %133 = vector.load %arg4[%c4_83, %c0_84, %c0_85] : memref<9x32x16xbf16, #tpu.memory_space<vmem>>, vector<1x32x16xbf16>
    %134 = vector.shape_cast %133 : vector<1x32x16xbf16> to vector<32x16xbf16>
    %135 = vector.extract_strided_slice %111 {offsets = [0, 17], sizes = [16, 224], strides = [1, 1]} : vector<16x272xbf16> to vector<16x224xbf16>
    %cst_86 = arith.constant dense<0.000000e+00> : vector<32x224xf32>
    %136 = tpu.matmul %134, %135, %cst_86 {dimension_numbers = #tpu.dot_dimension_numbers<[1], [0], [0], [1], [0, 0, 1, 1], [], []>} : vector<32x16xbf16>, vector<16x224xbf16>, vector<32x224xf32> -> vector<32x224xf32>
    %137 = arith.addf %132, %136 : vector<32x224xf32>
    %c5_87 = arith.constant 5 : index
    %c0_88 = arith.constant 0 : index
    %c0_89 = arith.constant 0 : index
    %138 = vector.load %arg4[%c5_87, %c0_88, %c0_89] : memref<9x32x16xbf16, #tpu.memory_space<vmem>>, vector<1x32x16xbf16>
    %139 = vector.shape_cast %138 : vector<1x32x16xbf16> to vector<32x16xbf16>
    %140 = vector.extract_strided_slice %111 {offsets = [0, 18], sizes = [16, 224], strides = [1, 1]} : vector<16x272xbf16> to vector<16x224xbf16>
    %cst_90 = arith.constant dense<0.000000e+00> : vector<32x224xf32>
    %141 = tpu.matmul %139, %140, %cst_90 {dimension_numbers = #tpu.dot_dimension_numbers<[1], [0], [0], [1], [0, 0, 1, 1], [], []>} : vector<32x16xbf16>, vector<16x224xbf16>, vector<32x224xf32> -> vector<32x224xf32>
    %142 = arith.addf %137, %141 : vector<32x224xf32>
    %c6_91 = arith.constant 6 : index
    %c0_92 = arith.constant 0 : index
    %c0_93 = arith.constant 0 : index
    %143 = vector.load %arg4[%c6_91, %c0_92, %c0_93] : memref<9x32x16xbf16, #tpu.memory_space<vmem>>, vector<1x32x16xbf16>
    %144 = vector.shape_cast %143 : vector<1x32x16xbf16> to vector<32x16xbf16>
    %145 = vector.extract_strided_slice %111 {offsets = [0, 32], sizes = [16, 224], strides = [1, 1]} : vector<16x272xbf16> to vector<16x224xbf16>
    %cst_94 = arith.constant dense<0.000000e+00> : vector<32x224xf32>
    %146 = tpu.matmul %144, %145, %cst_94 {dimension_numbers = #tpu.dot_dimension_numbers<[1], [0], [0], [1], [0, 0, 1, 1], [], []>} : vector<32x16xbf16>, vector<16x224xbf16>, vector<32x224xf32> -> vector<32x224xf32>
    %147 = arith.addf %142, %146 : vector<32x224xf32>
    %c7_95 = arith.constant 7 : index
    %c0_96 = arith.constant 0 : index
    %c0_97 = arith.constant 0 : index
    %148 = vector.load %arg4[%c7_95, %c0_96, %c0_97] : memref<9x32x16xbf16, #tpu.memory_space<vmem>>, vector<1x32x16xbf16>
    %149 = vector.shape_cast %148 : vector<1x32x16xbf16> to vector<32x16xbf16>
    %150 = vector.extract_strided_slice %111 {offsets = [0, 33], sizes = [16, 224], strides = [1, 1]} : vector<16x272xbf16> to vector<16x224xbf16>
    %cst_98 = arith.constant dense<0.000000e+00> : vector<32x224xf32>
    %151 = tpu.matmul %149, %150, %cst_98 {dimension_numbers = #tpu.dot_dimension_numbers<[1], [0], [0], [1], [0, 0, 1, 1], [], []>} : vector<32x16xbf16>, vector<16x224xbf16>, vector<32x224xf32> -> vector<32x224xf32>
    %152 = arith.addf %147, %151 : vector<32x224xf32>
    %c8_99 = arith.constant 8 : index
    %c0_100 = arith.constant 0 : index
    %c0_101 = arith.constant 0 : index
    %153 = vector.load %arg4[%c8_99, %c0_100, %c0_101] : memref<9x32x16xbf16, #tpu.memory_space<vmem>>, vector<1x32x16xbf16>
    %154 = vector.shape_cast %153 : vector<1x32x16xbf16> to vector<32x16xbf16>
    %155 = vector.extract_strided_slice %111 {offsets = [0, 34], sizes = [16, 224], strides = [1, 1]} : vector<16x272xbf16> to vector<16x224xbf16>
    %cst_102 = arith.constant dense<0.000000e+00> : vector<32x224xf32>
    %156 = tpu.matmul %154, %155, %cst_102 {dimension_numbers = #tpu.dot_dimension_numbers<[1], [0], [0], [1], [0, 0, 1, 1], [], []>} : vector<32x16xbf16>, vector<16x224xbf16>, vector<32x224xf32> -> vector<32x224xf32>
    %157 = arith.addf %152, %156 : vector<32x224xf32>
    %c0_103 = arith.constant 0 : index
    %c0_104 = arith.constant 0 : index
    %158 = vector.load %arg5[%c0_103, %c0_104] : memref<32x1xf32, #tpu.memory_space<vmem>>, vector<32x1xf32>
    %159 = vector.broadcast %158 : vector<32x1xf32> to vector<32x224xf32>
    %160 = arith.addf %157, %159 : vector<32x224xf32>
    %cst_105 = arith.constant 0.000000e+00 : f32
    %161 = vector.broadcast %cst_105 : f32 to vector<32x224xf32>
    %162 = arith.maximumf %160, %161 : vector<32x224xf32>
    %163 = vector.extract_strided_slice %162 {offsets = [0, 0], sizes = [32, 223], strides = [1, 1]} : vector<32x224xf32> to vector<32x223xf32>
    %164 = vector.extract_strided_slice %162 {offsets = [0, 1], sizes = [32, 223], strides = [1, 1]} : vector<32x224xf32> to vector<32x223xf32>
    %165 = arith.maximumf %163, %164 : vector<32x223xf32>
    %166 = vector.extract_strided_slice %165 {offsets = [0, 0], sizes = [32, 207], strides = [1, 1]} : vector<32x223xf32> to vector<32x207xf32>
    %167 = vector.extract_strided_slice %165 {offsets = [0, 16], sizes = [32, 207], strides = [1, 1]} : vector<32x223xf32> to vector<32x207xf32>
    %168 = arith.maximumf %166, %167 : vector<32x207xf32>
    %169 = tpu.iota {dimensions = array<i32: 0>} : vector<13x7xi32>
    %170 = tpu.iota {dimensions = array<i32: 1>} : vector<13x7xi32>
    %c2_i32_106 = arith.constant 2 : i32
    %171 = vector.broadcast %c2_i32_106 : i32 to vector<13x7xi32>
    %172 = arith.muli %171, %170 : vector<13x7xi32>
    %173 = arith.cmpi eq, %169, %172 : vector<13x7xi32>
    %174 = arith.extui %173 : vector<13x7xi1> to vector<13x7xi32>
    %175 = arith.sitofp %174 : vector<13x7xi32> to vector<13x7xf32>
    %176 = vector.extract_strided_slice %168 {offsets = [0, 0], sizes = [32, 13], strides = [1, 1]} : vector<32x207xf32> to vector<32x13xf32>
    %cst_107 = arith.constant dense<0.000000e+00> : vector<32x7xf32>
    %177 = tpu.matmul %176, %175, %cst_107 {dimension_numbers = #tpu.dot_dimension_numbers<[1], [0], [0], [1], [0, 0, 1, 1], [], []>} : vector<32x13xf32>, vector<13x7xf32>, vector<32x7xf32> -> vector<32x7xf32>
    %c0_108 = arith.constant 0 : index
    %c0_109 = arith.constant 0 : index
    %178 = vector.load %arg12[%c0_108, %c0_109] : memref<32x49xf32, #tpu.memory_space<vmem>>, vector<32x7xf32>
    tpu.vector_store %arg12[%c0_108, %c0_109], %177 {strides = array<i32>} : memref<32x49xf32, #tpu.memory_space<vmem>>, vector<32x7xf32>,
    %179 = vector.extract_strided_slice %168 {offsets = [0, 32], sizes = [32, 13], strides = [1, 1]} : vector<32x207xf32> to vector<32x13xf32>
    %cst_110 = arith.constant dense<0.000000e+00> : vector<32x7xf32>
    %180 = tpu.matmul %179, %175, %cst_110 {dimension_numbers = #tpu.dot_dimension_numbers<[1], [0], [0], [1], [0, 0, 1, 1], [], []>} : vector<32x13xf32>, vector<13x7xf32>, vector<32x7xf32> -> vector<32x7xf32>
    %c0_111 = arith.constant 0 : index
    %c7_112 = arith.constant 7 : index
    %181 = vector.load %arg12[%c0_111, %c7_112] : memref<32x49xf32, #tpu.memory_space<vmem>>, vector<32x7xf32>
    tpu.vector_store %arg12[%c0_111, %c7_112], %180 {strides = array<i32>} : memref<32x49xf32, #tpu.memory_space<vmem>>, vector<32x7xf32>,
    %182 = vector.extract_strided_slice %168 {offsets = [0, 64], sizes = [32, 13], strides = [1, 1]} : vector<32x207xf32> to vector<32x13xf32>
    %cst_113 = arith.constant dense<0.000000e+00> : vector<32x7xf32>
    %183 = tpu.matmul %182, %175, %cst_113 {dimension_numbers = #tpu.dot_dimension_numbers<[1], [0], [0], [1], [0, 0, 1, 1], [], []>} : vector<32x13xf32>, vector<13x7xf32>, vector<32x7xf32> -> vector<32x7xf32>
    %c0_114 = arith.constant 0 : index
    %c14 = arith.constant 14 : index
    %184 = vector.load %arg12[%c0_114, %c14] : memref<32x49xf32, #tpu.memory_space<vmem>>, vector<32x7xf32>
    tpu.vector_store %arg12[%c0_114, %c14], %183 {strides = array<i32>} : memref<32x49xf32, #tpu.memory_space<vmem>>, vector<32x7xf32>,
    %185 = vector.extract_strided_slice %168 {offsets = [0, 96], sizes = [32, 13], strides = [1, 1]} : vector<32x207xf32> to vector<32x13xf32>
    %cst_115 = arith.constant dense<0.000000e+00> : vector<32x7xf32>
    %186 = tpu.matmul %185, %175, %cst_115 {dimension_numbers = #tpu.dot_dimension_numbers<[1], [0], [0], [1], [0, 0, 1, 1], [], []>} : vector<32x13xf32>, vector<13x7xf32>, vector<32x7xf32> -> vector<32x7xf32>
    %c0_116 = arith.constant 0 : index
    %c21 = arith.constant 21 : index
    %187 = vector.load %arg12[%c0_116, %c21] : memref<32x49xf32, #tpu.memory_space<vmem>>, vector<32x7xf32>
    tpu.vector_store %arg12[%c0_116, %c21], %186 {strides = array<i32>} : memref<32x49xf32, #tpu.memory_space<vmem>>, vector<32x7xf32>,
    %188 = vector.extract_strided_slice %168 {offsets = [0, 128], sizes = [32, 13], strides = [1, 1]} : vector<32x207xf32> to vector<32x13xf32>
    %cst_117 = arith.constant dense<0.000000e+00> : vector<32x7xf32>
    %189 = tpu.matmul %188, %175, %cst_117 {dimension_numbers = #tpu.dot_dimension_numbers<[1], [0], [0], [1], [0, 0, 1, 1], [], []>} : vector<32x13xf32>, vector<13x7xf32>, vector<32x7xf32> -> vector<32x7xf32>
    %c0_118 = arith.constant 0 : index
    %c28 = arith.constant 28 : index
    %190 = vector.load %arg12[%c0_118, %c28] : memref<32x49xf32, #tpu.memory_space<vmem>>, vector<32x7xf32>
    tpu.vector_store %arg12[%c0_118, %c28], %189 {strides = array<i32>} : memref<32x49xf32, #tpu.memory_space<vmem>>, vector<32x7xf32>,
    %191 = vector.extract_strided_slice %168 {offsets = [0, 160], sizes = [32, 13], strides = [1, 1]} : vector<32x207xf32> to vector<32x13xf32>
    %cst_119 = arith.constant dense<0.000000e+00> : vector<32x7xf32>
    %192 = tpu.matmul %191, %175, %cst_119 {dimension_numbers = #tpu.dot_dimension_numbers<[1], [0], [0], [1], [0, 0, 1, 1], [], []>} : vector<32x13xf32>, vector<13x7xf32>, vector<32x7xf32> -> vector<32x7xf32>
    %c0_120 = arith.constant 0 : index
    %c35 = arith.constant 35 : index
    %193 = vector.load %arg12[%c0_120, %c35] : memref<32x49xf32, #tpu.memory_space<vmem>>, vector<32x7xf32>
    tpu.vector_store %arg12[%c0_120, %c35], %192 {strides = array<i32>} : memref<32x49xf32, #tpu.memory_space<vmem>>, vector<32x7xf32>,
    %194 = vector.extract_strided_slice %168 {offsets = [0, 192], sizes = [32, 13], strides = [1, 1]} : vector<32x207xf32> to vector<32x13xf32>
    %cst_121 = arith.constant dense<0.000000e+00> : vector<32x7xf32>
    %195 = tpu.matmul %194, %175, %cst_121 {dimension_numbers = #tpu.dot_dimension_numbers<[1], [0], [0], [1], [0, 0, 1, 1], [], []>} : vector<32x13xf32>, vector<13x7xf32>, vector<32x7xf32> -> vector<32x7xf32>
    %c0_122 = arith.constant 0 : index
    %c42 = arith.constant 42 : index
    %196 = vector.load %arg12[%c0_122, %c42] : memref<32x49xf32, #tpu.memory_space<vmem>>, vector<32x7xf32>
    tpu.vector_store %arg12[%c0_122, %c42], %195 {strides = array<i32>} : memref<32x49xf32, #tpu.memory_space<vmem>>, vector<32x7xf32>,
    %c0_123 = arith.constant 0 : index
    %c0_124 = arith.constant 0 : index
    %197 = vector.load %arg7[%c0_123, %c0_124] : memref<1x128xf32, #tpu.memory_space<vmem>>, vector<1x128xf32>
    %c0_125 = arith.constant 0 : index
    %c0_126 = arith.constant 0 : index
    %198 = vector.load %arg12[%c0_125, %c0_126] : memref<32x49xf32, #tpu.memory_space<vmem>>, vector<1x49xf32>
    %199 = arith.truncf %198 : vector<1x49xf32> to vector<1x49xbf16>
    %c0_127 = arith.constant 0 : index
    %c0_128 = arith.constant 0 : index
    %c0_129 = arith.constant 0 : index
    %200 = vector.load %arg6[%c0_127, %c0_128, %c0_129] : memref<32x49x128xbf16, #tpu.memory_space<vmem>>, vector<1x49x128xbf16>
    %201 = vector.shape_cast %200 : vector<1x49x128xbf16> to vector<49x128xbf16>
    %cst_130 = arith.constant dense<0.000000e+00> : vector<1x128xf32>
    %202 = tpu.matmul %199, %201, %cst_130 {dimension_numbers = #tpu.dot_dimension_numbers<[1], [0], [0], [1], [0, 0, 1, 1], [], []>} : vector<1x49xbf16>, vector<49x128xbf16>, vector<1x128xf32> -> vector<1x128xf32>
    %203 = arith.addf %197, %202 : vector<1x128xf32>
    %c1_131 = arith.constant 1 : index
    %c0_132 = arith.constant 0 : index
    %204 = vector.load %arg12[%c1_131, %c0_132] : memref<32x49xf32, #tpu.memory_space<vmem>>, vector<1x49xf32>
    %205 = arith.truncf %204 : vector<1x49xf32> to vector<1x49xbf16>
    %c1_133 = arith.constant 1 : index
    %c0_134 = arith.constant 0 : index
    %c0_135 = arith.constant 0 : index
    %206 = vector.load %arg6[%c1_133, %c0_134, %c0_135] : memref<32x49x128xbf16, #tpu.memory_space<vmem>>, vector<1x49x128xbf16>
    %207 = vector.shape_cast %206 : vector<1x49x128xbf16> to vector<49x128xbf16>
    %cst_136 = arith.constant dense<0.000000e+00> : vector<1x128xf32>
    %208 = tpu.matmul %205, %207, %cst_136 {dimension_numbers = #tpu.dot_dimension_numbers<[1], [0], [0], [1], [0, 0, 1, 1], [], []>} : vector<1x49xbf16>, vector<49x128xbf16>, vector<1x128xf32> -> vector<1x128xf32>
    %209 = arith.addf %203, %208 : vector<1x128xf32>
    %c2_137 = arith.constant 2 : index
    %c0_138 = arith.constant 0 : index
    %210 = vector.load %arg12[%c2_137, %c0_138] : memref<32x49xf32, #tpu.memory_space<vmem>>, vector<1x49xf32>
    %211 = arith.truncf %210 : vector<1x49xf32> to vector<1x49xbf16>
    %c2_139 = arith.constant 2 : index
    %c0_140 = arith.constant 0 : index
    %c0_141 = arith.constant 0 : index
    %212 = vector.load %arg6[%c2_139, %c0_140, %c0_141] : memref<32x49x128xbf16, #tpu.memory_space<vmem>>, vector<1x49x128xbf16>
    %213 = vector.shape_cast %212 : vector<1x49x128xbf16> to vector<49x128xbf16>
    %cst_142 = arith.constant dense<0.000000e+00> : vector<1x128xf32>
    %214 = tpu.matmul %211, %213, %cst_142 {dimension_numbers = #tpu.dot_dimension_numbers<[1], [0], [0], [1], [0, 0, 1, 1], [], []>} : vector<1x49xbf16>, vector<49x128xbf16>, vector<1x128xf32> -> vector<1x128xf32>
    %215 = arith.addf %209, %214 : vector<1x128xf32>
    %c3_143 = arith.constant 3 : index
    %c0_144 = arith.constant 0 : index
    %216 = vector.load %arg12[%c3_143, %c0_144] : memref<32x49xf32, #tpu.memory_space<vmem>>, vector<1x49xf32>
    %217 = arith.truncf %216 : vector<1x49xf32> to vector<1x49xbf16>
    %c3_145 = arith.constant 3 : index
    %c0_146 = arith.constant 0 : index
    %c0_147 = arith.constant 0 : index
    %218 = vector.load %arg6[%c3_145, %c0_146, %c0_147] : memref<32x49x128xbf16, #tpu.memory_space<vmem>>, vector<1x49x128xbf16>
    %219 = vector.shape_cast %218 : vector<1x49x128xbf16> to vector<49x128xbf16>
    %cst_148 = arith.constant dense<0.000000e+00> : vector<1x128xf32>
    %220 = tpu.matmul %217, %219, %cst_148 {dimension_numbers = #tpu.dot_dimension_numbers<[1], [0], [0], [1], [0, 0, 1, 1], [], []>} : vector<1x49xbf16>, vector<49x128xbf16>, vector<1x128xf32> -> vector<1x128xf32>
    %221 = arith.addf %215, %220 : vector<1x128xf32>
    %c4_149 = arith.constant 4 : index
    %c0_150 = arith.constant 0 : index
    %222 = vector.load %arg12[%c4_149, %c0_150] : memref<32x49xf32, #tpu.memory_space<vmem>>, vector<1x49xf32>
    %223 = arith.truncf %222 : vector<1x49xf32> to vector<1x49xbf16>
    %c4_151 = arith.constant 4 : index
    %c0_152 = arith.constant 0 : index
    %c0_153 = arith.constant 0 : index
    %224 = vector.load %arg6[%c4_151, %c0_152, %c0_153] : memref<32x49x128xbf16, #tpu.memory_space<vmem>>, vector<1x49x128xbf16>
    %225 = vector.shape_cast %224 : vector<1x49x128xbf16> to vector<49x128xbf16>
    %cst_154 = arith.constant dense<0.000000e+00> : vector<1x128xf32>
    %226 = tpu.matmul %223, %225, %cst_154 {dimension_numbers = #tpu.dot_dimension_numbers<[1], [0], [0], [1], [0, 0, 1, 1], [], []>} : vector<1x49xbf16>, vector<49x128xbf16>, vector<1x128xf32> -> vector<1x128xf32>
    %227 = arith.addf %221, %226 : vector<1x128xf32>
    %c5_155 = arith.constant 5 : index
    %c0_156 = arith.constant 0 : index
    %228 = vector.load %arg12[%c5_155, %c0_156] : memref<32x49xf32, #tpu.memory_space<vmem>>, vector<1x49xf32>
    %229 = arith.truncf %228 : vector<1x49xf32> to vector<1x49xbf16>
    %c5_157 = arith.constant 5 : index
    %c0_158 = arith.constant 0 : index
    %c0_159 = arith.constant 0 : index
    %230 = vector.load %arg6[%c5_157, %c0_158, %c0_159] : memref<32x49x128xbf16, #tpu.memory_space<vmem>>, vector<1x49x128xbf16>
    %231 = vector.shape_cast %230 : vector<1x49x128xbf16> to vector<49x128xbf16>
    %cst_160 = arith.constant dense<0.000000e+00> : vector<1x128xf32>
    %232 = tpu.matmul %229, %231, %cst_160 {dimension_numbers = #tpu.dot_dimension_numbers<[1], [0], [0], [1], [0, 0, 1, 1], [], []>} : vector<1x49xbf16>, vector<49x128xbf16>, vector<1x128xf32> -> vector<1x128xf32>
    %233 = arith.addf %227, %232 : vector<1x128xf32>
    %c6_161 = arith.constant 6 : index
    %c0_162 = arith.constant 0 : index
    %234 = vector.load %arg12[%c6_161, %c0_162] : memref<32x49xf32, #tpu.memory_space<vmem>>, vector<1x49xf32>
    %235 = arith.truncf %234 : vector<1x49xf32> to vector<1x49xbf16>
    %c6_163 = arith.constant 6 : index
    %c0_164 = arith.constant 0 : index
    %c0_165 = arith.constant 0 : index
    %236 = vector.load %arg6[%c6_163, %c0_164, %c0_165] : memref<32x49x128xbf16, #tpu.memory_space<vmem>>, vector<1x49x128xbf16>
    %237 = vector.shape_cast %236 : vector<1x49x128xbf16> to vector<49x128xbf16>
    %cst_166 = arith.constant dense<0.000000e+00> : vector<1x128xf32>
    %238 = tpu.matmul %235, %237, %cst_166 {dimension_numbers = #tpu.dot_dimension_numbers<[1], [0], [0], [1], [0, 0, 1, 1], [], []>} : vector<1x49xbf16>, vector<49x128xbf16>, vector<1x128xf32> -> vector<1x128xf32>
    %239 = arith.addf %233, %238 : vector<1x128xf32>
    %c7_167 = arith.constant 7 : index
    %c0_168 = arith.constant 0 : index
    %240 = vector.load %arg12[%c7_167, %c0_168] : memref<32x49xf32, #tpu.memory_space<vmem>>, vector<1x49xf32>
    %241 = arith.truncf %240 : vector<1x49xf32> to vector<1x49xbf16>
    %c7_169 = arith.constant 7 : index
    %c0_170 = arith.constant 0 : index
    %c0_171 = arith.constant 0 : index
    %242 = vector.load %arg6[%c7_169, %c0_170, %c0_171] : memref<32x49x128xbf16, #tpu.memory_space<vmem>>, vector<1x49x128xbf16>
    %243 = vector.shape_cast %242 : vector<1x49x128xbf16> to vector<49x128xbf16>
    %cst_172 = arith.constant dense<0.000000e+00> : vector<1x128xf32>
    %244 = tpu.matmul %241, %243, %cst_172 {dimension_numbers = #tpu.dot_dimension_numbers<[1], [0], [0], [1], [0, 0, 1, 1], [], []>} : vector<1x49xbf16>, vector<49x128xbf16>, vector<1x128xf32> -> vector<1x128xf32>
    %245 = arith.addf %239, %244 : vector<1x128xf32>
    %c8_173 = arith.constant 8 : index
    %c0_174 = arith.constant 0 : index
    %246 = vector.load %arg12[%c8_173, %c0_174] : memref<32x49xf32, #tpu.memory_space<vmem>>, vector<1x49xf32>
    %247 = arith.truncf %246 : vector<1x49xf32> to vector<1x49xbf16>
    %c8_175 = arith.constant 8 : index
    %c0_176 = arith.constant 0 : index
    %c0_177 = arith.constant 0 : index
    %248 = vector.load %arg6[%c8_175, %c0_176, %c0_177] : memref<32x49x128xbf16, #tpu.memory_space<vmem>>, vector<1x49x128xbf16>
    %249 = vector.shape_cast %248 : vector<1x49x128xbf16> to vector<49x128xbf16>
    %cst_178 = arith.constant dense<0.000000e+00> : vector<1x128xf32>
    %250 = tpu.matmul %247, %249, %cst_178 {dimension_numbers = #tpu.dot_dimension_numbers<[1], [0], [0], [1], [0, 0, 1, 1], [], []>} : vector<1x49xbf16>, vector<49x128xbf16>, vector<1x128xf32> -> vector<1x128xf32>
    %251 = arith.addf %245, %250 : vector<1x128xf32>
    %c9 = arith.constant 9 : index
    %c0_179 = arith.constant 0 : index
    %252 = vector.load %arg12[%c9, %c0_179] : memref<32x49xf32, #tpu.memory_space<vmem>>, vector<1x49xf32>
    %253 = arith.truncf %252 : vector<1x49xf32> to vector<1x49xbf16>
    %c9_180 = arith.constant 9 : index
    %c0_181 = arith.constant 0 : index
    %c0_182 = arith.constant 0 : index
    %254 = vector.load %arg6[%c9_180, %c0_181, %c0_182] : memref<32x49x128xbf16, #tpu.memory_space<vmem>>, vector<1x49x128xbf16>
    %255 = vector.shape_cast %254 : vector<1x49x128xbf16> to vector<49x128xbf16>
    %cst_183 = arith.constant dense<0.000000e+00> : vector<1x128xf32>
    %256 = tpu.matmul %253, %255, %cst_183 {dimension_numbers = #tpu.dot_dimension_numbers<[1], [0], [0], [1], [0, 0, 1, 1], [], []>} : vector<1x49xbf16>, vector<49x128xbf16>, vector<1x128xf32> -> vector<1x128xf32>
    %257 = arith.addf %251, %256 : vector<1x128xf32>
    %c10 = arith.constant 10 : index
    %c0_184 = arith.constant 0 : index
    %258 = vector.load %arg12[%c10, %c0_184] : memref<32x49xf32, #tpu.memory_space<vmem>>, vector<1x49xf32>
    %259 = arith.truncf %258 : vector<1x49xf32> to vector<1x49xbf16>
    %c10_185 = arith.constant 10 : index
    %c0_186 = arith.constant 0 : index
    %c0_187 = arith.constant 0 : index
    %260 = vector.load %arg6[%c10_185, %c0_186, %c0_187] : memref<32x49x128xbf16, #tpu.memory_space<vmem>>, vector<1x49x128xbf16>
    %261 = vector.shape_cast %260 : vector<1x49x128xbf16> to vector<49x128xbf16>
    %cst_188 = arith.constant dense<0.000000e+00> : vector<1x128xf32>
    %262 = tpu.matmul %259, %261, %cst_188 {dimension_numbers = #tpu.dot_dimension_numbers<[1], [0], [0], [1], [0, 0, 1, 1], [], []>} : vector<1x49xbf16>, vector<49x128xbf16>, vector<1x128xf32> -> vector<1x128xf32>
    %263 = arith.addf %257, %262 : vector<1x128xf32>
    %c11 = arith.constant 11 : index
    %c0_189 = arith.constant 0 : index
    %264 = vector.load %arg12[%c11, %c0_189] : memref<32x49xf32, #tpu.memory_space<vmem>>, vector<1x49xf32>
    %265 = arith.truncf %264 : vector<1x49xf32> to vector<1x49xbf16>
    %c11_190 = arith.constant 11 : index
    %c0_191 = arith.constant 0 : index
    %c0_192 = arith.constant 0 : index
    %266 = vector.load %arg6[%c11_190, %c0_191, %c0_192] : memref<32x49x128xbf16, #tpu.memory_space<vmem>>, vector<1x49x128xbf16>
    %267 = vector.shape_cast %266 : vector<1x49x128xbf16> to vector<49x128xbf16>
    %cst_193 = arith.constant dense<0.000000e+00> : vector<1x128xf32>
    %268 = tpu.matmul %265, %267, %cst_193 {dimension_numbers = #tpu.dot_dimension_numbers<[1], [0], [0], [1], [0, 0, 1, 1], [], []>} : vector<1x49xbf16>, vector<49x128xbf16>, vector<1x128xf32> -> vector<1x128xf32>
    %269 = arith.addf %263, %268 : vector<1x128xf32>
    %c12 = arith.constant 12 : index
    %c0_194 = arith.constant 0 : index
    %270 = vector.load %arg12[%c12, %c0_194] : memref<32x49xf32, #tpu.memory_space<vmem>>, vector<1x49xf32>
    %271 = arith.truncf %270 : vector<1x49xf32> to vector<1x49xbf16>
    %c12_195 = arith.constant 12 : index
    %c0_196 = arith.constant 0 : index
    %c0_197 = arith.constant 0 : index
    %272 = vector.load %arg6[%c12_195, %c0_196, %c0_197] : memref<32x49x128xbf16, #tpu.memory_space<vmem>>, vector<1x49x128xbf16>
    %273 = vector.shape_cast %272 : vector<1x49x128xbf16> to vector<49x128xbf16>
    %cst_198 = arith.constant dense<0.000000e+00> : vector<1x128xf32>
    %274 = tpu.matmul %271, %273, %cst_198 {dimension_numbers = #tpu.dot_dimension_numbers<[1], [0], [0], [1], [0, 0, 1, 1], [], []>} : vector<1x49xbf16>, vector<49x128xbf16>, vector<1x128xf32> -> vector<1x128xf32>
    %275 = arith.addf %269, %274 : vector<1x128xf32>
    %c13 = arith.constant 13 : index
    %c0_199 = arith.constant 0 : index
    %276 = vector.load %arg12[%c13, %c0_199] : memref<32x49xf32, #tpu.memory_space<vmem>>, vector<1x49xf32>
    %277 = arith.truncf %276 : vector<1x49xf32> to vector<1x49xbf16>
    %c13_200 = arith.constant 13 : index
    %c0_201 = arith.constant 0 : index
    %c0_202 = arith.constant 0 : index
    %278 = vector.load %arg6[%c13_200, %c0_201, %c0_202] : memref<32x49x128xbf16, #tpu.memory_space<vmem>>, vector<1x49x128xbf16>
    %279 = vector.shape_cast %278 : vector<1x49x128xbf16> to vector<49x128xbf16>
    %cst_203 = arith.constant dense<0.000000e+00> : vector<1x128xf32>
    %280 = tpu.matmul %277, %279, %cst_203 {dimension_numbers = #tpu.dot_dimension_numbers<[1], [0], [0], [1], [0, 0, 1, 1], [], []>} : vector<1x49xbf16>, vector<49x128xbf16>, vector<1x128xf32> -> vector<1x128xf32>
    %281 = arith.addf %275, %280 : vector<1x128xf32>
    %c14_204 = arith.constant 14 : index
    %c0_205 = arith.constant 0 : index
    %282 = vector.load %arg12[%c14_204, %c0_205] : memref<32x49xf32, #tpu.memory_space<vmem>>, vector<1x49xf32>
    %283 = arith.truncf %282 : vector<1x49xf32> to vector<1x49xbf16>
    %c14_206 = arith.constant 14 : index
    %c0_207 = arith.constant 0 : index
    %c0_208 = arith.constant 0 : index
    %284 = vector.load %arg6[%c14_206, %c0_207, %c0_208] : memref<32x49x128xbf16, #tpu.memory_space<vmem>>, vector<1x49x128xbf16>
    %285 = vector.shape_cast %284 : vector<1x49x128xbf16> to vector<49x128xbf16>
    %cst_209 = arith.constant dense<0.000000e+00> : vector<1x128xf32>
    %286 = tpu.matmul %283, %285, %cst_209 {dimension_numbers = #tpu.dot_dimension_numbers<[1], [0], [0], [1], [0, 0, 1, 1], [], []>} : vector<1x49xbf16>, vector<49x128xbf16>, vector<1x128xf32> -> vector<1x128xf32>
    %287 = arith.addf %281, %286 : vector<1x128xf32>
    %c15 = arith.constant 15 : index
    %c0_210 = arith.constant 0 : index
    %288 = vector.load %arg12[%c15, %c0_210] : memref<32x49xf32, #tpu.memory_space<vmem>>, vector<1x49xf32>
    %289 = arith.truncf %288 : vector<1x49xf32> to vector<1x49xbf16>
    %c15_211 = arith.constant 15 : index
    %c0_212 = arith.constant 0 : index
    %c0_213 = arith.constant 0 : index
    %290 = vector.load %arg6[%c15_211, %c0_212, %c0_213] : memref<32x49x128xbf16, #tpu.memory_space<vmem>>, vector<1x49x128xbf16>
    %291 = vector.shape_cast %290 : vector<1x49x128xbf16> to vector<49x128xbf16>
    %cst_214 = arith.constant dense<0.000000e+00> : vector<1x128xf32>
    %292 = tpu.matmul %289, %291, %cst_214 {dimension_numbers = #tpu.dot_dimension_numbers<[1], [0], [0], [1], [0, 0, 1, 1], [], []>} : vector<1x49xbf16>, vector<49x128xbf16>, vector<1x128xf32> -> vector<1x128xf32>
    %293 = arith.addf %287, %292 : vector<1x128xf32>
    %c16 = arith.constant 16 : index
    %c0_215 = arith.constant 0 : index
    %294 = vector.load %arg12[%c16, %c0_215] : memref<32x49xf32, #tpu.memory_space<vmem>>, vector<1x49xf32>
    %295 = arith.truncf %294 : vector<1x49xf32> to vector<1x49xbf16>
    %c16_216 = arith.constant 16 : index
    %c0_217 = arith.constant 0 : index
    %c0_218 = arith.constant 0 : index
    %296 = vector.load %arg6[%c16_216, %c0_217, %c0_218] : memref<32x49x128xbf16, #tpu.memory_space<vmem>>, vector<1x49x128xbf16>
    %297 = vector.shape_cast %296 : vector<1x49x128xbf16> to vector<49x128xbf16>
    %cst_219 = arith.constant dense<0.000000e+00> : vector<1x128xf32>
    %298 = tpu.matmul %295, %297, %cst_219 {dimension_numbers = #tpu.dot_dimension_numbers<[1], [0], [0], [1], [0, 0, 1, 1], [], []>} : vector<1x49xbf16>, vector<49x128xbf16>, vector<1x128xf32> -> vector<1x128xf32>
    %299 = arith.addf %293, %298 : vector<1x128xf32>
    %c17_220 = arith.constant 17 : index
    %c0_221 = arith.constant 0 : index
    %300 = vector.load %arg12[%c17_220, %c0_221] : memref<32x49xf32, #tpu.memory_space<vmem>>, vector<1x49xf32>
    %301 = arith.truncf %300 : vector<1x49xf32> to vector<1x49xbf16>
    %c17_222 = arith.constant 17 : index
    %c0_223 = arith.constant 0 : index
    %c0_224 = arith.constant 0 : index
    %302 = vector.load %arg6[%c17_222, %c0_223, %c0_224] : memref<32x49x128xbf16, #tpu.memory_space<vmem>>, vector<1x49x128xbf16>
    %303 = vector.shape_cast %302 : vector<1x49x128xbf16> to vector<49x128xbf16>
    %cst_225 = arith.constant dense<0.000000e+00> : vector<1x128xf32>
    %304 = tpu.matmul %301, %303, %cst_225 {dimension_numbers = #tpu.dot_dimension_numbers<[1], [0], [0], [1], [0, 0, 1, 1], [], []>} : vector<1x49xbf16>, vector<49x128xbf16>, vector<1x128xf32> -> vector<1x128xf32>
    %305 = arith.addf %299, %304 : vector<1x128xf32>
    %c18 = arith.constant 18 : index
    %c0_226 = arith.constant 0 : index
    %306 = vector.load %arg12[%c18, %c0_226] : memref<32x49xf32, #tpu.memory_space<vmem>>, vector<1x49xf32>
    %307 = arith.truncf %306 : vector<1x49xf32> to vector<1x49xbf16>
    %c18_227 = arith.constant 18 : index
    %c0_228 = arith.constant 0 : index
    %c0_229 = arith.constant 0 : index
    %308 = vector.load %arg6[%c18_227, %c0_228, %c0_229] : memref<32x49x128xbf16, #tpu.memory_space<vmem>>, vector<1x49x128xbf16>
    %309 = vector.shape_cast %308 : vector<1x49x128xbf16> to vector<49x128xbf16>
    %cst_230 = arith.constant dense<0.000000e+00> : vector<1x128xf32>
    %310 = tpu.matmul %307, %309, %cst_230 {dimension_numbers = #tpu.dot_dimension_numbers<[1], [0], [0], [1], [0, 0, 1, 1], [], []>} : vector<1x49xbf16>, vector<49x128xbf16>, vector<1x128xf32> -> vector<1x128xf32>
    %311 = arith.addf %305, %310 : vector<1x128xf32>
    %c19 = arith.constant 19 : index
    %c0_231 = arith.constant 0 : index
    %312 = vector.load %arg12[%c19, %c0_231] : memref<32x49xf32, #tpu.memory_space<vmem>>, vector<1x49xf32>
    %313 = arith.truncf %312 : vector<1x49xf32> to vector<1x49xbf16>
    %c19_232 = arith.constant 19 : index
    %c0_233 = arith.constant 0 : index
    %c0_234 = arith.constant 0 : index
    %314 = vector.load %arg6[%c19_232, %c0_233, %c0_234] : memref<32x49x128xbf16, #tpu.memory_space<vmem>>, vector<1x49x128xbf16>
    %315 = vector.shape_cast %314 : vector<1x49x128xbf16> to vector<49x128xbf16>
    %cst_235 = arith.constant dense<0.000000e+00> : vector<1x128xf32>
    %316 = tpu.matmul %313, %315, %cst_235 {dimension_numbers = #tpu.dot_dimension_numbers<[1], [0], [0], [1], [0, 0, 1, 1], [], []>} : vector<1x49xbf16>, vector<49x128xbf16>, vector<1x128xf32> -> vector<1x128xf32>
    %317 = arith.addf %311, %316 : vector<1x128xf32>
    %c20 = arith.constant 20 : index
    %c0_236 = arith.constant 0 : index
    %318 = vector.load %arg12[%c20, %c0_236] : memref<32x49xf32, #tpu.memory_space<vmem>>, vector<1x49xf32>
    %319 = arith.truncf %318 : vector<1x49xf32> to vector<1x49xbf16>
    %c20_237 = arith.constant 20 : index
    %c0_238 = arith.constant 0 : index
    %c0_239 = arith.constant 0 : index
    %320 = vector.load %arg6[%c20_237, %c0_238, %c0_239] : memref<32x49x128xbf16, #tpu.memory_space<vmem>>, vector<1x49x128xbf16>
    %321 = vector.shape_cast %320 : vector<1x49x128xbf16> to vector<49x128xbf16>
    %cst_240 = arith.constant dense<0.000000e+00> : vector<1x128xf32>
    %322 = tpu.matmul %319, %321, %cst_240 {dimension_numbers = #tpu.dot_dimension_numbers<[1], [0], [0], [1], [0, 0, 1, 1], [], []>} : vector<1x49xbf16>, vector<49x128xbf16>, vector<1x128xf32> -> vector<1x128xf32>
    %323 = arith.addf %317, %322 : vector<1x128xf32>
    %c21_241 = arith.constant 21 : index
    %c0_242 = arith.constant 0 : index
    %324 = vector.load %arg12[%c21_241, %c0_242] : memref<32x49xf32, #tpu.memory_space<vmem>>, vector<1x49xf32>
    %325 = arith.truncf %324 : vector<1x49xf32> to vector<1x49xbf16>
    %c21_243 = arith.constant 21 : index
    %c0_244 = arith.constant 0 : index
    %c0_245 = arith.constant 0 : index
    %326 = vector.load %arg6[%c21_243, %c0_244, %c0_245] : memref<32x49x128xbf16, #tpu.memory_space<vmem>>, vector<1x49x128xbf16>
    %327 = vector.shape_cast %326 : vector<1x49x128xbf16> to vector<49x128xbf16>
    %cst_246 = arith.constant dense<0.000000e+00> : vector<1x128xf32>
    %328 = tpu.matmul %325, %327, %cst_246 {dimension_numbers = #tpu.dot_dimension_numbers<[1], [0], [0], [1], [0, 0, 1, 1], [], []>} : vector<1x49xbf16>, vector<49x128xbf16>, vector<1x128xf32> -> vector<1x128xf32>
    %329 = arith.addf %323, %328 : vector<1x128xf32>
    %c22 = arith.constant 22 : index
    %c0_247 = arith.constant 0 : index
    %330 = vector.load %arg12[%c22, %c0_247] : memref<32x49xf32, #tpu.memory_space<vmem>>, vector<1x49xf32>
    %331 = arith.truncf %330 : vector<1x49xf32> to vector<1x49xbf16>
    %c22_248 = arith.constant 22 : index
    %c0_249 = arith.constant 0 : index
    %c0_250 = arith.constant 0 : index
    %332 = vector.load %arg6[%c22_248, %c0_249, %c0_250] : memref<32x49x128xbf16, #tpu.memory_space<vmem>>, vector<1x49x128xbf16>
    %333 = vector.shape_cast %332 : vector<1x49x128xbf16> to vector<49x128xbf16>
    %cst_251 = arith.constant dense<0.000000e+00> : vector<1x128xf32>
    %334 = tpu.matmul %331, %333, %cst_251 {dimension_numbers = #tpu.dot_dimension_numbers<[1], [0], [0], [1], [0, 0, 1, 1], [], []>} : vector<1x49xbf16>, vector<49x128xbf16>, vector<1x128xf32> -> vector<1x128xf32>
    %335 = arith.addf %329, %334 : vector<1x128xf32>
    %c23 = arith.constant 23 : index
    %c0_252 = arith.constant 0 : index
    %336 = vector.load %arg12[%c23, %c0_252] : memref<32x49xf32, #tpu.memory_space<vmem>>, vector<1x49xf32>
    %337 = arith.truncf %336 : vector<1x49xf32> to vector<1x49xbf16>
    %c23_253 = arith.constant 23 : index
    %c0_254 = arith.constant 0 : index
    %c0_255 = arith.constant 0 : index
    %338 = vector.load %arg6[%c23_253, %c0_254, %c0_255] : memref<32x49x128xbf16, #tpu.memory_space<vmem>>, vector<1x49x128xbf16>
    %339 = vector.shape_cast %338 : vector<1x49x128xbf16> to vector<49x128xbf16>
    %cst_256 = arith.constant dense<0.000000e+00> : vector<1x128xf32>
    %340 = tpu.matmul %337, %339, %cst_256 {dimension_numbers = #tpu.dot_dimension_numbers<[1], [0], [0], [1], [0, 0, 1, 1], [], []>} : vector<1x49xbf16>, vector<49x128xbf16>, vector<1x128xf32> -> vector<1x128xf32>
    %341 = arith.addf %335, %340 : vector<1x128xf32>
    %c24 = arith.constant 24 : index
    %c0_257 = arith.constant 0 : index
    %342 = vector.load %arg12[%c24, %c0_257] : memref<32x49xf32, #tpu.memory_space<vmem>>, vector<1x49xf32>
    %343 = arith.truncf %342 : vector<1x49xf32> to vector<1x49xbf16>
    %c24_258 = arith.constant 24 : index
    %c0_259 = arith.constant 0 : index
    %c0_260 = arith.constant 0 : index
    %344 = vector.load %arg6[%c24_258, %c0_259, %c0_260] : memref<32x49x128xbf16, #tpu.memory_space<vmem>>, vector<1x49x128xbf16>
    %345 = vector.shape_cast %344 : vector<1x49x128xbf16> to vector<49x128xbf16>
    %cst_261 = arith.constant dense<0.000000e+00> : vector<1x128xf32>
    %346 = tpu.matmul %343, %345, %cst_261 {dimension_numbers = #tpu.dot_dimension_numbers<[1], [0], [0], [1], [0, 0, 1, 1], [], []>} : vector<1x49xbf16>, vector<49x128xbf16>, vector<1x128xf32> -> vector<1x128xf32>
    %347 = arith.addf %341, %346 : vector<1x128xf32>
    %c25 = arith.constant 25 : index
    %c0_262 = arith.constant 0 : index
    %348 = vector.load %arg12[%c25, %c0_262] : memref<32x49xf32, #tpu.memory_space<vmem>>, vector<1x49xf32>
    %349 = arith.truncf %348 : vector<1x49xf32> to vector<1x49xbf16>
    %c25_263 = arith.constant 25 : index
    %c0_264 = arith.constant 0 : index
    %c0_265 = arith.constant 0 : index
    %350 = vector.load %arg6[%c25_263, %c0_264, %c0_265] : memref<32x49x128xbf16, #tpu.memory_space<vmem>>, vector<1x49x128xbf16>
    %351 = vector.shape_cast %350 : vector<1x49x128xbf16> to vector<49x128xbf16>
    %cst_266 = arith.constant dense<0.000000e+00> : vector<1x128xf32>
    %352 = tpu.matmul %349, %351, %cst_266 {dimension_numbers = #tpu.dot_dimension_numbers<[1], [0], [0], [1], [0, 0, 1, 1], [], []>} : vector<1x49xbf16>, vector<49x128xbf16>, vector<1x128xf32> -> vector<1x128xf32>
    %353 = arith.addf %347, %352 : vector<1x128xf32>
    %c26 = arith.constant 26 : index
    %c0_267 = arith.constant 0 : index
    %354 = vector.load %arg12[%c26, %c0_267] : memref<32x49xf32, #tpu.memory_space<vmem>>, vector<1x49xf32>
    %355 = arith.truncf %354 : vector<1x49xf32> to vector<1x49xbf16>
    %c26_268 = arith.constant 26 : index
    %c0_269 = arith.constant 0 : index
    %c0_270 = arith.constant 0 : index
    %356 = vector.load %arg6[%c26_268, %c0_269, %c0_270] : memref<32x49x128xbf16, #tpu.memory_space<vmem>>, vector<1x49x128xbf16>
    %357 = vector.shape_cast %356 : vector<1x49x128xbf16> to vector<49x128xbf16>
    %cst_271 = arith.constant dense<0.000000e+00> : vector<1x128xf32>
    %358 = tpu.matmul %355, %357, %cst_271 {dimension_numbers = #tpu.dot_dimension_numbers<[1], [0], [0], [1], [0, 0, 1, 1], [], []>} : vector<1x49xbf16>, vector<49x128xbf16>, vector<1x128xf32> -> vector<1x128xf32>
    %359 = arith.addf %353, %358 : vector<1x128xf32>
    %c27 = arith.constant 27 : index
    %c0_272 = arith.constant 0 : index
    %360 = vector.load %arg12[%c27, %c0_272] : memref<32x49xf32, #tpu.memory_space<vmem>>, vector<1x49xf32>
    %361 = arith.truncf %360 : vector<1x49xf32> to vector<1x49xbf16>
    %c27_273 = arith.constant 27 : index
    %c0_274 = arith.constant 0 : index
    %c0_275 = arith.constant 0 : index
    %362 = vector.load %arg6[%c27_273, %c0_274, %c0_275] : memref<32x49x128xbf16, #tpu.memory_space<vmem>>, vector<1x49x128xbf16>
    %363 = vector.shape_cast %362 : vector<1x49x128xbf16> to vector<49x128xbf16>
    %cst_276 = arith.constant dense<0.000000e+00> : vector<1x128xf32>
    %364 = tpu.matmul %361, %363, %cst_276 {dimension_numbers = #tpu.dot_dimension_numbers<[1], [0], [0], [1], [0, 0, 1, 1], [], []>} : vector<1x49xbf16>, vector<49x128xbf16>, vector<1x128xf32> -> vector<1x128xf32>
    %365 = arith.addf %359, %364 : vector<1x128xf32>
    %c28_277 = arith.constant 28 : index
    %c0_278 = arith.constant 0 : index
    %366 = vector.load %arg12[%c28_277, %c0_278] : memref<32x49xf32, #tpu.memory_space<vmem>>, vector<1x49xf32>
    %367 = arith.truncf %366 : vector<1x49xf32> to vector<1x49xbf16>
    %c28_279 = arith.constant 28 : index
    %c0_280 = arith.constant 0 : index
    %c0_281 = arith.constant 0 : index
    %368 = vector.load %arg6[%c28_279, %c0_280, %c0_281] : memref<32x49x128xbf16, #tpu.memory_space<vmem>>, vector<1x49x128xbf16>
    %369 = vector.shape_cast %368 : vector<1x49x128xbf16> to vector<49x128xbf16>
    %cst_282 = arith.constant dense<0.000000e+00> : vector<1x128xf32>
    %370 = tpu.matmul %367, %369, %cst_282 {dimension_numbers = #tpu.dot_dimension_numbers<[1], [0], [0], [1], [0, 0, 1, 1], [], []>} : vector<1x49xbf16>, vector<49x128xbf16>, vector<1x128xf32> -> vector<1x128xf32>
    %371 = arith.addf %365, %370 : vector<1x128xf32>
    %c29 = arith.constant 29 : index
    %c0_283 = arith.constant 0 : index
    %372 = vector.load %arg12[%c29, %c0_283] : memref<32x49xf32, #tpu.memory_space<vmem>>, vector<1x49xf32>
    %373 = arith.truncf %372 : vector<1x49xf32> to vector<1x49xbf16>
    %c29_284 = arith.constant 29 : index
    %c0_285 = arith.constant 0 : index
    %c0_286 = arith.constant 0 : index
    %374 = vector.load %arg6[%c29_284, %c0_285, %c0_286] : memref<32x49x128xbf16, #tpu.memory_space<vmem>>, vector<1x49x128xbf16>
    %375 = vector.shape_cast %374 : vector<1x49x128xbf16> to vector<49x128xbf16>
    %cst_287 = arith.constant dense<0.000000e+00> : vector<1x128xf32>
    %376 = tpu.matmul %373, %375, %cst_287 {dimension_numbers = #tpu.dot_dimension_numbers<[1], [0], [0], [1], [0, 0, 1, 1], [], []>} : vector<1x49xbf16>, vector<49x128xbf16>, vector<1x128xf32> -> vector<1x128xf32>
    %377 = arith.addf %371, %376 : vector<1x128xf32>
    %c30 = arith.constant 30 : index
    %c0_288 = arith.constant 0 : index
    %378 = vector.load %arg12[%c30, %c0_288] : memref<32x49xf32, #tpu.memory_space<vmem>>, vector<1x49xf32>
    %379 = arith.truncf %378 : vector<1x49xf32> to vector<1x49xbf16>
    %c30_289 = arith.constant 30 : index
    %c0_290 = arith.constant 0 : index
    %c0_291 = arith.constant 0 : index
    %380 = vector.load %arg6[%c30_289, %c0_290, %c0_291] : memref<32x49x128xbf16, #tpu.memory_space<vmem>>, vector<1x49x128xbf16>
    %381 = vector.shape_cast %380 : vector<1x49x128xbf16> to vector<49x128xbf16>
    %cst_292 = arith.constant dense<0.000000e+00> : vector<1x128xf32>
    %382 = tpu.matmul %379, %381, %cst_292 {dimension_numbers = #tpu.dot_dimension_numbers<[1], [0], [0], [1], [0, 0, 1, 1], [], []>} : vector<1x49xbf16>, vector<49x128xbf16>, vector<1x128xf32> -> vector<1x128xf32>
    %383 = arith.addf %377, %382 : vector<1x128xf32>
    %c31 = arith.constant 31 : index
    %c0_293 = arith.constant 0 : index
    %384 = vector.load %arg12[%c31, %c0_293] : memref<32x49xf32, #tpu.memory_space<vmem>>, vector<1x49xf32>
    %385 = arith.truncf %384 : vector<1x49xf32> to vector<1x49xbf16>
    %c31_294 = arith.constant 31 : index
    %c0_295 = arith.constant 0 : index
    %c0_296 = arith.constant 0 : index
    %386 = vector.load %arg6[%c31_294, %c0_295, %c0_296] : memref<32x49x128xbf16, #tpu.memory_space<vmem>>, vector<1x49x128xbf16>
    %387 = vector.shape_cast %386 : vector<1x49x128xbf16> to vector<49x128xbf16>
    %cst_297 = arith.constant dense<0.000000e+00> : vector<1x128xf32>
    %388 = tpu.matmul %385, %387, %cst_297 {dimension_numbers = #tpu.dot_dimension_numbers<[1], [0], [0], [1], [0, 0, 1, 1], [], []>} : vector<1x49xbf16>, vector<49x128xbf16>, vector<1x128xf32> -> vector<1x128xf32>
    %389 = arith.addf %383, %388 : vector<1x128xf32>
    %cst_298 = arith.constant 0.000000e+00 : f32
    %390 = vector.broadcast %cst_298 : f32 to vector<1x128xf32>
    %391 = arith.maximumf %389, %390 : vector<1x128xf32>
    %392 = arith.truncf %391 : vector<1x128xf32> to vector<1x128xbf16>
    %c0_299 = arith.constant 0 : index
    %c0_300 = arith.constant 0 : index
    %393 = vector.load %arg8[%c0_299, %c0_300] : memref<128x128xbf16, #tpu.memory_space<vmem>>, vector<128x128xbf16>
    %cst_301 = arith.constant dense<0.000000e+00> : vector<1x128xf32>
    %394 = tpu.matmul %392, %393, %cst_301 {dimension_numbers = #tpu.dot_dimension_numbers<[1], [0], [0], [1], [0, 0, 1, 1], [], []>} : vector<1x128xbf16>, vector<128x128xbf16>, vector<1x128xf32> -> vector<1x128xf32>
    %c0_302 = arith.constant 0 : index
    %c0_303 = arith.constant 0 : index
    %395 = vector.load %arg9[%c0_302, %c0_303] : memref<1x128xf32, #tpu.memory_space<vmem>>, vector<1x128xf32>
    %396 = arith.addf %394, %395 : vector<1x128xf32>
    %c0_304 = arith.constant 0 : index
    %c0_305 = arith.constant 0 : index
    %c0_306 = arith.constant 0 : index
    %397 = vector.load %arg10[%c0_304, %c0_305, %c0_306] : memref<1x1x128xf32, #tpu.memory_space<vmem>>, vector<1x1x128xf32>
    %398 = vector.shape_cast %397 : vector<1x1x128xf32> to vector<1x128xf32>
    %399 = vector.shape_cast %396 : vector<1x128xf32> to vector<1x1x128xf32>
    tpu.vector_store %arg10[%c0_304, %c0_305, %c0_306], %399 {strides = array<i32>} : memref<1x1x128xf32, #tpu.memory_space<vmem>>, vector<1x1x128xf32>,
    return
  }
  func.func @transform_0(%arg0: i32) -> (i32, i32, i32) {
    %c0_i32 = arith.constant 0 : i32
    %c0_i32_0 = arith.constant 0 : i32
    %c0_i32_1 = arith.constant 0 : i32
    return %arg0, %c0_i32, %c0_i32_0 : i32, i32, i32
  }
  func.func @transform_1(%arg0: i32) -> (i32, i32, i32) {
    %c0_i32 = arith.constant 0 : i32
    %c0_i32_0 = arith.constant 0 : i32
    %c0_i32_1 = arith.constant 0 : i32
    %c0_i32_2 = arith.constant 0 : i32
    return %c0_i32, %c0_i32_0, %c0_i32_1 : i32, i32, i32
  }
  func.func @transform_2(%arg0: i32) -> (i32, i32) {
    %c0_i32 = arith.constant 0 : i32
    %c0_i32_0 = arith.constant 0 : i32
    %c0_i32_1 = arith.constant 0 : i32
    return %c0_i32, %c0_i32_0 : i32, i32
  }
  func.func @transform_3(%arg0: i32) -> (i32, i32, i32) {
    %c0_i32 = arith.constant 0 : i32
    %c0_i32_0 = arith.constant 0 : i32
    %c0_i32_1 = arith.constant 0 : i32
    %c0_i32_2 = arith.constant 0 : i32
    return %c0_i32, %c0_i32_0, %c0_i32_1 : i32, i32, i32
  }
  func.func @transform_4(%arg0: i32) -> (i32, i32) {
    %c0_i32 = arith.constant 0 : i32
    %c0_i32_0 = arith.constant 0 : i32
    %c0_i32_1 = arith.constant 0 : i32
    return %c0_i32, %c0_i32_0 : i32, i32
  }
  func.func @transform_5(%arg0: i32) -> (i32, i32, i32) {
    %c0_i32 = arith.constant 0 : i32
    %c0_i32_0 = arith.constant 0 : i32
    %c0_i32_1 = arith.constant 0 : i32
    %c0_i32_2 = arith.constant 0 : i32
    return %c0_i32, %c0_i32_0, %c0_i32_1 : i32, i32, i32
  }
  func.func @transform_6(%arg0: i32) -> (i32, i32) {
    %c0_i32 = arith.constant 0 : i32
    %c0_i32_0 = arith.constant 0 : i32
    %c0_i32_1 = arith.constant 0 : i32
    return %c0_i32, %c0_i32_0 : i32, i32
  }
  func.func @transform_7(%arg0: i32) -> (i32, i32) {
    %c0_i32 = arith.constant 0 : i32
    %c0_i32_0 = arith.constant 0 : i32
    %c0_i32_1 = arith.constant 0 : i32
    return %c0_i32, %c0_i32_0 : i32, i32
  }
  func.func @transform_8(%arg0: i32) -> (i32, i32) {
    %c0_i32 = arith.constant 0 : i32
    %c0_i32_0 = arith.constant 0 : i32
    %c0_i32_1 = arith.constant 0 : i32
    return %c0_i32, %c0_i32_0 : i32, i32
  }
  func.func @transform_9(%arg0: i32) -> (i32, i32, i32) {
    %c0_i32 = arith.constant 0 : i32
    %c0_i32_0 = arith.constant 0 : i32
    %c0_i32_1 = arith.constant 0 : i32
    return %arg0, %c0_i32, %c0_i32_0 : i32, i32, i32
  }
}

</mosaic_0001>

<bundles_post_ra>
// kernel: simple_cnn_forward.1
= control target key start
LH: loop header
LB: loop body
LE: loop exit
PB: predicated region body
PF: predicated region fallthrough
CT: control target
= control target key end

     0   :  { %14 = vsyncpa [#allocation5], 0  ;;  %s9048_s0 = inlined_call_operand.vmem [shape: bf16[2,8,992], index: 0, kind: input, shape index: {}]   ;;  %s9049_s1 = inlined_call_operand.vmem [shape: bf16[9,16,8], index: 1, kind: input, shape index: {}]   ;;  %s9050_s2 = inlined_call_operand.vmem [shape: f32[16,1], index: 2, kind: input, shape index: {}]   ;;  %s9051_s3 = inlined_call_operand.vmem [shape: bf16[9,32,16], index: 3, kind: input, shape index: {}]   ;;  %s9052_s4 = inlined_call_operand.vmem [shape: f32[32,1], index: 4, kind: input, shape index: {}]   ;;  %s9053_s5 = inlined_call_operand.vmem [shape: bf16[32,49,128], index: 5, kind: input, shape index: {}]   ;;  %s9054_s6 = inlined_call_operand.vmem [shape: f32[1,128], index: 6, kind: input, shape index: {}]   ;;  %s9055_s7 = inlined_call_operand.vmem [shape: bf16[128,128], index: 7, kind: input, shape index: {}]   ;;  %s9056_s8 = inlined_call_operand.vmem [shape: f32[1,128], index: 8, kind: input, shape index: {}]   ;;  %s9057_s9 = inlined_call_operand.hbm [shape: f32[2,1,128], index: 9, kind: output, shape index: {}]  }
   0x1   :  { %16 = vsyncpa [#allocation5 + $0x1], 0  ;;  %s7063_s30 = smov 0   ;;  %s7065_s10 = smov 0  }
   0x2   :  { %s7067_s11 = smov 0   ;;  %s7069_s12 = smov 0  }
   0x3 LB: > { %s7084_s13 = sadd.s32 4294967295, %s6982_s12   ;;  %s5655_s14 = sadd.s32 4294967294, %s6982_s12   ;;  %s6982_s12 = sphi %s7069_s12, %s9090_s12   ;;  %s6978_s11 = sphi %s7067_s11, %s9089_s11   ;;  %s6974_s10 = sphi %s7065_s10, %s9088_s10   ;;  %s6970_s30 = sphi %s7063_s30, %s9087_s30  }
   0x4   : > { %s7088_s15 = sadd.s32 1, %s6982_s12   ;;  %s223_s16 = sadd.s32 1, %s6978_s11 }
   0x5   : > { %s220_s17 = ssub.s32 %s6982_s12, %s7088_s15  ;;  %p233_p0 = scmp.ne.s32.totalorder %s6978_s11, %s6974_s10 }
   0x6   : > { %p221_p1 = scmp.eq.s32.totalorder %s220_s17, 0  ;;  %p234_p2 = scmp.eq.s32.totalorder %s7084_s13, 1 }
   0x7   : > { %p239_p3 = scmp.ne.s32.totalorder %s6974_s10, %s6970_s30  ;;  %p240_p4 = scmp.eq.s32.totalorder %s5655_s14, 1 }
   0x8   : > { %s7099_s18 = scalar_select %p221_p1, %s6978_s11, %s223_s16  }
   0x9   : > { %p7101_p5 = por %p234_p2, %p233_p0  ;;  %p7105_p6 = por %p240_p4, %p239_p3 }
   0xa   : > { %p5658_p7 = scmp.ge.s32.totalorder %s6982_s12, 1  ;;  %p290_p8 = scmp.lt.s32.totalorder %s6982_s12, 3 }
   0xc   : > { %p291_p9 = pnand %p5658_p7, %p290_p8 }
   0xe   : > { %294 = sbr.rel (%p291_p9) target bundleno = 2608 (0xa30), region = 56 }
  0x13   : > { %p325_p10 = scmp.lt.s32.totalorder %s7084_s13, 1  ;;  %s6984_s26 = smov 127   ;;  %vm381_vm0 = vcmask 1039360   ;;  %vm393_vm1 = vcmask 1043456   ;;  %v6715_v34 = vld [vmem:[%s9049_s1 + $0x8] sm:$0xff]  ;;  %vm389_vm2 = vcmask 64512  }
  0x14   : > { %s6985_s27 = smov 126   ;;  %s9059_s28 = smov 96   ;;  %vm664_vm3 = vcmask 1031168   ;;  %v6714_v51 = vld [vmem:[%s9049_s1] sm:$0xff]  ;;  %vm832_vm4 = vcmask 785408   ;;  %vm1000_vm5 = vcmask 777216  }
  0x15   : > { %s326_s21 = scalar_select %p325_p10, %s7084_s13, 1  ;;  %vm1168_vm6 = vcmask 769024   ;;  %vm1336_vm7 = vcmask 523264   ;;  %vm1504_vm8 = vcmask 515072   ;;  %vm1672_vm9 = vcmask 506880  }
  0x16   : > { %s6987_s29 = smov 95   ;;  %s6988_s14 = smov 94   ;;  %vm2056_vm10 = vcmask 1042432   ;;  %vm2049_vm15 = vcmask 220160  }
  0x17   : > { %s6713_s22 = sshll.u32 %s326_s21, 5  ;;  %s9061_s16 = smov 64  }
  0x18   : > { %s329_s25 = scalar_lea.vmem %s9048_s0, %s6713_s22  ;;  %s6990_s17 = smov 63  }
  0x19   : > { %v332_v0 = vld [vmem:[%s329_s25 + $0x8] sm:$0xff]  ;;  %v331_v1 = vld [vmem:[%s329_s25] sm:$0xff]  ;;  %v333_v4 = vld [vmem:[%s329_s25 + $0x10] sm:$0xff]  ;;  %s6996_s21 = smov 49   ;;  %s6997_s22 = smov 113  }
  0x1a   : > { %v351_v2 = vunpack.c.l.b16 %v332_v0  ;;  %v349_v3 = vunpack.c.l.b16 %v331_v1  ;;  %v353_v5 = vunpack.c.l.b16 %v333_v4  ;;  %v352_v9 = vunpack.c.h.b16 %v332_v0  ;;  %v334_v11 = vld [vmem:[%s329_s25 + $0x18] sm:$0xff]  ;;  %s6991_s25 = smov 62   ;;  %s6998_s23 = smov 81  }
  0x1b   : > { %v350_v10 = vunpack.c.h.b16 %v331_v1  ;;  %v355_v12 = vunpack.c.l.b16 %v334_v11  ;;  %v354_v16 = vunpack.c.h.b16 %v333_v4  ;;  %v356_v17 = vunpack.c.h.b16 %v334_v11  ;;  %s6999_s24 = smov 33  }
  0x1c   : > { %v7116_v6 = vpack.c.b16 %v351_v2, %v351_v2  ;;  %v7118_v7 = vpack.c.b16 %v349_v3, %v349_v3  ;;  %v7120_v8 = vpack.c.b16 %v353_v5, %v353_v5  ;;  %v7128_v13 = vpack.c.b16 %v352_v9, %v352_v9 }
  0x1d   : > { %v7130_v14 = vpack.c.b16 %v350_v10, %v350_v10  ;;  %v7132_v15 = vpack.c.b16 %v355_v12, %v355_v12  ;;  %v7140_v18 = vpack.c.b16 %v354_v16, %v354_v16  ;;  %v7142_v19 = vpack.c.b16 %v356_v17, %v356_v17 }
  0x1e   : > { %369 = vrot.lane.b32.xlu0 %v7116_v6, %s6984_s26  ;;  %365 = vrot.lane.b32.xlu1 %v7118_v7, %s6984_s26  ;;  %v522_v25 = vsel %vm393_vm1, %v7118_v7, 0  ;;  %v534_v35 = vsel %vm393_vm1, %v7120_v8, 0  ;;  %v528_v43 = vsel %vm393_vm1, %v7116_v6, 0  ;;  %v531_v47 = vsel %vm393_vm1, %v7128_v13, 0 }
  0x1f   : > { %373 = vrot.lane.b32.xlu2 %v7120_v8, %s6984_s26  ;;  %v525_v39 = vsel %vm393_vm1, %v7130_v14, 0  ;;  %v537_v54 = vsel %vm393_vm1, %v7140_v18, 0  ;;  %v540_v55 = vsel %vm393_vm1, %v7132_v15, 0 }
  0x26   : > { %371 = vrot.lane.b32.xlu0 %v7128_v13, %s6984_s26  ;;  %367 = vrot.lane.b32.xlu1 %v7130_v14, %s6984_s26 }
  0x27   : > { %377 = vrot.lane.b32.xlu2 %v7132_v15, %s6984_s26 }
  0x2e   : > { %375 = vrot.lane.b32.xlu1 %v7140_v18, %s6984_s26  ;;  %379 = vrot.lane.b32.xlu0 %v7142_v19, %s6984_s26 }
  0x2f   : > { %648 = vrot.lane.b32.xlu2 %v7118_v7, %s6985_s27 }
  0x36   : > { %652 = vrot.lane.b32.xlu1 %v7116_v6, %s6985_s27  ;;  %650 = vrot.lane.b32.xlu0 %v7130_v14, %s6985_s27 }
  0x37   : > { %656 = vrot.lane.b32.xlu2 %v7120_v8, %s6985_s27 }
  0x3e   : > { %654 = vrot.lane.b32.xlu1 %v7128_v13, %s6985_s27  ;;  %658 = vrot.lane.b32.xlu0 %v7140_v18, %s6985_s27 }
  0x3f   : > { %660 = vrot.lane.b32.xlu2 %v7132_v15, %s6985_s27 }
  0x46   : > { %818 = vrot.lane.b32.xlu0 %v7130_v14, %s9059_s28  ;;  %820 = vrot.lane.b32.xlu1 %v7116_v6, %s9059_s28 }
  0x47   : > { %662 = vrot.lane.b32.xlu2 %v7142_v19, %s6985_s27 }
  0x4e   : > { %816 = vrot.lane.b32.xlu0 %v7118_v7, %s9059_s28  ;;  %822 = vrot.lane.b32.xlu1 %v7128_v13, %s9059_s28 }
  0x4f   : > { %826 = vrot.lane.b32.xlu2 %v7140_v18, %s9059_s28 }
  0x56   : > { %824 = vrot.lane.b32.xlu1 %v7120_v8, %s9059_s28  ;;  %828 = vrot.lane.b32.xlu0 %v7132_v15, %s9059_s28 }
  0x57   : > { %830 = vrot.lane.b32.xlu2 %v7142_v19, %s9059_s28 }
  0x5e   : > { %988 = vrot.lane.b32.xlu0 %v7116_v6, %s6987_s29  ;;  %990 = vrot.lane.b32.xlu1 %v7128_v13, %s6987_s29 }
  0x5f   : > { %984 = vrot.lane.b32.xlu2 %v7118_v7, %s6987_s29 }
  0x66   : > { %986 = vrot.lane.b32.xlu0 %v7130_v14, %s6987_s29  ;;  %992 = vrot.lane.b32.xlu1 %v7120_v8, %s6987_s29 }
  0x67   : > { %996 = vrot.lane.b32.xlu2 %v7132_v15, %s6987_s29 }
  0x6e   : > { %998 = vrot.lane.b32.xlu0 %v7142_v19, %s6987_s29  ;;  %994 = vrot.lane.b32.xlu1 %v7140_v18, %s6987_s29 }
  0x6f   : > { %1152 = vrot.lane.b32.xlu2 %v7118_v7, %s6988_s14 }
  0x76   : > { %1154 = vrot.lane.b32.xlu0 %v7130_v14, %s6988_s14  ;;  %1158 = vrot.lane.b32.xlu1 %v7128_v13, %s6988_s14 }
  0x77   : > { %1160 = vrot.lane.b32.xlu2 %v7120_v8, %s6988_s14 }
  0x79   : > { %v374_v22 = vpop.permute.xlu2 %373 }
  0x7e   : > { %1156 = vrot.lane.b32.xlu0 %v7116_v6, %s6988_s14  ;;  %1162 = vrot.lane.b32.xlu1 %v7140_v18, %s6988_s14 }
  0x7f   : > { %1320 = vrot.lane.b32.xlu2 %v7118_v7, %s9061_s16 }
  0x81   : > { %v378_v36 = vpop.permute.xlu2 %377 }
  0x86   : > { %1322 = vrot.lane.b32.xlu0 %v7130_v14, %s9061_s16  ;;  %1164 = vrot.lane.b32.xlu1 %v7132_v15, %s6988_s14 }
  0x87   : > { %1166 = vrot.lane.b32.xlu2 %v7142_v19, %s6988_s14 }
  0x89   : > { %v649_v48 = vpop.permute.xlu2 %648 }
  0x8e   : > { %1324 = vrot.lane.b32.xlu0 %v7116_v6, %s9061_s16  ;;  %1328 = vrot.lane.b32.xlu1 %v7120_v8, %s9061_s16 }
  0x8f   : > { %1330 = vrot.lane.b32.xlu2 %v7140_v18, %s9061_s16 }
  0x90   : > { %v370_v20 = vpop.permute.xlu0 %369  ;;  %v366_v21 = vpop.permute.xlu1 %365 }
  0x91   : > { %v657_v58 = vpop.permute.xlu2 %656 }
  0x96   : > { %1326 = vrot.lane.b32.xlu0 %v7128_v13, %s9061_s16  ;;  %1332 = vrot.lane.b32.xlu1 %v7132_v15, %s9061_s16 }
  0x97   : > { %1490 = vrot.lane.b32.xlu2 %v7130_v14, %s6990_s17 }
  0x98   : > { %v372_v23 = vpop.permute.xlu0 %371  ;;  %v368_v24 = vpop.permute.xlu1 %367 }
  0x99   : > { %v382_v26 = vsel %vm381_vm0, %v366_v21, %v368_v24  ;;  %v383_v27 = vsel %vm381_vm0, %v368_v24, %v370_v20  ;;  %v384_v28 = vsel %vm381_vm0, %v370_v20, %v372_v23  ;;  %v385_v29 = vsel %vm381_vm0, %v372_v23, %v374_v22  ;;  %v661_v63 = vpop.permute.xlu2 %660 }
  0x9a   : > { %v395_v30 = vsel %vm393_vm1, %v382_v26, 0  ;;  %v398_v31 = vsel %vm393_vm1, %v383_v27, 0  ;;  %v401_v32 = vsel %vm393_vm1, %v384_v28, 0  ;;  %v404_v33 = vsel %vm393_vm1, %v385_v29, 0 }
  0x9b   : > { %422 = vmatpush.bf16.msra.mxu0 %v395_v30  ;;  %436 = vmatpush.bf16.msra.mxu1 %v398_v31 }
  0x9c   : > { %450 = vmatpush.bf16.msra.mxu2 %v401_v32  ;;  %464 = vmatpush.bf16.msra.mxu3 %v404_v33 }
  0x9e   : > { %5667 = vmatmul.msk.bf16.vlgmr.msra.gmra.mxu0 %vm389_vm2, %v6715_v34  ;;  %5668 = vmatmul.msk.bf16.vlgmr.msra.gmra.mxu1 %vm389_vm2, %v6715_v34 }
  0x9f   : > { %5669 = vmatmul.msk.bf16.vlgmr.msra.gmra.mxu2 %vm389_vm2, %v6715_v34  ;;  %5670 = vmatmul.msk.bf16.vlgmr.msra.gmra.mxu3 %vm389_vm2, %v6715_v34 }
  0xa0   : > { %549 = vmatpush.bf16.msrb.mxu3 %v522_v25  ;;  %v376_v37 = vpop.permute.xlu1 %375  ;;  %v380_v38 = vpop.permute.xlu0 %379  ;;  %1492 = vrot.lane.b32.xlu0 %v7116_v6, %s6990_s17 }
  0xa1   : > { %v386_v40 = vsel %vm381_vm0, %v374_v22, %v376_v37  ;;  %v387_v41 = vsel %vm381_vm0, %v376_v37, %v378_v36  ;;  %v388_v42 = vsel %vm381_vm0, %v378_v36, %v380_v38  ;;  %1334 = vrot.lane.b32.xlu1 %v7142_v19, %s9061_s16  ;;  %1488 = vrot.lane.b32.xlu2 %v7118_v7, %s6990_s17  ;;  %v663_v9 = vpop.permute.xlu2 %662  ;;  %v6717_v37 = vld [vmem:[%s9049_s1 + $0x18] sm:$0xff] }
  0xa2   : > { %v407_v44 = vsel %vm393_vm1, %v386_v40, 0  ;;  %v410_v45 = vsel %vm393_vm1, %v387_v41, 0  ;;  %v413_v46 = vsel %vm393_vm1, %v388_v42, 0  ;;  %v671_v12 = vsel %vm664_vm3, %v661_v63, %v663_v9 }
  0xa3   : > { %478 = vmatpush.bf16.msrb.mxu0 %v407_v44  ;;  %492 = vmatpush.bf16.msrb.mxu1 %v410_v45 }
  0xa4   : > { %605 = vmatpush.bf16.msra.mxu3 %v534_v35  ;;  %506 = vmatpush.bf16.msrb.mxu2 %v413_v46 }
  0xa7   : > { %563 = vmatpush.bf16.msra.mxu0 %v525_v39  ;;  %577 = vmatpush.bf16.msra.mxu1 %v528_v43 }
  0xa8   : > { %591 = vmatpush.bf16.msra.mxu2 %v531_v47  ;;  %v651_v49 = vpop.permute.xlu0 %650  ;;  %1494 = vrot.lane.b32.xlu0 %v7128_v13, %s6990_s17  ;;  %v653_v50 = vpop.permute.xlu1 %652 }
  0xa9   : > { %1498 = vrot.lane.b32.xlu1 %v7140_v18, %s6990_s17  ;;  %1500 = vrot.lane.b32.xlu2 %v7132_v15, %s6990_s17  ;;  %v665_v52 = vsel %vm664_vm3, %v649_v48, %v651_v49  ;;  %v666_v53 = vsel %vm664_vm3, %v651_v49, %v653_v50  ;;  %v827_v20 = vpop.permute.xlu2 %826 }
  0xaa   : > { %v676_v56 = vsel %vm393_vm1, %v665_v52, 0  ;;  %v679_v57 = vsel %vm393_vm1, %v666_v53, 0 }
  0xae   : > { %5671 = vmatmul.msk.bf16.vlgmr.msrb.gmra.mxu0 %vm389_vm2, %v6715_v34  ;;  %5672 = vmatmul.msk.bf16.vlgmr.msrb.gmra.mxu1 %vm389_vm2, %v6715_v34 }
  0xaf   : > { %5673 = vmatmul.msk.bf16.vlgmr.msrb.gmra.mxu2 %vm389_vm2, %v6715_v34  ;;  %5678 = vmatmul.msk.bf16.vlgmr.msrb.gmra.mxu3 %vm389_vm2, %v6714_v51 }
  0xb0   : > { %619 = vmatpush.bf16.msrb.mxu0 %v537_v54  ;;  %633 = vmatpush.bf16.msrb.mxu1 %v540_v55  ;;  %v659_v59 = vpop.permute.xlu0 %658  ;;  %v655_v60 = vpop.permute.xlu1 %654 }
  0xb1   : > { %703 = vmatpush.bf16.msrb.mxu2 %v676_v56  ;;  %717 = vmatpush.bf16.msrb.mxu3 %v679_v57  ;;  %v667_v61 = vsel %vm664_vm3, %v653_v50, %v655_v60  ;;  %v668_v62 = vsel %vm664_vm3, %v655_v60, %v657_v58  ;;  %v669_v0 = vsel %vm664_vm3, %v657_v58, %v659_v59  ;;  %v831_v23 = vpop.permute.xlu2 %830 }
  0xb2   : > { %1496 = vrot.lane.b32.xlu0 %v7120_v8, %s6990_s17  ;;  %1502 = vrot.lane.b32.xlu1 %v7142_v19, %s6990_s17  ;;  %v670_v1 = vsel %vm664_vm3, %v659_v59, %v661_v63  ;;  %v682_v2 = vsel %vm393_vm1, %v667_v61, 0  ;;  %v685_v3 = vsel %vm393_vm1, %v668_v62, 0  ;;  %v688_v5 = vsel %vm393_vm1, %v669_v0, 0  ;;  %v6718_v62 = vld [vmem:[%s9049_s1 + $0x20] sm:$0xff]  ;;  %s6995_s17 = smov 17  }
  0xb3   : > { %1660 = vrot.lane.b32.xlu2 %v7116_v6, %s6991_s25 }
  0xb8   : > { %v819_v4 = vpop.permute.xlu0 %818  ;;  %v821_v6 = vpop.permute.xlu1 %820 }
  0xb9   : > { %v985_v34 = vpop.permute.xlu2 %984 }
  0xba   : > { %1662 = vrot.lane.b32.xlu0 %v7128_v13, %s6991_s25  ;;  %1656 = vrot.lane.b32.xlu1 %v7118_v7, %s6991_s25  ;;  %v691_v7 = vsel %vm393_vm1, %v670_v1, 0 }
  0xbb   : > { %1658 = vrot.lane.b32.xlu2 %v7130_v14, %s6991_s25  ;;  %v834_v14 = vsel %vm832_vm4, %v819_v4, %v821_v6 }
  0xbe   : > { %5679 = vmatmul.msk.bf16.vlgmr.msra.gmra.mxu0 %vm389_vm2, %v6714_v51  ;;  %5680 = vmatmul.msk.bf16.vlgmr.msra.gmra.mxu1 %vm389_vm2, %v6714_v51 }
  0xbf   : > { %5681 = vmatmul.msk.bf16.vlgmr.msra.gmra.mxu2 %vm389_vm2, %v6714_v51  ;;  %5682 = vmatmul.msk.bf16.vlgmr.msra.gmra.mxu3 %vm389_vm2, %v6714_v51 }
  0xc0   : > { %731 = vmatpush.bf16.msra.mxu0 %v682_v2  ;;  %745 = vmatpush.bf16.msra.mxu1 %v685_v3  ;;  %v817_v10 = vpop.permute.xlu0 %816  ;;  %v823_v11 = vpop.permute.xlu1 %822 }
  0xc1   : > { %759 = vmatpush.bf16.msra.mxu2 %v688_v5  ;;  %773 = vmatpush.bf16.msra.mxu3 %v691_v7  ;;  %v833_v13 = vsel %vm832_vm4, %v817_v10, %v819_v4  ;;  %v835_v16 = vsel %vm832_vm4, %v821_v6, %v823_v11  ;;  %v997_v46 = vpop.permute.xlu2 %996 }
  0xc2   : > { %1664 = vrot.lane.b32.xlu0 %v7120_v8, %s6991_s25  ;;  %1666 = vrot.lane.b32.xlu1 %v7140_v18, %s6991_s25  ;;  %v6716_v8 = vld [vmem:[%s9049_s1 + $0x10] sm:$0xff]  ;;  %v844_v17 = vsel %vm393_vm1, %v833_v13, 0  ;;  %v847_v18 = vsel %vm393_vm1, %v834_v14, 0 }
  0xc3   : > { %1668 = vrot.lane.b32.xlu2 %v7132_v15, %s6991_s25  ;;  %v694_v15 = vsel %vm393_vm1, %v671_v12, 0 }
  0xc8   : > { %v829_v21 = vpop.permute.xlu0 %828  ;;  %v825_v22 = vpop.permute.xlu1 %824 }
  0xc9   : > { %v836_v24 = vsel %vm832_vm4, %v823_v11, %v825_v22  ;;  %v837_v25 = vsel %vm832_vm4, %v825_v22, %v827_v20  ;;  %v838_v26 = vsel %vm832_vm4, %v827_v20, %v829_v21  ;;  %v839_v27 = vsel %vm832_vm4, %v829_v21, %v831_v23  ;;  %v1153_v49 = vpop.permute.xlu2 %1152 }
  0xca   : > { %1670 = vrot.lane.b32.xlu0 %v7142_v19, %s6991_s25  ;;  %v850_v19 = vsel %vm393_vm1, %v835_v16, 0  ;;  %v853_v28 = vsel %vm393_vm1, %v836_v24, 0  ;;  %v856_v29 = vsel %vm393_vm1, %v837_v25, 0  ;;  %v859_v31 = vsel %vm393_vm1, %v838_v26, 0  ;;  %s7000_s25 = smov 65  }
  0xcb   : > { %v862_v32 = vsel %vm393_vm1, %v839_v27, 0 }
  0xce   : > { %5683 = vmatmul.msk.bf16.vlgmr.msrb.gmra.mxu0 %vm389_vm2, %v6714_v51  ;;  %5684 = vmatmul.msk.bf16.vlgmr.msrb.gmra.mxu1 %vm389_vm2, %v6714_v51 }
  0xcf   : > { %5691 = vmatmul.msk.bf16.vlgmr.msrb.gmra.mxu2 %vm389_vm2, %v6716_v8  ;;  %5692 = vmatmul.msk.bf16.vlgmr.msrb.gmra.mxu3 %vm389_vm2, %v6716_v8 }
  0xd0   : > { %787 = vmatpush.bf16.msrb.mxu0 %v694_v15  ;;  %871 = vmatpush.bf16.msrb.mxu1 %v844_v17  ;;  %v989_v30 = vpop.permute.xlu0 %988  ;;  %v991_v33 = vpop.permute.xlu1 %990  ;;  %v7394_v17 = vld [vmem:[%s9049_s1 + $0x28] sm:$0xff] }
  0xd1   : > { %885 = vmatpush.bf16.msrb.mxu2 %v847_v18  ;;  %899 = vmatpush.bf16.msrb.mxu3 %v850_v19  ;;  %v1003_v38 = vsel %vm1000_vm5, %v989_v30, %v991_v33  ;;  %v1161_v61 = vpop.permute.xlu2 %1160 }
  0xd2   : > { %v1018_v43 = vsel %vm393_vm1, %v1003_v38, 0 }
  0xd8   : > { %v987_v35 = vpop.permute.xlu0 %986  ;;  %v993_v36 = vpop.permute.xlu1 %992 }
  0xd9   : > { %v1002_v39 = vsel %vm1000_vm5, %v987_v35, %v989_v30  ;;  %v1004_v40 = vsel %vm1000_vm5, %v991_v33, %v993_v36  ;;  %v1001_v41 = vsel %vm1000_vm5, %v985_v34, %v987_v35  ;;  %v1321_v10 = vpop.permute.xlu2 %1320 }
  0xda   : > { %v1015_v42 = vsel %vm393_vm1, %v1002_v39, 0  ;;  %v1021_v44 = vsel %vm393_vm1, %v1004_v40, 0  ;;  %v1012_v45 = vsel %vm393_vm1, %v1001_v41, 0 }
  0xde   : > { %5693 = vmatmul.msk.bf16.vlgmr.msra.gmra.mxu0 %vm389_vm2, %v6716_v8  ;;  %5694 = vmatmul.msk.bf16.vlgmr.msra.gmra.mxu1 %vm389_vm2, %v6716_v8 }
  0xdf   : > { %5695 = vmatmul.msk.bf16.vlgmr.msra.gmra.mxu2 %vm389_vm2, %v6716_v8  ;;  %5696 = vmatmul.msk.bf16.vlgmr.msra.gmra.mxu3 %vm389_vm2, %v6716_v8 }
  0xe0   : > { %913 = vmatpush.bf16.msra.mxu0 %v853_v28  ;;  %927 = vmatpush.bf16.msra.mxu1 %v856_v29  ;;  %v999_v47 = vpop.permute.xlu0 %998  ;;  %v995_v48 = vpop.permute.xlu1 %994 }
  0xe1   : > { %941 = vmatpush.bf16.msra.mxu2 %v859_v31  ;;  %955 = vmatpush.bf16.msra.mxu3 %v862_v32  ;;  %v1005_v50 = vsel %vm1000_vm5, %v993_v36, %v995_v48  ;;  %v1006_v51 = vsel %vm1000_vm5, %v995_v48, %v997_v46  ;;  %v1007_v53 = vsel %vm1000_vm5, %v997_v46, %v999_v47  ;;  %v1167_v12 = vpop.permute.xlu2 %1166 }
  0xe2   : > { %v1024_v55 = vsel %vm393_vm1, %v1005_v50, 0  ;;  %v1027_v56 = vsel %vm393_vm1, %v1006_v51, 0  ;;  %v1030_v57 = vsel %vm393_vm1, %v1007_v53, 0 }
  0xe8   : > { %v1155_v52 = vpop.permute.xlu0 %1154  ;;  %v1159_v59 = vpop.permute.xlu1 %1158 }
  0xe9   : > { %v1169_v54 = vsel %vm1168_vm6, %v1153_v49, %v1155_v52  ;;  %v1172_v2 = vsel %vm1168_vm6, %v1159_v59, %v1161_v61  ;;  %v1331_v25 = vpop.permute.xlu2 %1330 }
  0xea   : > { %v1180_v58 = vsel %vm393_vm1, %v1169_v54, 0  ;;  %v1189_v6 = vsel %vm393_vm1, %v1172_v2, 0 }
  0xee   : > { %5697 = vmatmul.msk.bf16.vlgmr.msrb.gmra.mxu0 %vm389_vm2, %v6716_v8  ;;  %5704 = vmatmul.msk.bf16.vlgmr.msrb.gmra.mxu1 %vm389_vm2, %v6717_v37 }
  0xef   : > { %5705 = vmatmul.msk.bf16.vlgmr.msrb.gmra.mxu2 %vm389_vm2, %v6717_v37  ;;  %5706 = vmatmul.msk.bf16.vlgmr.msrb.gmra.mxu3 %vm389_vm2, %v6717_v37 }
  0xf0   : > { %1053 = vmatpush.bf16.msrb.mxu1 %v1015_v42  ;;  %1067 = vmatpush.bf16.msrb.mxu2 %v1018_v43  ;;  %v1157_v60 = vpop.permute.xlu0 %1156  ;;  %v1163_v1 = vpop.permute.xlu1 %1162 }
  0xf1   : > { %1081 = vmatpush.bf16.msrb.mxu3 %v1021_v44  ;;  %1039 = vmatpush.bf16.msrb.mxu0 %v1012_v45  ;;  %v1170_v63 = vsel %vm1168_vm6, %v1155_v52, %v1157_v60  ;;  %v1171_v0 = vsel %vm1168_vm6, %v1157_v60, %v1159_v59  ;;  %v1173_v3 = vsel %vm1168_vm6, %v1161_v61, %v1163_v1  ;;  %v1491_v42 = vpop.permute.xlu2 %1490  ;;  %v7446_v61 = vld [vmem:[%s9049_s1 + $0x30] sm:$0xff] }
  0xf2   : > { %v1183_v4 = vsel %vm393_vm1, %v1170_v63, 0  ;;  %v1186_v5 = vsel %vm393_vm1, %v1171_v0, 0  ;;  %v1192_v9 = vsel %vm393_vm1, %v1173_v3, 0 }
  0xf8   : > { %v1323_v7 = vpop.permute.xlu0 %1322  ;;  %v1165_v11 = vpop.permute.xlu1 %1164 }
  0xf9   : > { %v1174_v8 = vsel %vm1168_vm6, %v1163_v1, %v1165_v11  ;;  %v1337_v14 = vsel %vm1336_vm7, %v1321_v10, %v1323_v7  ;;  %v1175_v19 = vsel %vm1168_vm6, %v1165_v11, %v1167_v12 }
  0xfa   : > { %v1195_v20 = vsel %vm393_vm1, %v1174_v8, 0  ;;  %v1348_v21 = vsel %vm393_vm1, %v1337_v14, 0  ;;  %v1198_v23 = vsel %vm393_vm1, %v1175_v19, 0 }
  0xfb   : > { %v1489_v52 = vpop.permute.xlu2 %1488 }
  0xfe   : > { %5707 = vmatmul.msk.bf16.vlgmr.msra.gmra.mxu0 %vm389_vm2, %v6717_v37  ;;  %5708 = vmatmul.msk.bf16.vlgmr.msra.gmra.mxu1 %vm389_vm2, %v6717_v37 }
  0xff   : > { %5709 = vmatmul.msk.bf16.vlgmr.msra.gmra.mxu2 %vm389_vm2, %v6717_v37  ;;  %5710 = vmatmul.msk.bf16.vlgmr.msra.gmra.mxu3 %vm389_vm2, %v6717_v37 }
 0x100   : > { %1095 = vmatpush.bf16.msra.mxu0 %v1024_v55  ;;  %1109 = vmatpush.bf16.msra.mxu1 %v1027_v56  ;;  %v1325_v13 = vpop.permute.xlu0 %1324  ;;  %v1329_v24 = vpop.permute.xlu1 %1328 }
 0x101   : > { %1123 = vmatpush.bf16.msra.mxu2 %v1030_v57  ;;  %1207 = vmatpush.bf16.msra.mxu3 %v1180_v58  ;;  %v1338_v18 = vsel %vm1336_vm7, %v1323_v7, %v1325_v13  ;;  %v1341_v38 = vsel %vm1336_vm7, %v1329_v24, %v1331_v25  ;;  %v1505_v57 = vsel %vm1504_vm8, %v1489_v52, %v1491_v42 }
 0x102   : > { %v1351_v22 = vsel %vm393_vm1, %v1338_v18, 0  ;;  %v1360_v43 = vsel %vm393_vm1, %v1341_v38, 0  ;;  %v1516_v3 = vsel %vm393_vm1, %v1505_v57, 0 }
 0x103   : > { %v1501_v7 = vpop.permute.xlu2 %1500 }
 0x108   : > { %v1327_v30 = vpop.permute.xlu0 %1326  ;;  %v1333_v31 = vpop.permute.xlu1 %1332 }
 0x109   : > { %v1339_v34 = vsel %vm1336_vm7, %v1325_v13, %v1327_v30  ;;  %v1340_v35 = vsel %vm1336_vm7, %v1327_v30, %v1329_v24  ;;  %v1342_v39 = vsel %vm1336_vm7, %v1331_v25, %v1333_v31 }
 0x10a   : > { %v1354_v40 = vsel %vm393_vm1, %v1339_v34, 0  ;;  %v1357_v41 = vsel %vm393_vm1, %v1340_v35, 0  ;;  %v1363_v45 = vsel %vm393_vm1, %v1342_v39, 0 }
 0x10e   : > { %5717 = vmatmul.msk.bf16.vlgmr.msrb.gmra.mxu0 %vm389_vm2, %v6718_v62  ;;  %5718 = vmatmul.msk.bf16.vlgmr.msrb.gmra.mxu1 %vm389_vm2, %v6718_v62 }
 0x10f   : > { %5719 = vmatmul.msk.bf16.vlgmr.msrb.gmra.mxu2 %vm389_vm2, %v6718_v62  ;;  %5720 = vmatmul.msk.bf16.vlgmr.msrb.gmra.mxu3 %vm389_vm2, %v6718_v62 }
 0x110   : > { %1221 = vmatpush.bf16.msrb.mxu0 %v1183_v4  ;;  %1235 = vmatpush.bf16.msrb.mxu1 %v1186_v5 }
 0x111   : > { %1249 = vmatpush.bf16.msrb.mxu2 %v1189_v6  ;;  %1263 = vmatpush.bf16.msrb.mxu3 %v1192_v9 }
 0x112   : > { %v1493_v44 = vpop.permute.xlu0 %1492 }
 0x113   : > { %v1335_v51 = vpop.permute.xlu1 %1334 }
 0x114   : > { %v1343_v56 = vsel %vm1336_vm7, %v1333_v31, %v1335_v51  ;;  %vm2173_vm7 = vcmask 515464  }
 0x115   : > { %v1366_v2 = vsel %vm393_vm1, %v1343_v56, 0 }
 0x11a   : > { %v1495_v53 = vpop.permute.xlu0 %1494 }
 0x11b   : > { %v424_v16 = vpop.f32.mrf.mxu0  ;;  %v7389_v15 = vpop.f32.mrf.mxu1  ;;  %v1507_v63 = vsel %vm1504_vm8, %v1493_v44, %v1495_v53 }
 0x11c   : > { %v1522_v5 = vsel %vm393_vm1, %v1507_v63, 0  ;;  %v1499_v6 = vpop.permute.xlu1 %1498 }
 0x11e   : > { %5721 = vmatmul.msk.bf16.vlgmr.msra.gmra.mxu0 %vm389_vm2, %v6718_v62  ;;  %5722 = vmatmul.msk.bf16.vlgmr.msra.gmra.mxu1 %vm389_vm2, %v6718_v62 }
 0x11f   : > { %5723 = vmatmul.msk.bf16.vlgmr.msra.gmra.mxu2 %vm389_vm2, %v6718_v62  ;;  %5730 = vmatmul.msk.bf16.vlgmr.msra.gmra.mxu3 %vm389_vm2, %v7394_v17  ;;  %v1506_v62 = vsel %vm1504_vm8, %v1491_v42, %v1493_v44 }
 0x120   : > { %1277 = vmatpush.bf16.msra.mxu0 %v1195_v20  ;;  %1375 = vmatpush.bf16.msra.mxu2 %v1348_v21  ;;  %v1519_v4 = vsel %vm393_vm1, %v1506_v62, 0 }
 0x121   : > { %1389 = vmatpush.bf16.msra.mxu3 %v1351_v22  ;;  %1291 = vmatpush.bf16.msra.mxu1 %v1198_v23 }
 0x122   : > { %v452_v26 = vpop.f32.mrf.mxu2  ;;  %v7407_v27 = vpop.f32.mrf.mxu3 }
 0x123   : > { %v426_v28 = vpop.f32.mrf.mxu0  ;;  %v7409_v29 = vpop.f32.mrf.mxu1 }
 0x12a   : > { %v7411_v32 = vpop.f32.mrf.mxu2  ;;  %v7413_v33 = vpop.f32.mrf.mxu3 }
 0x12b   : > { %v480_v36 = vpop.f32.mrf.mxu0  ;;  %v7417_v37 = vpop.f32.mrf.mxu1 }
 0x12e   : > { %5731 = vmatmul.msk.bf16.vlgmr.msrb.gmra.mxu0 %vm389_vm2, %v7394_v17  ;;  %5732 = vmatmul.msk.bf16.vlgmr.msrb.gmra.mxu1 %vm389_vm2, %v7394_v17 }
 0x12f   : > { %5733 = vmatmul.msk.bf16.vlgmr.msrb.gmra.mxu2 %vm389_vm2, %v7394_v17  ;;  %5734 = vmatmul.msk.bf16.vlgmr.msrb.gmra.mxu3 %vm389_vm2, %v7394_v17 }
 0x130   : > { %1403 = vmatpush.bf16.msrb.mxu0 %v1354_v40  ;;  %1417 = vmatpush.bf16.msrb.mxu1 %v1357_v41 }
 0x131   : > { %1431 = vmatpush.bf16.msrb.mxu2 %v1360_v43  ;;  %1445 = vmatpush.bf16.msrb.mxu3 %v1363_v45 }
 0x132   : > { %v508_v46 = vpop.f32.mrf.mxu2  ;;  %v551_v47 = vpop.f32.mrf.mxu3 }
 0x133   : > { %v7433_v48 = vadd.f32 %v551_v47, %v424_v16  ;;  %v482_v49 = vpop.f32.mrf.mxu0  ;;  %v7435_v50 = vpop.f32.mrf.mxu1 }
 0x13a   : > { %v7437_v54 = vpop.f32.mrf.mxu2  ;;  %v553_v55 = vpop.f32.mrf.mxu3 }
 0x13b   : > { %v7441_v58 = vadd.f32 %v553_v55, %v426_v28  ;;  %v565_v59 = vpop.f32.mrf.mxu0  ;;  %v579_v60 = vpop.f32.mrf.mxu1 }
 0x13c   : > { %v7451_v0 = vadd.f32 %v565_v59, %v7389_v15  ;;  %v7453_v1 = vadd.f32 %v579_v60, %v452_v26  ;;  %v1497_v15 = vpop.permute.xlu0 %1496  ;;  %v1510_v26 = vsel %vm1504_vm8, %v1499_v6, %v1501_v7 }
 0x13d   : > { %v1508_v20 = vsel %vm1504_vm8, %v1495_v53, %v1497_v15  ;;  %v1509_v21 = vsel %vm1504_vm8, %v1497_v15, %v1499_v6  ;;  %v9058_v15 = vmov 0  }
 0x13e   : > { %5735 = vmatmul.msk.bf16.vlgmr.msra.gmra.mxu0 %vm389_vm2, %v7394_v17  ;;  %5736 = vmatmul.msk.bf16.vlgmr.msra.gmra.mxu1 %vm389_vm2, %v7394_v17  ;;  %v1503_v17 = vpop.permute.xlu1 %1502  ;;  %v1525_v30 = vsel %vm393_vm1, %v1508_v20, 0  ;;  %v1528_v31 = vsel %vm393_vm1, %v1509_v21, 0 }
 0x13f   : > { %5743 = vmatmul.msk.bf16.vlgmr.msra.gmra.mxu2 %vm389_vm2, %v7446_v61  ;;  %5744 = vmatmul.msk.bf16.vlgmr.msra.gmra.mxu3 %vm389_vm2, %v7446_v61 }
 0x140   : > { %1459 = vmatpush.bf16.msra.mxu0 %v1366_v2  ;;  %1543 = vmatpush.bf16.msra.mxu1 %v1516_v3 }
 0x141   : > { %1557 = vmatpush.bf16.msra.mxu2 %v1519_v4  ;;  %1571 = vmatpush.bf16.msra.mxu3 %v1522_v5 }
 0x142   : > { %v593_v9 = vpop.f32.mrf.mxu2  ;;  %v607_v10 = vpop.f32.mrf.mxu3  ;;  %6917 = vset.pattern.permute.xlu1 %v9058_v15  ;;  %6918 = vset.pattern.permute.xlu2 %v9058_v15 }
 0x143   : > { %v7468_v11 = vadd.f32 %v593_v9, %v7407_v27  ;;  %v7470_v12 = vadd.f32 %v607_v10, %v480_v36  ;;  %v567_v13 = vpop.f32.mrf.mxu0  ;;  %v581_v8 = vpop.f32.mrf.mxu1  ;;  %v1511_v27 = vsel %vm1504_vm8, %v1501_v7, %v1503_v17  ;;  %v1816_v17 = vld [vmem:[%s9050_s2] sm:$0xff]  ;;  %6919 = vset.pattern.permute.xlu0 %v9058_v15  ;;  %vm2379_vm8 = vcmask 121864  }
 0x144   : > { %v7473_v14 = vadd.f32 %v567_v13, %v7409_v29  ;;  %v7476_v16 = vadd.f32 %v581_v8, %v7411_v32  ;;  %v1661_v32 = vpop.permute.xlu2 %1660  ;;  %v1534_v34 = vsel %vm393_vm1, %v1511_v27, 0  ;;  %v1663_v35 = vpop.permute.xlu0 %1662  ;;  %1820 = vperm.xlu1 %6917, %v1816_v17  }
 0x146   : > { %v1657_v45 = vpop.permute.xlu1 %1656 }
 0x14a   : > { %v595_v18 = vpop.f32.mrf.mxu2  ;;  %v609_v19 = vpop.f32.mrf.mxu3 }
 0x14b   : > { %v7481_v22 = vadd.f32 %v595_v18, %v7413_v33  ;;  %v7483_v23 = vadd.f32 %v609_v19, %v482_v49  ;;  %v621_v24 = vpop.f32.mrf.mxu0  ;;  %v635_v25 = vpop.f32.mrf.mxu1  ;;  %v1531_v33 = vsel %vm393_vm1, %v1510_v26, 0  ;;  %v1675_v49 = vsel %vm1672_vm9, %v1661_v32, %v1663_v35 }
 0x14c   : > { %v7488_v28 = vadd.f32 %v621_v24, %v7417_v37  ;;  %v7490_v29 = vadd.f32 %v635_v25, %v508_v46  ;;  %v1659_v43 = vpop.permute.xlu2 %1658  ;;  %v1665_v44 = vpop.permute.xlu0 %1664  ;;  %v1690_v57 = vsel %vm393_vm1, %v1675_v49, 0 }
 0x14d   : > { %v1674_v51 = vsel %vm1672_vm9, %v1659_v43, %v1661_v32  ;;  %v1673_v55 = vsel %vm1672_vm9, %v1657_v45, %v1659_v43 }
 0x14e   : > { %5745 = vmatmul.msk.bf16.vlgmr.msrb.gmra.mxu0 %vm389_vm2, %v7446_v61  ;;  %5746 = vmatmul.msk.bf16.vlgmr.msrb.gmra.mxu1 %vm389_vm2, %v7446_v61  ;;  %v1687_v56 = vsel %vm393_vm1, %v1674_v51, 0  ;;  %v1667_v2 = vpop.permute.xlu1 %1666 }
 0x14f   : > { %5747 = vmatmul.msk.bf16.vlgmr.msrb.gmra.mxu2 %vm389_vm2, %v7446_v61  ;;  %5748 = vmatmul.msk.bf16.vlgmr.msrb.gmra.mxu3 %vm389_vm2, %v7446_v61  ;;  %v1677_v7 = vsel %vm1672_vm9, %v1665_v44, %v1667_v2 }
 0x150   : > { %1585 = vmatpush.bf16.msrb.mxu0 %v1525_v30  ;;  %1599 = vmatpush.bf16.msrb.mxu1 %v1528_v31  ;;  %v1696_v18 = vsel %vm393_vm1, %v1677_v7, 0  ;;  %v6722_v31 = vld [vmem:[%s9049_s1 + $0x40] sm:$0xff] }
 0x151   : > { %1613 = vmatpush.bf16.msrb.mxu2 %v1531_v33  ;;  %1627 = vmatpush.bf16.msrb.mxu3 %v1534_v34 }
 0x152   : > { %v705_v36 = vpop.f32.mrf.mxu2  ;;  %v7504_v37 = vpop.f32.mrf.mxu3 }
 0x153   : > { %v7507_v38 = vadd.f32 %v705_v36, %v7433_v48  ;;  %v623_v39 = vpop.f32.mrf.mxu0  ;;  %v637_v40 = vpop.f32.mrf.mxu1  ;;  %v6721_v48 = vld [vmem:[%s9049_s1 + $0x38] sm:$0xff] }
 0x154   : > { %v7510_v41 = vadd.f32 %v623_v39, %v7435_v50  ;;  %v7513_v42 = vadd.f32 %v637_v40, %v7437_v54  ;;  %v1676_v54 = vsel %vm1672_vm9, %v1663_v35, %v1665_v44  ;;  %v1669_v3 = vpop.permute.xlu2 %1668  ;;  %v1671_v4 = vpop.permute.xlu0 %1670  ;;  %v795_v40 = vadd.f32 %v7504_v37, %v7451_v0 }
 0x155   : > { %v1693_v59 = vsel %vm393_vm1, %v1676_v54, 0  ;;  %v1678_v9 = vsel %vm1672_vm9, %v1667_v2, %v1669_v3  ;;  %v1679_v8 = vsel %vm1672_vm9, %v1669_v3, %v1671_v4  ;;  %v1817_v54 = vld [vmem:[%s9050_s2 + $0x8] sm:$0xff]  ;;  %vm2215_vm9 = vcmask 646664  }
 0x156   : > { %v1699_v19 = vsel %vm393_vm1, %v1678_v9, 0  ;;  %v1702_v20 = vsel %vm393_vm1, %v1679_v8, 0  ;;  %1825 = vperm.xlu2 %6918, %v1817_v54  }
 0x15a   : > { %v707_v46 = vpop.f32.mrf.mxu2  ;;  %v7515_v47 = vpop.f32.mrf.mxu3 }
 0x15b   : > { %v7523_v50 = vadd.f32 %v707_v46, %v7441_v58  ;;  %v7525_v52 = vpop.f32.mrf.mxu0  ;;  %v7527_v53 = vpop.f32.mrf.mxu1  ;;  %v1684_v58 = vsel %vm393_vm1, %v1673_v55, 0  ;;  %vm2091_vm1 = vcmask 253064  }
 0x15c   : > { %v796_v0 = vadd.f32 %v7525_v52, %v7453_v1 }
 0x15e   : > { %5749 = vmatmul.msk.bf16.vlgmr.msra.gmra.mxu0 %vm389_vm2, %v7446_v61  ;;  %5756 = vmatmul.msk.bf16.vlgmr.msra.gmra.mxu1 %vm389_vm2, %v6721_v48 }
 0x15f   : > { %5757 = vmatmul.msk.bf16.vlgmr.msra.gmra.mxu2 %vm389_vm2, %v6721_v48  ;;  %5758 = vmatmul.msk.bf16.vlgmr.msra.gmra.mxu3 %vm389_vm2, %v6721_v48 }
 0x160   : > { %1725 = vmatpush.bf16.msra.mxu1 %v1687_v56  ;;  %1739 = vmatpush.bf16.msra.mxu2 %v1690_v57 }
 0x161   : > { %1753 = vmatpush.bf16.msra.mxu3 %v1693_v59  ;;  %1711 = vmatpush.bf16.msra.mxu0 %v1684_v58 }
 0x162   : > { %v7540_v60 = vpop.f32.mrf.mxu2  ;;  %v7542_v62 = vpop.f32.mrf.mxu3 }
 0x163   : > { %v7544_v63 = vpop.f32.mrf.mxu0  ;;  %v7546_v61 = vpop.f32.mrf.mxu1  ;;  %v799_v3 = vadd.f32 %v7542_v62, %v7488_v28 }
 0x164   : > { %v804_v2 = vadd.f32 %v7546_v61, %v7481_v22 }
 0x16a   : > { %v7548_v5 = vpop.f32.mrf.mxu2  ;;  %v7550_v6 = vpop.f32.mrf.mxu3 }
 0x16b   : > { %v7554_v10 = vpop.f32.mrf.mxu0  ;;  %v7556_v13 = vpop.f32.mrf.mxu1  ;;  %v805_v22 = vadd.f32 %v7548_v5, %v7483_v23  ;;  %v797_v5 = vadd.f32 %v7527_v53, %v7468_v11 }
 0x16e   : > { %5759 = vmatmul.msk.bf16.vlgmr.msrb.gmra.mxu0 %vm389_vm2, %v6721_v48  ;;  %5760 = vmatmul.msk.bf16.vlgmr.msrb.gmra.mxu1 %vm389_vm2, %v6721_v48 }
 0x16f   : > { %5761 = vmatmul.msk.bf16.vlgmr.msrb.gmra.mxu2 %vm389_vm2, %v6721_v48  ;;  %5762 = vmatmul.msk.bf16.vlgmr.msrb.gmra.mxu3 %vm389_vm2, %v6721_v48 }
 0x170   : > { %1767 = vmatpush.bf16.msrb.mxu0 %v1696_v18  ;;  %1781 = vmatpush.bf16.msrb.mxu1 %v1699_v19  ;;  %v800_v19 = vadd.f32 %v7554_v10, %v7490_v29 }
 0x171   : > { %1795 = vmatpush.bf16.msrb.mxu2 %v1702_v20 }
 0x172   : > { %v887_v21 = vpop.f32.mrf.mxu2  ;;  %v901_v24 = vpop.f32.mrf.mxu3 }
 0x173   : > { %v791_v25 = vpop.f32.mrf.mxu0  ;;  %v875_v26 = vpop.f32.mrf.mxu1  ;;  %v963_v44 = vadd.f32 %v887_v21, %v795_v40  ;;  %v964_v37 = vadd.f32 %v901_v24, %v796_v0 }
 0x174   : > { %v807_v43 = vadd.f32 %v791_v25, %v7513_v42 }
 0x17a   : > { %v7572_v27 = vpop.f32.mrf.mxu2  ;;  %v7574_v30 = vpop.f32.mrf.mxu3 }
 0x17b   : > { %v915_v32 = vpop.f32.mrf.mxu0  ;;  %v7579_v33 = vpop.f32.mrf.mxu1 }
 0x17e   : > { %5769 = vmatmul.msk.bf16.vlgmr.msra.gmra.mxu0 %vm389_vm2, %v6722_v31  ;;  %5770 = vmatmul.msk.bf16.vlgmr.msra.gmra.mxu1 %vm389_vm2, %v6722_v31 }
 0x17f   : > { %5771 = vmatmul.msk.bf16.vlgmr.msra.gmra.mxu2 %vm389_vm2, %v6722_v31  ;;  %5772 = vmatmul.msk.bf16.vlgmr.msra.gmra.mxu3 %vm389_vm2, %v6722_v31 }
 0x182   : > { %v943_v34 = vpop.f32.mrf.mxu2  ;;  %v957_v35 = vpop.f32.mrf.mxu3 }
 0x183   : > { %v917_v36 = vpop.f32.mrf.mxu0  ;;  %v931_v39 = vpop.f32.mrf.mxu1  ;;  %v967_v7 = vadd.f32 %v943_v34, %v799_v3  ;;  %v968_v61 = vadd.f32 %v957_v35, %v800_v19  ;;  %v969_v34 = vadd.f32 %v875_v26, %v7523_v50  ;;  %v802_v35 = vadd.f32 %v7515_v47, %v7473_v14 }
 0x184   : > { %v972_v4 = vadd.f32 %v917_v36, %v804_v2  ;;  %v973_v28 = vadd.f32 %v931_v39, %v805_v22  ;;  %v965_v39 = vadd.f32 %v915_v32, %v797_v5  ;;  %v806_v32 = vadd.f32 %v7550_v6, %v7510_v41 }
 0x18a   : > { %v7588_v45 = vpop.f32.mrf.mxu2  ;;  %v959_v46 = vpop.f32.mrf.mxu3 }
 0x18b   : > { %v7590_v48 = vadd.f32 %v959_v46, %v807_v43  ;;  %v7592_v49 = vpop.f32.mrf.mxu0  ;;  %v1055_v51 = vpop.f32.mrf.mxu1  ;;  %v970_v46 = vadd.f32 %v7572_v27, %v802_v35 }
 0x18c   : > { %v7597_v55 = vadd.f32 %v1055_v51, %v963_v44 }
 0x18e   : > { %5773 = vmatmul.msk.bf16.vlgmr.msrb.gmra.mxu0 %vm389_vm2, %v6722_v31  ;;  %5774 = vmatmul.msk.bf16.vlgmr.msrb.gmra.mxu1 %vm389_vm2, %v6722_v31 }
 0x18f   : > { %5775 = vmatmul.msk.bf16.vlgmr.msrb.gmra.mxu2 %vm389_vm2, %v6722_v31  ;;  %vm2133_vm2 = vcmask 384264  }
 0x192   : > { %v1069_v42 = vpop.f32.mrf.mxu2  ;;  %v1083_v56 = vpop.f32.mrf.mxu3 }
 0x193   : > { %v1132_v57 = vadd.f32 %v1069_v42, %v964_v37  ;;  %v1043_v58 = vpop.f32.mrf.mxu0  ;;  %v1057_v59 = vpop.f32.mrf.mxu1  ;;  %v1133_v50 = vadd.f32 %v1083_v56, %v965_v39  ;;  %v974_v56 = vadd.f32 %v7588_v45, %v806_v32 }
 0x194   : > { %v1137_v36 = vadd.f32 %v1043_v58, %v969_v34  ;;  %v1138_v26 = vadd.f32 %v1057_v59, %v970_v46  ;;  %v962_v46 = vadd.f32 %v7556_v13, %v7507_v38 }
 0x19a   : > { %v7608_v9 = vpop.f32.mrf.mxu2  ;;  %v1085_v8 = vpop.f32.mrf.mxu3 }
 0x19b   : > { %v7610_v1 = vadd.f32 %v1085_v8, %v972_v4  ;;  %v7612_v52 = vpop.f32.mrf.mxu0  ;;  %v1111_v17 = vpop.f32.mrf.mxu1 }
 0x19c   : > { %v7614_v18 = vadd.f32 %v1111_v17, %v967_v7 }
 0x1a2   : > { %v1125_v62 = vpop.f32.mrf.mxu2  ;;  %v7620_v20 = vpop.f32.mrf.mxu3 }
 0x1a3   : > { %v1136_v21 = vadd.f32 %v1125_v62, %v968_v61  ;;  %v1099_v24 = vpop.f32.mrf.mxu0  ;;  %v1113_v25 = vpop.f32.mrf.mxu1 }
 0x1a4   : > { %v1141_v31 = vadd.f32 %v1099_v24, %v973_v28  ;;  %v1142_v59 = vadd.f32 %v1113_v25, %v974_v56 }
 0x1aa   : > { %v7623_v40 = vpop.f32.mrf.mxu2  ;;  %v1211_v43 = vpop.f32.mrf.mxu3 }
 0x1ab   : > { %v7625_v44 = vadd.f32 %v1211_v43, %v1137_v36  ;;  %v1223_v29 = vpop.f32.mrf.mxu0  ;;  %v1237_v10 = vpop.f32.mrf.mxu1 }
 0x1ac   : > { %v7627_v23 = vadd.f32 %v1237_v10, %v1132_v57  ;;  %v1299_v32 = vadd.f32 %v1223_v29, %v7597_v55  ;;  %v803_v55 = vadd.f32 %v7544_v63, %v7476_v16 }
 0x1b2   : > { %v1251_v51 = vpop.f32.mrf.mxu2  ;;  %v7634_v54 = vpop.f32.mrf.mxu3 }
 0x1b3   : > { %v1301_v0 = vadd.f32 %v1251_v51, %v1133_v50  ;;  %v1225_v37 = vpop.f32.mrf.mxu0  ;;  %v7636_v42 = vpop.f32.mrf.mxu1 }
 0x1b4   : > { %v7638_v57 = vadd.f32 %v1225_v37, %v1138_v26 }
 0x1ba   : > { %v7640_v58 = vpop.f32.mrf.mxu2  ;;  %v1267_v11 = vpop.f32.mrf.mxu3 }
 0x1bb   : > { %v7642_v53 = vadd.f32 %v1267_v11, %v1141_v31  ;;  %v7644_v14 = vpop.f32.mrf.mxu0  ;;  %v1293_v47 = vpop.f32.mrf.mxu1  ;;  %v1130_v11 = vadd.f32 %v7592_v49, %v962_v46 }
 0x1bc   : > { %v7646_v27 = vadd.f32 %v1293_v47, %v1136_v21  ;;  %v7707_v46 = vpop.permute.xlu2 %1825 }
 0x1bd   : > { %v1298_v47 = vadd.f32 %v7620_v20, %v1130_v11 }
 0x1c2   : > { %v1377_v2 = vpop.f32.mrf.mxu2  ;;  %v1391_v3 = vpop.f32.mrf.mxu3 }
 0x1c3   : > { %v1281_v4 = vpop.f32.mrf.mxu0  ;;  %v7651_v7 = vpop.f32.mrf.mxu1  ;;  %v1466_v56 = vadd.f32 %v1377_v2, %v1298_v47 }
 0x1c4   : > { %9067 = vst [vmem:[#allocation7_spill] sm:$0xff] %v7651_v7  ;;  %v7653_v8 = vadd.f32 %v1281_v4, %v1142_v59  ;;  %v1467_v59 = vadd.f32 %v1391_v3, %v1299_v32  ;;  %v7686_v4 = vpop.permute.xlu1 %1820  ;;  %v798_v3 = vadd.f32 %v7540_v60, %v7470_v12  ;;  %v1308_v32 = vadd.f32 %v7640_v58, %v7610_v1 }
 0x1c6   : > { %9068 = vst [vmem:[#allocation8_spill] sm:$0xff] %v7653_v8  ;;  %v966_v16 = vadd.f32 %v7579_v33, %v798_v3 }
 0x1c8   : > { %v1134_v33 = vadd.f32 %v7612_v52, %v966_v16 }
 0x1ca   : > { %v1379_v17 = vpop.f32.mrf.mxu2  ;;  %v1393_v19 = vpop.f32.mrf.mxu3 }
 0x1cb   : > { %v1405_v22 = vpop.f32.mrf.mxu0  ;;  %v1419_v61 = vpop.f32.mrf.mxu1  ;;  %v1474_v60 = vadd.f32 %v1393_v19, %v7638_v57 }
 0x1cc   : > { %v1468_v29 = vadd.f32 %v1405_v22, %v7627_v23  ;;  %v1469_v2 = vadd.f32 %v1419_v61, %v1301_v0 }
 0x1d2   : > { %v7655_v28 = vpop.f32.mrf.mxu2  ;;  %v7657_v62 = vpop.f32.mrf.mxu3 }
 0x1d3   : > { %v7659_v21 = vpop.f32.mrf.mxu0  ;;  %v7661_v41 = vpop.f32.mrf.mxu1 }
 0x1d4   : > { %v1476_v1 = vadd.f32 %v7661_v41, %v1308_v32 }
 0x1da   : > { %v7663_v6 = vpop.f32.mrf.mxu2  ;;  %v7665_v45 = vpop.f32.mrf.mxu3 }
 0x1db   : > { %9069 = vst [vmem:[#allocation9_spill] sm:$0xff] %v7665_v45  ;;  %v7667_v24 = vpop.f32.mrf.mxu0  ;;  %v1545_v25 = vpop.f32.mrf.mxu1 }
 0x1dc   : > { %v1634_v15 = vadd.f32 %v1545_v25, %v1466_v56  ;;  %v1473_v25 = vadd.f32 %v1379_v17, %v7625_v44 }
 0x1e2   : > { %v1559_v31 = vpop.f32.mrf.mxu2  ;;  %v1573_v34 = vpop.f32.mrf.mxu3 }
 0x1e3   : > { %v7669_v36 = vpop.f32.mrf.mxu0  ;;  %v1547_v43 = vpop.f32.mrf.mxu1  ;;  %v1635_v38 = vadd.f32 %v1559_v31, %v1467_v59  ;;  %v1636_v31 = vadd.f32 %v1573_v34, %v1468_v29 }
 0x1e4   : > { %9070 = vst [vmem:[#allocation10_spill] sm:$0xff] %v7669_v36  ;;  %v1641_v63 = vadd.f32 %v1547_v43, %v1473_v25 }
 0x1ea   : > { %v1561_v10 = vpop.f32.mrf.mxu2  ;;  %v1575_v5 = vpop.f32.mrf.mxu3 }
 0x1eb   : > { %v1587_v35 = vpop.f32.mrf.mxu0  ;;  %v7671_v39 = vpop.f32.mrf.mxu1  ;;  %v1642_v43 = vadd.f32 %v1561_v10, %v1474_v60 }
 0x1f2   : > { %v7675_v50 = vpop.f32.mrf.mxu2  ;;  %v7677_v26 = vpop.f32.mrf.mxu3 }
 0x1f3   : > { %9071 = vst [vmem:[#allocation11_spill] sm:$0xff] %v7677_v26  ;;  %v7679_v51 = vpop.f32.mrf.mxu0  ;;  %v7681_v37 = vpop.f32.mrf.mxu1 }
 0x1fa   : > { %v7688_v13 = vpop.f32.mrf.mxu2  ;;  %v7690_v36 = vpop.f32.mrf.mxu3 }
 0x1fb   : > { %v1713_v26 = vpop.f32.mrf.mxu0  ;;  %v1727_v7 = vpop.f32.mrf.mxu1 }
 0x1fc   : > { %v1802_v45 = vadd.f32 %v1713_v26, %v1634_v15  ;;  %v1803_v8 = vadd.f32 %v1727_v7, %v1635_v38 }
 0x1fe   : > { %v7693_v49 = vadd.f32 %v7686_v4, %v1803_v8  ;;  %v7696_v20 = vadd.f32 %v7686_v4, %v1802_v45  ;;  %v971_v8 = vadd.f32 %v7574_v30, %v803_v55  ;;  %v1637_v45 = vadd.f32 %v1587_v35, %v1469_v2 }
 0x1ff   : > { %v1644_v55 = vadd.f32 %v7679_v51, %v1476_v1 }
 0x200   : > { %v1843_v15 = vmax.f32 %v7693_v49, 0.0  ;;  %v1842_v7 = vmax.f32 %v7696_v20, 0.0  ;;  %v1139_v12 = vadd.f32 %v7608_v9, %v971_v8  ;;  %v1302_v9 = vadd.f32 %v7634_v54, %v1134_v33 }
 0x201   : > { %v1303_v54 = vadd.f32 %v7644_v14, %v7614_v18  ;;  %v1477_v8 = vadd.f32 %v7663_v6, %v7642_v53  ;;  %v1143_v53 = vadd.f32 %v7623_v40, %v7590_v48  ;;  %v1472_v6 = vadd.f32 %v7667_v24, %v7646_v27  ;;  %v9076_v27 = vld [vmem:[#allocation10_spill] sm:$0xff] }
 0x202   : > { %v1741_v23 = vpop.f32.mrf.mxu2  ;;  %v1755_v0 = vpop.f32.mrf.mxu3  ;;  %1872 = vrot.lane.b32.xlu1 %v1843_v15, %s6984_s26  ;;  %1870 = vrot.lane.b32.xlu0 %v1842_v7, %s6984_s26  ;;  %v1307_v34 = vadd.f32 %v7636_v42, %v1139_v12  ;;  %v1470_v47 = vadd.f32 %v7655_v28, %v1302_v9 }
 0x203   : > { %v1804_v30 = vadd.f32 %v1741_v23, %v1636_v31  ;;  %v1805_v44 = vadd.f32 %v1755_v0, %v1637_v45  ;;  %v1715_v17 = vpop.f32.mrf.mxu0  ;;  %v1729_v22 = vpop.f32.mrf.mxu1  ;;  %v1471_v18 = vadd.f32 %v7657_v62, %v1303_v54  ;;  %v9073_v23 = vld [vmem:[#allocation9_spill] sm:$0xff] }
 0x204   : > { %v1809_v61 = vadd.f32 %v1715_v17, %v1641_v63  ;;  %v1475_v19 = vadd.f32 %v7659_v21, %v1307_v34  ;;  %v1810_v52 = vadd.f32 %v1729_v22, %v1642_v43  ;;  %v1638_v21 = vadd.f32 %v7671_v39, %v1470_v47  ;;  %v9075_v17 = vld [vmem:[#allocation11_spill] sm:$0xff] }
 0x205   : > { %v7721_v35 = vadd.f32 %v7686_v4, %v1804_v30  ;;  %v7724_v26 = vadd.f32 %v7686_v4, %v1805_v44  ;;  %v1639_v2 = vadd.f32 %v7675_v50, %v1471_v18  ;;  %v1645_v50 = vadd.f32 %v7681_v37, %v1477_v8  ;;  %v9072_v37 = vld [vmem:[#allocation8_spill] sm:$0xff]  ;;  %v9074_v30 = vld [vmem:[#allocation7_spill] sm:$0xff] }
 0x206   : > { %v7728_v57 = vadd.f32 %v7707_v46, %v1809_v61  ;;  %v1643_v56 = vadd.f32 %v1575_v5, %v1475_v19  ;;  %v7751_v38 = vadd.f32 %v7707_v46, %v1810_v52  ;;  %v1478_v0 = vadd.f32 %v9073_v23, %v9072_v37 }
 0x207   : > { %v1844_v11 = vmax.f32 %v7721_v35, 0.0  ;;  %v1845_v10 = vmax.f32 %v7724_v26, 0.0  ;;  %v1311_v44 = vadd.f32 %v9074_v30, %v1143_v53  ;;  %v1640_v22 = vadd.f32 %v9075_v17, %v1472_v6 }
 0x208   : > { %v1849_v42 = vmax.f32 %v7728_v57, 0.0  ;;  %v1850_v25 = vmax.f32 %v7751_v38, 0.0  ;;  %v1646_v48 = vadd.f32 %v7688_v13, %v1478_v0  ;;  %v6993_v17 = vmov 0.0  }
 0x209   : > { %1874 = vrot.lane.b32.xlu2 %v1844_v11, %s6984_s26  ;;  %v1479_v24 = vadd.f32 %v9076_v27, %v1311_v44  ;;  %2022 = vst [vmem:[#allocation2] sm:$0xff] %v6993_v17 }
 0x20a   : > { %v1743_v59 = vpop.f32.mrf.mxu2  ;;  %1884 = vrot.lane.b32.xlu1 %v1849_v42, %s6984_s26  ;;  %1876 = vrot.lane.b32.xlu0 %v1845_v10, %s6984_s26  ;;  %v1757_v14 = vpop.f32.mrf.mxu3  ;;  %2023 = vst [vmem:[#allocation2 + $0x8] sm:$0xff] %v6993_v17 }
 0x20b   : > { %v1811_v58 = vadd.f32 %v1743_v59, %v1643_v56  ;;  %v1769_v28 = vpop.f32.mrf.mxu0  ;;  %v1783_v5 = vpop.f32.mrf.mxu1  ;;  %v1812_v41 = vadd.f32 %v1757_v14, %v1644_v55  ;;  %v1647_v52 = vadd.f32 %v7690_v36, %v1479_v24  ;;  %2026 = vst [vmem:[#allocation2 + $0x18] sm:$0xff] %v6993_v17 }
 0x20c   : > { %v1806_v39 = vadd.f32 %v1769_v28, %v1638_v21  ;;  %v1807_v31 = vadd.f32 %v1783_v5, %v1639_v2  ;;  %2027 = vst [vmem:[#allocation2 + $0x20] sm:$0xff] %v6993_v17 }
 0x20d   : > { %v7756_v29 = vadd.f32 %v7707_v46, %v1811_v58  ;;  %v7782_v16 = vadd.f32 %v7707_v46, %v1812_v41 }
 0x20e   : > { %v7760_v3 = vadd.f32 %v7686_v4, %v1806_v39  ;;  %v7787_v12 = vadd.f32 %v7686_v4, %v1807_v31 }
 0x20f   : > { %v1851_v45 = vmax.f32 %v7756_v29, 0.0  ;;  %v1852_v34 = vmax.f32 %v7782_v16, 0.0 }
 0x210   : > { %v1846_v62 = vmax.f32 %v7760_v3, 0.0  ;;  %v1847_v43 = vmax.f32 %v7787_v12, 0.0 }
 0x211   : > { %1886 = vrot.lane.b32.xlu2 %v1850_v25, %s6984_s26 }
 0x212   : > { %v1797_v51 = vpop.f32.mrf.mxu2  ;;  %1878 = vrot.lane.b32.xlu1 %v1846_v62, %s6984_s26  ;;  %1888 = vrot.lane.b32.xlu0 %v1851_v45, %s6984_s26 }
 0x213   : > { %v1771_v63 = vpop.f32.mrf.mxu0  ;;  %v1785_v33 = vpop.f32.mrf.mxu1  ;;  %v1808_v61 = vadd.f32 %v1797_v51, %v1640_v22 }
 0x214   : > { %v1813_v60 = vadd.f32 %v1771_v63, %v1645_v50  ;;  %v1814_v19 = vadd.f32 %v1785_v33, %v1646_v48 }
 0x215   : > { %v1834_v13 = vadd.f32 %v7686_v4, %v1808_v61  ;;  %v9063_v61 = vmov 1.0  }
 0x216   : > { %v7793_v40 = vadd.f32 %v7707_v46, %v1813_v60  ;;  %v1840_v56 = vadd.f32 %v7707_v46, %v1814_v19  ;;  %v2029_v60 = vlaneseq }
 0x217   : > { %v1848_v21 = vmax.f32 %v1834_v13, 0.0 }
 0x218   : > { %v1853_v9 = vmax.f32 %v7793_v40, 0.0  ;;  %v1854_v1 = vmax.f32 %v1840_v56, 0.0  ;;  %v2030_v30 = vshrl.u32 %v2029_v60, 7  ;;  %v2035_v44 = vand.u32 127, %v2029_v60 }
 0x219   : > { %1890 = vrot.lane.b32.xlu2 %v1852_v34, %s6984_s26 }
 0x21a   : > { %v1799_v47 = vpop.f32.mrf.mxu2  ;;  %1892 = vrot.lane.b32.xlu1 %v1853_v9, %s6984_s26  ;;  %1880 = vrot.lane.b32.xlu0 %v1847_v43, %s6984_s26  ;;  %v2033_v22 = vadd.s32 24, %v2030_v30  ;;  %v2036_v33 = vmul.u32 2, %v2035_v44  ;;  %v2032_v48 = vadd.s32 16, %v2030_v30  ;;  %v2031_v24 = vadd.s32 8, %v2030_v30 }
 0x21b   : > { %v1815_v32 = vadd.f32 %v1799_v47, %v1647_v52 }
 0x21c   : > { %vm2040_vm11 = vcmp.eq.s32.totalorder %v2033_v22, %v2036_v33  ;;  %vm7904_vm12 = vcmp.eq.s32.totalorder %v2032_v48, %v2036_v33  ;;  %vm7922_vm13 = vcmp.eq.s32.totalorder %v2030_v30, %v2036_v33  ;;  %vm7926_vm14 = vcmp.eq.s32.totalorder %v2031_v24, %v2036_v33 }
 0x21d   : > { %v1841_v54 = vadd.f32 %v7707_v46, %v1815_v32  ;;  %v7902_v40 = vsel %vm2040_vm11, 1.0, %v6993_v17  ;;  %vm2297_vm11 = vcmask 909064  }
 0x21e   : > { %5780 = vmatpush.msk.msra.mxu0 %vm2056_vm10, %v7902_v40  ;;  %5792 = vmatpush.msk.msra.mxu1 %vm2056_vm10, %v7902_v40 }
 0x21f   : > { %v1855_v59 = vmax.f32 %v1841_v54, 0.0  ;;  %6845 = vmatpush.msk.msrb.mxu3 %vm2056_vm10, %v7902_v40  ;;  %5798 = vmatpush.msk.msra.mxu2 %vm2056_vm10, %v7902_v40 }
 0x220   : > { %5781 = vmatpush.msk.msra.mxu0 %vm7904_vm12, %v9063_v61  ;;  %5793 = vmatpush.msk.msra.mxu1 %vm7904_vm12, %v9063_v61 }
 0x221   : > { %1882 = vrot.lane.b32.xlu2 %v1848_v21, %s6984_s26  ;;  %6846 = vmatpush.msk.msrb.mxu3 %vm7904_vm12, %v9063_v61 }
 0x222   : > { %1896 = vrot.lane.b32.xlu1 %v1855_v59, %s6984_s26  ;;  %1894 = vrot.lane.b32.xlu0 %v1854_v1, %s6984_s26 }
 0x223   : > { %5799 = vmatpush.msk.msra.mxu2 %vm7904_vm12, %v9063_v61  ;;  %5782 = vmatpush.msk.msra.mxu0 %vm7926_vm14, %v9063_v61 }
 0x224   : > { %5794 = vmatpush.msk.msra.mxu1 %vm7926_vm14, %v9063_v61  ;;  %6847 = vmatpush.msk.msrb.mxu3 %vm7926_vm14, %v9063_v61 }
 0x225   : > { %5800 = vmatpush.msk.msra.mxu2 %vm7926_vm14, %v9063_v61  ;;  %5783 = vmatpush.msk.msra.mxu0 %vm7922_vm13, %v9063_v61 }
 0x226   : > { %5795 = vmatpush.msk.msra.mxu1 %vm7922_vm13, %v9063_v61  ;;  %6848 = vmatpush.msk.msrb.mxu3 %vm7922_vm13, %v9063_v61 }
 0x227   : > { %5786 = vmatpush.msk.msrb.mxu0 %vm2056_vm10, %v7902_v40  ;;  %5801 = vmatpush.msk.msra.mxu2 %vm7922_vm13, %v9063_v61 }
 0x228   : > { %5816 = vmatpush.msk.msrb.mxu1 %vm2056_vm10, %v7902_v40  ;;  %5804 = vmatpush.msk.msra.mxu3 %vm2056_vm10, %v7902_v40 }
 0x229   : > { %5787 = vmatpush.msk.msrb.mxu0 %vm7904_vm12, %v9063_v61  ;;  %5822 = vmatpush.msk.msrb.mxu2 %vm2056_vm10, %v7902_v40 }
 0x22a   : > { %5817 = vmatpush.msk.msrb.mxu1 %vm7904_vm12, %v9063_v61  ;;  %5805 = vmatpush.msk.msra.mxu3 %vm7904_vm12, %v9063_v61 }
 0x22b   : > { %5788 = vmatpush.msk.msrb.mxu0 %vm7926_vm14, %v9063_v61  ;;  %5823 = vmatpush.msk.msrb.mxu2 %vm7904_vm12, %v9063_v61 }
 0x22c   : > { %5818 = vmatpush.msk.msrb.mxu1 %vm7926_vm14, %v9063_v61  ;;  %5806 = vmatpush.msk.msra.mxu3 %vm7926_vm14, %v9063_v61 }
 0x22d   : > { %5789 = vmatpush.msk.msrb.mxu0 %vm7922_vm13, %v9063_v61  ;;  %5824 = vmatpush.msk.msrb.mxu2 %vm7926_vm14, %v9063_v61 }
 0x22e   : > { %5819 = vmatpush.msk.msrb.mxu1 %vm7922_vm13, %v9063_v61  ;;  %5807 = vmatpush.msk.msra.mxu3 %vm7922_vm13, %v9063_v61 }
 0x22f   : > { %5825 = vmatpush.msk.msrb.mxu2 %vm7922_vm13, %v9063_v61 }
 0x263   : > { %v1875_v36 = vpop.permute.xlu2 %1874 }
 0x26b   : > { %v1887_v14 = vpop.permute.xlu2 %1886 }
 0x274   : > { %v1873_v58 = vpop.permute.xlu1 %1872  ;;  %v1871_v28 = vpop.permute.xlu0 %1870 }
 0x275   : > { %v1900_v5 = vsel %vm381_vm0, %v1873_v58, %v1875_v36  ;;  %v1899_v4 = vsel %vm381_vm0, %v1871_v28, %v1873_v58 }
 0x276   : > { %v7815_v18 = vmax.f32 %v1842_v7, %v1899_v4  ;;  %v7819_v46 = vmax.f32 %v1843_v15, %v1900_v5  ;;  %v1891_v15 = vpop.permute.xlu2 %1890 }
 0x278   : > { %1955 = vrot.lane.b32.xlu0 %v7819_v46, %s9059_s28  ;;  %1953 = vrot.lane.b32.xlu2 %v7815_v18, %s9059_s28 }
 0x27c   : > { %v1885_v39 = vpop.permute.xlu1 %1884  ;;  %v1877_v55 = vpop.permute.xlu0 %1876 }
 0x27d   : > { %v1905_v2 = vsel %vm381_vm0, %v1885_v39, %v1887_v14  ;;  %v1901_v41 = vsel %vm381_vm0, %v1875_v36, %v1877_v55 }
 0x27e   : > { %v7829_v20 = vmax.f32 %v1849_v42, %v1905_v2  ;;  %v7833_v49 = vmax.f32 %v1844_v11, %v1901_v41  ;;  %v1883_v26 = vpop.permute.xlu2 %1882 }
 0x27f   : > { %v7879_v3 = vmax.f32 %v1848_v21, %v1883_v26 }
 0x280   : > { %1967 = vrot.lane.b32.xlu2 %v7829_v20, %s9059_s28  ;;  %1957 = vrot.lane.b32.xlu1 %v7833_v49, %s9059_s28 }
 0x284   : > { %v1879_v7 = vpop.permute.xlu1 %1878  ;;  %v1889_v8 = vpop.permute.xlu0 %1888 }
 0x285   : > { %v1902_v31 = vsel %vm381_vm0, %v1877_v55, %v1879_v7  ;;  %v1906_v50 = vsel %vm381_vm0, %v1887_v14, %v1889_v8  ;;  %v1907_v57 = vsel %vm381_vm0, %v1889_v8, %v1891_v15 }
 0x286   : > { %v7844_v35 = vmax.f32 %v1845_v10, %v1902_v31  ;;  %v7848_v11 = vmax.f32 %v1850_v25, %v1906_v50  ;;  %v7852_v42 = vmax.f32 %v1851_v45, %v1907_v57 }
 0x288   : > { %1959 = vrot.lane.b32.xlu1 %v7844_v35, %s9059_s28  ;;  %1971 = vrot.lane.b32.xlu2 %v7852_v42, %s9059_s28 }
 0x289   : > { %1969 = vrot.lane.b32.xlu0 %v7848_v11, %s9059_s28 }
 0x28c   : > { %v1893_v10 = vpop.permute.xlu1 %1892  ;;  %v1881_v51 = vpop.permute.xlu0 %1880 }
 0x28d   : > { %v1908_v38 = vsel %vm381_vm0, %v1891_v15, %v1893_v10  ;;  %v1903_v25 = vsel %vm381_vm0, %v1879_v7, %v1881_v51  ;;  %v1904_v29 = vsel %vm381_vm0, %v1881_v51, %v1883_v26 }
 0x28e   : > { %v7863_v45 = vmax.f32 %v1852_v34, %v1908_v38  ;;  %v7867_v53 = vmax.f32 %v1846_v62, %v1903_v25  ;;  %v7869_v6 = vmax.f32 %v1847_v43, %v1904_v29 }
 0x290   : > { %1973 = vrot.lane.b32.xlu1 %v7863_v45, %s9059_s28  ;;  %1963 = vrot.lane.b32.xlu2 %v7869_v6, %s9059_s28 }
 0x291   : > { %1961 = vrot.lane.b32.xlu0 %v7867_v53, %s9059_s28 }
 0x294   : > { %v1897_v16 = vpop.permute.xlu1 %1896  ;;  %v1895_v63 = vpop.permute.xlu0 %1894 }
 0x295   : > { %v1909_v37 = vsel %vm381_vm0, %v1893_v10, %v1895_v63  ;;  %v1910_v23 = vsel %vm381_vm0, %v1895_v63, %v1897_v16  ;;  %v7893_v12 = vmax.f32 %v1855_v59, %v1897_v16 }
 0x296   : > { %v7883_v62 = vmax.f32 %v1853_v9, %v1909_v37  ;;  %v7885_v0 = vmax.f32 %v1854_v1, %v1910_v23 }
 0x298   : > { %1965 = vrot.lane.b32.xlu1 %v7879_v3, %s9059_s28  ;;  %1977 = vrot.lane.b32.xlu2 %v7885_v0, %s9059_s28 }
 0x299   : > { %1975 = vrot.lane.b32.xlu0 %v7883_v62, %s9059_s28 }
 0x2a0   : > { %1979 = vrot.lane.b32.xlu1 %v7893_v12, %s9059_s28 }
 0x2d2   : > { %v1954_v9 = vpop.permute.xlu2 %1953 }
 0x2da   : > { %v1968_v13 = vpop.permute.xlu2 %1967 }
 0x2e2   : > { %v1972_v21 = vpop.permute.xlu2 %1971 }
 0x2ea   : > { %v1956_v19 = vpop.permute.xlu0 %1955  ;;  %v1964_v4 = vpop.permute.xlu2 %1963 }
 0x2eb   : > { %v1982_v52 = vsel %vm832_vm4, %v1954_v9, %v1956_v19 }
 0x2ec   : > { %v2008_v47 = vmax.f32 %v7815_v18, %v1982_v52 }
 0x2ee   : > { %2094 = vrot.lane.b32.xlu0 %v2008_v47, %s9061_s16  ;;  %5784 = vmatmul.msk.f32.vlgmr.msra.gmra.mxu0 %vm2049_vm15, %v2008_v47 }
 0x2ef   : > { %5810 = vmatpush.msk.msra.mxu0 %vm2056_vm10, %v7902_v40 }
 0x2f1   : > { %5811 = vmatpush.msk.msra.mxu0 %vm7904_vm12, %v9063_v61 }
 0x2f2   : > { %v1958_v32 = vpop.permute.xlu1 %1957 }
 0x2f3   : > { %v1983_v56 = vsel %vm832_vm4, %v1956_v19, %v1958_v32  ;;  %5812 = vmatpush.msk.msra.mxu0 %vm7926_vm14, %v9063_v61 }
 0x2f4   : > { %v2009_v54 = vmax.f32 %v7819_v46, %v1983_v56 }
 0x2f5   : > { %5813 = vmatpush.msk.msra.mxu0 %vm7922_vm13, %v9063_v61 }
 0x2f6   : > { %5796 = vmatmul.msk.f32.vlgmr.msra.gmra.mxu1 %vm2049_vm15, %v2009_v54  ;;  %2176 = vrot.lane.b32.xlu0 %v2009_v54, %s9061_s16 }
 0x2f7   : > { %5840 = vmatpush.msk.msra.mxu1 %vm2056_vm10, %v7902_v40 }
 0x2f9   : > { %5841 = vmatpush.msk.msra.mxu1 %vm7904_vm12, %v9063_v61 }
 0x2fa   : > { %v1960_v59 = vpop.permute.xlu1 %1959 }
 0x2fb   : > { %v1970_v1 = vpop.permute.xlu0 %1969  ;;  %5842 = vmatpush.msk.msra.mxu1 %vm7926_vm14, %v9063_v61  ;;  %v1984_v46 = vsel %vm832_vm4, %v1958_v32, %v1960_v59 }
 0x2fc   : > { %v1988_v36 = vsel %vm832_vm4, %v1968_v13, %v1970_v1  ;;  %v1989_v58 = vsel %vm832_vm4, %v1970_v1, %v1972_v21 }
 0x2fd   : > { %v2015_v28 = vmax.f32 %v7829_v20, %v1988_v36  ;;  %v2016_v5 = vmax.f32 %v7848_v11, %v1989_v58  ;;  %5843 = vmatpush.msk.msra.mxu1 %vm7922_vm13, %v9063_v61  ;;  %v2010_v20 = vmax.f32 %v7833_v49, %v1984_v46  ;;  %v1978_v49 = vpop.permute.xlu2 %1977 }
 0x2ff   : > { %2178 = vrot.lane.b32.xlu1 %v2016_v5, %s9061_s16  ;;  %5797 = vmatmul.msk.f32.gmra.mxu1 %vm2049_vm15, %v2016_v5 }
 0x300   : > { %2096 = vrot.lane.b32.xlu2 %v2015_v28, %s9061_s16  ;;  %5785 = vmatmul.msk.f32.vlgmr.msrb.gmra.mxu3 %vm2049_vm15, %v2015_v28 }
 0x301   : > { %5828 = vmatpush.msk.msrb.mxu3 %vm2056_vm10, %v7902_v40 }
 0x302   : > { %v1974_v18 = vpop.permute.xlu1 %1973 }
 0x303   : > { %v1990_v14 = vsel %vm832_vm4, %v1972_v21, %v1974_v18  ;;  %v1962_v39 = vpop.permute.xlu0 %1961  ;;  %5829 = vmatpush.msk.msrb.mxu3 %vm7904_vm12, %v9063_v61 }
 0x304   : > { %v2017_v55 = vmax.f32 %v7852_v42, %v1990_v14  ;;  %v1985_v2 = vsel %vm832_vm4, %v1960_v59, %v1962_v39  ;;  %v1986_v15 = vsel %vm832_vm4, %v1962_v39, %v1964_v4 }
 0x305   : > { %v2011_v41 = vmax.f32 %v7844_v35, %v1985_v2  ;;  %5830 = vmatpush.msk.msrb.mxu3 %vm7926_vm14, %v9063_v61  ;;  %v2012_v31 = vmax.f32 %v7867_v53, %v1986_v15 }
 0x306   : > { %2260 = vrot.lane.b32.xlu0 %v2017_v55, %s9061_s16 }
 0x307   : > { %2340 = vrot.lane.b32.xlu1 %v2011_v41, %s9061_s16  ;;  %5820 = vmatmul.msk.f32.vlgmr.msrb.gmra.mxu1 %vm2049_vm15, %v2011_v41 }
 0x308   : > { %2258 = vrot.lane.b32.xlu2 %v2010_v20, %s9061_s16  ;;  %5808 = vmatmul.msk.f32.vlgmr.msra.gmra.mxu3 %vm2049_vm15, %v2010_v20 }
 0x309   : > { %5831 = vmatpush.msk.msrb.mxu3 %vm7922_vm13, %v9063_v61 }
 0x30a   : > { %v1966_v7 = vpop.permute.xlu1 %1965 }
 0x30b   : > { %5852 = vmatpush.msk.msra.mxu3 %vm2056_vm10, %v7902_v40  ;;  %v1976_v8 = vpop.permute.xlu0 %1975  ;;  %v1987_v42 = vsel %vm832_vm4, %v1964_v4, %v1966_v7  ;;  %v2014_v25 = vmax.f32 %v7879_v3, %v1966_v7 }
 0x30c   : > { %v1991_v50 = vsel %vm832_vm4, %v1974_v18, %v1976_v8  ;;  %v1992_v57 = vsel %vm832_vm4, %v1976_v8, %v1978_v49  ;;  %v2013_v38 = vmax.f32 %v7869_v6, %v1987_v42 }
 0x30d   : > { %5853 = vmatpush.msk.msra.mxu3 %vm7904_vm12, %v9063_v61  ;;  %v2018_v35 = vmax.f32 %v7863_v45, %v1991_v50  ;;  %v2019_v11 = vmax.f32 %v7883_v62, %v1992_v57 }
 0x30e   : > { %2421 = vrot.lane.b32.xlu0 %v2012_v31, %s9061_s16 }
 0x30f   : > { %5854 = vmatpush.msk.msra.mxu3 %vm7926_vm14, %v9063_v61  ;;  %2423 = vrot.lane.b32.xlu1 %v2019_v11, %s9061_s16 }
 0x310   : > { %5821 = vmatmul.msk.f32.gmra.mxu1 %vm2049_vm15, %v2018_v35  ;;  %5809 = vmatmul.msk.f32.gmra.mxu3 %vm2049_vm15, %v2017_v55 }
 0x311   : > { %2342 = vrot.lane.b32.xlu2 %v2018_v35, %s9061_s16  ;;  %5855 = vmatpush.msk.msra.mxu3 %vm7922_vm13, %v9063_v61 }
 0x312   : > { %v1980_v26 = vpop.permute.xlu1 %1979 }
 0x313   : > { %v1993_v10 = vsel %vm832_vm4, %v1978_v49, %v1980_v26  ;;  %v2021_v29 = vmax.f32 %v7893_v12, %v1980_v26 }
 0x314   : > { %v2020_v51 = vmax.f32 %v7885_v0, %v1993_v10 }
 0x316   : > { %2503 = vrot.lane.b32.xlu0 %v2020_v51, %s9061_s16 }
 0x317   : > { %2581 = vrot.lane.b32.xlu1 %v2014_v25, %s9061_s16 }
 0x318   : > { %5844 = vmatmul.msk.f32.vlgmr.msra.gmra.mxu1 %vm2049_vm15, %v2013_v38  ;;  %5832 = vmatmul.msk.f32.vlgmr.msrb.gmra.mxu3 %vm2049_vm15, %v2012_v31 }
 0x319   : > { %2501 = vrot.lane.b32.xlu2 %v2013_v38, %s9061_s16 }
 0x320   : > { %5845 = vmatmul.msk.f32.gmra.mxu1 %vm2049_vm15, %v2020_v51  ;;  %5833 = vmatmul.msk.f32.gmra.mxu3 %vm2049_vm15, %v2019_v11 }
 0x321   : > { %2583 = vrot.lane.b32.xlu2 %v2021_v29, %s9061_s16  ;;  %s5596_s16 = scalar_lea.hbm %s9057_s9, %s7084_s13 }
 0x328   : > { %5856 = vmatmul.msk.f32.vlgmr.msra.gmra.mxu3 %vm2049_vm15, %v2014_v25 }
 0x330   : > { %5857 = vmatmul.msk.f32.gmra.mxu3 %vm2049_vm15, %v2021_v29 }
 0x35a   : > { %v2097_v53 = vpop.permute.xlu2 %2096 }
 0x360   : > { %v2095_v45 = vpop.permute.xlu0 %2094 }
 0x361   : > { %5790 = vmatmul.msk.f32.vlgmr.msrb.gmra.mxu0 %vm2049_vm15, %v2095_v45 }
 0x362   : > { %5834 = vmatpush.msk.msrb.mxu0 %vm2056_vm10, %v7902_v40  ;;  %v2259_v63 = vpop.permute.xlu2 %2258 }
 0x364   : > { %5835 = vmatpush.msk.msrb.mxu0 %vm7904_vm12, %v9063_v61 }
 0x366   : > { %5836 = vmatpush.msk.msrb.mxu0 %vm7926_vm14, %v9063_v61 }
 0x368   : > { %v2177_v6 = vpop.permute.xlu0 %2176  ;;  %5837 = vmatpush.msk.msrb.mxu0 %vm7922_vm13, %v9063_v61 }
 0x369   : > { %5791 = vmatmul.msk.f32.gmra.mxu0 %vm2049_vm15, %v2097_v53  ;;  %5802 = vmatmul.msk.f32.vlgmr.msra.gmra.mxu2 %vm2049_vm15, %v2177_v6 }
 0x36a   : > { %5846 = vmatpush.msk.msra.mxu2 %vm2056_vm10, %v7902_v40 }
 0x36b   : > { %v2077_v16 = vpop.f32.mrf.mxu0  ;;  %v2343_v12 = vpop.permute.xlu2 %2342 }
 0x36c   : > { %2085 = vrot.lane.b32.xlu0 %v2077_v16, %s6995_s17  ;;  %5847 = vmatpush.msk.msra.mxu2 %vm7904_vm12, %v9063_v61 }
 0x36e   : > { %5848 = vmatpush.msk.msra.mxu2 %vm7926_vm14, %v9063_v61 }
 0x370   : > { %5849 = vmatpush.msk.msra.mxu2 %vm7922_vm13, %v9063_v61 }
 0x371   : > { %v2179_v37 = vpop.permute.xlu1 %2178  ;;  %5814 = vmatmul.msk.f32.vlgmr.msra.gmra.mxu0 %vm2049_vm15, %v2259_v63 }
 0x372   : > { %5803 = vmatmul.msk.f32.gmra.mxu2 %vm2049_vm15, %v2179_v37  ;;  %5858 = vmatpush.msk.msra.mxu0 %vm2056_vm10, %v7902_v40  ;;  %vm2255_vm10 = vcmask 777864  }
 0x373   : > { %v2159_v23 = vpop.f32.mrf.mxu1  ;;  %v2502_v33 = vpop.permute.xlu2 %2501 }
 0x374   : > { %2167 = vrot.lane.b32.xlu2 %v2159_v23, %s6996_s21  ;;  %5859 = vmatpush.msk.msra.mxu0 %vm7904_vm12, %v9063_v61  ;;  %vm2337_vm12 = vcmask 1040264  }
 0x376   : > { %5860 = vmatpush.msk.msra.mxu0 %vm7926_vm14, %v9063_v61 }
 0x378   : > { %v2261_v3 = vpop.permute.xlu0 %2260  ;;  %5861 = vmatpush.msk.msra.mxu0 %vm7922_vm13, %v9063_v61 }
 0x379   : > { %v2341_v62 = vpop.permute.xlu1 %2340  ;;  %5815 = vmatmul.msk.f32.gmra.mxu0 %vm2049_vm15, %v2261_v3 }
 0x37a   : > { %5826 = vmatmul.msk.f32.vlgmr.msrb.gmra.mxu2 %vm2049_vm15, %v2341_v62 }
 0x37b   : > { %v2584_v19 = vpop.permute.xlu2 %2583 }
 0x37c   : > { %v2162_v0 = vpop.f32.mrf.mxu1 }
 0x37d   : > { %2169 = vrot.lane.b32.xlu0 %v2162_v0, %s6996_s21 }
 0x380   : > { %v2422_v60 = vpop.permute.xlu0 %2421 }
 0x381   : > { %5838 = vmatmul.msk.f32.vlgmr.msrb.gmra.mxu0 %vm2049_vm15, %v2422_v60  ;;  %v2424_v22 = vpop.permute.xlu1 %2423 }
 0x382   : > { %5827 = vmatmul.msk.f32.gmra.mxu2 %vm2049_vm15, %v2343_v12 }
 0x383   : > { %v2080_v30 = vpop.f32.mrf.mxu3 }
 0x384   : > { %2087 = vrot.lane.b32.xlu1 %v2080_v30, %s6995_s17  ;;  %v2323_v44 = vpop.f32.mrf.mxu1 }
 0x385   : > { %2331 = vrot.lane.b32.xlu0 %v2323_v44, %s6997_s22 }
 0x388   : > { %v2504_v24 = vpop.permute.xlu0 %2503 }
 0x389   : > { %5839 = vmatmul.msk.f32.gmra.mxu0 %vm2049_vm15, %v2424_v22  ;;  %v2582_v27 = vpop.permute.xlu1 %2581 }
 0x38a   : > { %5850 = vmatmul.msk.f32.vlgmr.msra.gmra.mxu2 %vm2049_vm15, %v2502_v33 }
 0x38b   : > { %v2241_v48 = vpop.f32.mrf.mxu3 }
 0x38c   : > { %2249 = vrot.lane.b32.xlu1 %v2241_v48, %s6998_s23 }
 0x38d   : > { %v2326_v40 = vpop.f32.mrf.mxu1 }
 0x391   : > { %5862 = vmatmul.msk.f32.vlgmr.msra.gmra.mxu0 %vm2049_vm15, %v2582_v27 }
 0x392   : > { %5851 = vmatmul.msk.f32.gmra.mxu2 %vm2049_vm15, %v2504_v24 }
 0x393   : > { %v2244_v9 = vpop.f32.mrf.mxu3 }
 0x394   : > { %2251 = vrot.lane.b32.xlu2 %v2244_v9, %s6998_s23 }
 0x395   : > { %v2485_v52 = vpop.f32.mrf.mxu1 }
 0x399   : > { %5863 = vmatmul.msk.f32.gmra.mxu0 %vm2049_vm15, %v2584_v19  ;;  %vm2024_vm15 = vcmask 130048  }
 0x39a   : > { %2025 = vst.msk [vmem:[#allocation2 + $0x10] sm:$0xff] %vm2024_vm15, %v6993_v17 }
 0x39b   : > { %v2405_v47 = vpop.f32.mrf.mxu3  ;;  %2028 = vst.msk [vmem:[#allocation2 + $0x28] sm:$0xff] %vm2024_vm15, %v6993_v17 }
 0x39c   : > { %2413 = vrot.lane.b32.xlu0 %v2405_v47, %s6995_s17  ;;  %2493 = vrot.lane.b32.xlu2 %v2485_v52, %s6996_s21 }
 0x39d   : > { %v2488_v13 = vpop.f32.mrf.mxu1 }
 0x3a1   : > { %v2624_v52 = vld [vmem:[#allocation2 + $0x10] sm:$0xff] }
 0x3a2   : > { %v2627_v47 = vld [vmem:[#allocation2 + $0x28] sm:$0xff] }
 0x3a3   : > { %v2408_v32 = vpop.f32.mrf.mxu3 }
 0x3a4   : > { %2415 = vrot.lane.b32.xlu1 %v2408_v32, %s6995_s17  ;;  %2495 = vrot.lane.b32.xlu0 %v2488_v13, %s6996_s21  ;;  %s7001_s17 = smov 97   ;;  %s7002_s21 = smov 1   ;;  %v2629_v13 = vpack.c.bf16 %v2624_v52, %v2624_v52  ;;  %v2631_v32 = vpack.c.bf16 %v2627_v47, %v2627_v47 }
 0x3ab   : > { %v2565_v56 = vpop.f32.mrf.mxu3 }
 0x3ac   : > { %2573 = vrot.lane.b32.xlu1 %v2565_v56, %s6998_s23  ;;  %v3156_v56 = vunpack.c.l.b16 %v2629_v13 }
 0x3b3   : > { %v2568_v54 = vpop.f32.mrf.mxu3 }
 0x3b4   : > { %2575 = vrot.lane.b32.xlu2 %v2568_v54, %s6998_s23  ;;  %s7004_s23 = smov 110   ;;  %v3157_v54 = vunpack.c.l.b16 %v2631_v32 }
 0x3ce   : > { %v2168_v15 = vpop.permute.xlu2 %2167 }
 0x3de   : > { %v2119_v21 = vpop.f32.mrf.mxu0  ;;  %v2086_v59 = vpop.permute.xlu0 %2085 }
 0x3df   : > { %2092 = vst.msk [vmem:[#allocation2] sm:$0xff] %vm2091_vm1, %v2086_v59  ;;  %2127 = vrot.lane.b32.xlu1 %v2119_v21, %s6999_s24  ;;  %v3158_v21 = vpack.c.b16 %v3157_v54, %v3156_v56  ;;  %v3298_v59 = vld [vmem:[%s9052_s4] sm:$0xff]  ;;  %v6740_v54 = vld [vmem:[%s9051_s3 + $0x88] sm:$0xff] }
 0x3e6   : > { %v2122_v1 = vpop.f32.mrf.mxu0 }
 0x3e7   : > { %2129 = vrot.lane.b32.xlu2 %v2122_v1, %s6999_s24  ;;  %v3299_v1 = vld [vmem:[%s9052_s4 + $0x8] sm:$0xff] }
 0x3ec   : > { %v2201_v36 = vpop.f32.mrf.mxu2 }
 0x3ed   : > { %2209 = vrot.lane.b32.xlu0 %v2201_v36, %s7000_s25  ;;  %v3301_v36 = vld [vmem:[%s9052_s4 + $0x18] sm:$0xff] }
 0x3ee   : > { %v2283_v58 = vpop.f32.mrf.mxu0  ;;  %v2252_v7 = vpop.permute.xlu2 %2251 }
 0x3ef   : > { %2291 = vrot.lane.b32.xlu2 %v2283_v58, %s7001_s17  ;;  %v2170_v50 = vpop.permute.xlu0 %2169  ;;  %v6723_v58 = vld [vmem:[%s9051_s3] sm:$0xff] }
 0x3f5   : > { %v2204_v28 = vpop.f32.mrf.mxu2 }
 0x3f6   : > { %v2088_v5 = vpop.permute.xlu1 %2087  ;;  %2211 = vrot.lane.b32.xlu1 %v2204_v28, %s7000_s25  ;;  %v2286_v4 = vpop.f32.mrf.mxu0 }
 0x3f7   : > { %2093 = vst.msk [vmem:[#allocation2 + $0x18] sm:$0xff] %vm2091_vm1, %v2088_v5  ;;  %2293 = vrot.lane.b32.xlu0 %v2286_v4, %s7001_s17  ;;  %v2494_v49 = vpop.permute.xlu2 %2493  ;;  %v2332_v11 = vpop.permute.xlu0 %2331  ;;  %v6724_v5 = vld [vmem:[%s9051_s3 + $0x8] sm:$0xff] }
 0x3fd   : > { %v2365_v18 = vpop.f32.mrf.mxu2 }
 0x3fe   : > { %2373 = vrot.lane.b32.xlu2 %v2365_v18, %s7002_s21  ;;  %v2446_v46 = vpop.f32.mrf.mxu0  ;;  %v2250_v8 = vpop.permute.xlu1 %2249 }
 0x3ff   : > { %2454 = vrot.lane.b32.xlu1 %v2446_v46, %s6999_s24 }
 0x405   : > { %v2368_v14 = vpop.f32.mrf.mxu2 }
 0x406   : > { %2375 = vrot.lane.b32.xlu0 %v2368_v14, %s7002_s21  ;;  %v2449_v39 = vpop.f32.mrf.mxu0  ;;  %s7007_s21 = smov 14  }
 0x407   : > { %2456 = vrot.lane.b32.xlu2 %v2449_v39, %s6999_s24  ;;  %s7005_s24 = smov 111   ;;  %v6725_v39 = vld [vmem:[%s9051_s3 + $0x10] sm:$0xff] }
 0x40d   : > { %v2526_v55 = vpop.f32.mrf.mxu2 }
 0x40e   : > { %2534 = vrot.lane.b32.xlu0 %v2526_v55, %s7000_s25  ;;  %v2606_v2 = vpop.f32.mrf.mxu0  ;;  %v2576_v31 = vpop.permute.xlu2 %2575 }
 0x40f   : > { %2614 = vrot.lane.b32.xlu2 %v2606_v2, %s7001_s17  ;;  %v2414_v26 = vpop.permute.xlu0 %2413 }
 0x415   : > { %v2529_v41 = vpop.f32.mrf.mxu2 }
 0x416   : > { %2536 = vrot.lane.b32.xlu1 %v2529_v41, %s7000_s25  ;;  %v2609_v20 = vpop.f32.mrf.mxu0  ;;  %v2416_v57 = vpop.permute.xlu1 %2415 }
 0x417   : > { %2616 = vrot.lane.b32.xlu0 %v2609_v20, %s7001_s17  ;;  %v2496_v38 = vpop.permute.xlu0 %2495  ;;  %s7006_s17 = smov 32  }
 0x41e   : > { %2333 = vrot.lane.b32.xlu1 %v2326_v40, %s6997_s22  ;;  %v2574_v42 = vpop.permute.xlu1 %2573  ;;  %s7003_s22 = smov 112  }
 0x441   : > { %v2130_v35 = vpop.permute.xlu2 %2129 }
 0x442   : > { %2135 = vst.msk [vmem:[#allocation2 + $0x18] sm:$0xff] %vm2133_vm2, %v2130_v35 }
 0x443   : > { %2175 = vst.msk [vmem:[#allocation2 + $0x18] sm:$0xff] %vm2173_vm7, %v2170_v50  ;;  %v6726_v50 = vld [vmem:[%s9051_s3 + $0x18] sm:$0xff] }
 0x449   : > { %v2292_v10 = vpop.permute.xlu2 %2291 }
 0x451   : > { %v2128_v51 = vpop.permute.xlu1 %2127 }
 0x452   : > { %2134 = vst.msk [vmem:[#allocation2] sm:$0xff] %vm2133_vm2, %v2128_v51  ;;  %v6730_v51 = vld [vmem:[%s9051_s3 + $0x38] sm:$0xff] }
 0x453   : > { %2174 = vst.msk [vmem:[#allocation2] sm:$0xff] %vm2173_vm7, %v2168_v15  ;;  %v6729_v15 = vld [vmem:[%s9051_s3 + $0x30] sm:$0xff] }
 0x458   : > { %v2374_v25 = vpop.permute.xlu2 %2373 }
 0x459   : > { %2380 = vst.msk [vmem:[#allocation2 + $0x8] sm:$0xff] %vm2379_vm8, %v2374_v25  ;;  %v6727_v25 = vld [vmem:[%s9051_s3 + $0x20] sm:$0xff] }
 0x45a   : > { %2419 = vst.msk [vmem:[#allocation2 + $0x8] sm:$0xff] %vm2091_vm1, %v2414_v26 }
 0x45f   : > { %v2210_v29 = vpop.permute.xlu0 %2209 }
 0x460   : > { %2216 = vst.msk [vmem:[#allocation2] sm:$0xff] %vm2215_vm9, %v2210_v29 }
 0x461   : > { %2256 = vst.msk [vmem:[#allocation2] sm:$0xff] %vm2255_vm10, %v2250_v8  ;;  %v2457_v16 = vpop.permute.xlu2 %2456 }
 0x462   : > { %2298 = vst.msk [vmem:[#allocation2] sm:$0xff] %vm2297_vm11, %v2292_v10 }
 0x463   : > { %2338 = vst.msk [vmem:[#allocation2] sm:$0xff] %vm2337_vm12, %v2332_v11 }
 0x468   : > { %v2212_v45 = vpop.permute.xlu1 %2211 }
 0x469   : > { %2217 = vst.msk [vmem:[#allocation2 + $0x18] sm:$0xff] %vm2215_vm9, %v2212_v45  ;;  %v2294_v53 = vpop.permute.xlu0 %2293  ;;  %v2615_v23 = vpop.permute.xlu2 %2614 }
 0x46a   : > { %2257 = vst.msk [vmem:[#allocation2 + $0x18] sm:$0xff] %vm2255_vm10, %v2252_v7  ;;  %v2622_v60 = vld [vmem:[#allocation2] sm:$0xff] }
 0x46b   : > { %2299 = vst.msk [vmem:[#allocation2 + $0x18] sm:$0xff] %vm2297_vm11, %v2294_v53 }
 0x471   : > { %v2455_v6 = vpop.permute.xlu1 %2454 }
 0x472   : > { %2460 = vst.msk [vmem:[#allocation2 + $0x8] sm:$0xff] %vm2133_vm2, %v2455_v6  ;;  %v6733_v6 = vld [vmem:[%s9051_s3 + $0x50] sm:$0xff] }
 0x473   : > { %2499 = vst.msk [vmem:[#allocation2 + $0x8] sm:$0xff] %vm2173_vm7, %v2494_v49 }
 0x478   : > { %v2376_v63 = vpop.permute.xlu0 %2375 }
 0x479   : > { %2381 = vst.msk [vmem:[#allocation2 + $0x20] sm:$0xff] %vm2379_vm8, %v2376_v63  ;;  %vm3733_vm8 = vcmask 285920  }
 0x47a   : > { %2420 = vst.msk [vmem:[#allocation2 + $0x20] sm:$0xff] %vm2091_vm1, %v2416_v57  ;;  %vm2859_vm1 = vcmask 916480  }
 0x47b   : > { %2461 = vst.msk [vmem:[#allocation2 + $0x20] sm:$0xff] %vm2133_vm2, %v2457_v16  ;;  %vm2934_vm2 = vcmask 908288   ;;  %v6728_v16 = vld [vmem:[%s9051_s3 + $0x28] sm:$0xff] }
 0x47c   : > { %2500 = vst.msk [vmem:[#allocation2 + $0x20] sm:$0xff] %vm2173_vm7, %v2496_v38  ;;  %vm3671_vm7 = vcmask 228520  }
 0x480   : > { %v2535_v37 = vpop.permute.xlu0 %2534 }
 0x481   : > { %2540 = vst.msk [vmem:[#allocation2 + $0x8] sm:$0xff] %vm2215_vm9, %v2535_v37  ;;  %v6734_v37 = vld [vmem:[%s9051_s3 + $0x58] sm:$0xff] }
 0x482   : > { %2579 = vst.msk [vmem:[#allocation2 + $0x8] sm:$0xff] %vm2255_vm10, %v2574_v42 }
 0x483   : > { %2620 = vst.msk [vmem:[#allocation2 + $0x8] sm:$0xff] %vm2297_vm11, %v2615_v23  ;;  %v6731_v23 = vld [vmem:[%s9051_s3 + $0x40] sm:$0xff] }
 0x488   : > { %v2537_v3 = vpop.permute.xlu1 %2536 }
 0x489   : > { %2541 = vst.msk [vmem:[#allocation2 + $0x20] sm:$0xff] %vm2215_vm9, %v2537_v3  ;;  %v2617_v62 = vpop.permute.xlu0 %2616  ;;  %vm3799_vm9 = vcmask 343320  }
 0x48a   : > { %2580 = vst.msk [vmem:[#allocation2 + $0x20] sm:$0xff] %vm2255_vm10, %v2576_v31  ;;  %v2623_v12 = vld [vmem:[#allocation2 + $0x8] sm:$0xff]  ;;  %vm3865_vm10 = vcmask 400720  }
 0x48b   : > { %2621 = vst.msk [vmem:[#allocation2 + $0x20] sm:$0xff] %vm2297_vm11, %v2617_v62  ;;  %v2628_v30 = vpack.c.bf16 %v2623_v12, %v2622_v60  ;;  %v6737_v60 = vld [vmem:[%s9051_s3 + $0x70] sm:$0xff]  ;;  %vm3901_vm11 = vcmask 400384  }
 0x48d   : > { %v2653_v48 = vunpack.c.l.b16 %v2628_v30  ;;  %v2654_v40 = vunpack.c.h.b16 %v2628_v30  ;;  %v6732_v30 = vld [vmem:[%s9051_s3 + $0x48] sm:$0xff] }
 0x490   : > { %v2334_v0 = vpop.permute.xlu1 %2333 }
 0x491   : > { %2339 = vst.msk [vmem:[#allocation2 + $0x18] sm:$0xff] %vm2337_vm12, %v2334_v0 }
 0x492   : > { %v2626_v44 = vld [vmem:[#allocation2 + $0x20] sm:$0xff] }
 0x498   : > { %v2625_v22 = vld [vmem:[#allocation2 + $0x18] sm:$0xff] }
 0x499   : > { %v2630_v33 = vpack.c.bf16 %v2626_v44, %v2625_v22  ;;  %v6738_v44 = vld [vmem:[%s9051_s3 + $0x78] sm:$0xff]  ;;  %v6735_v22 = vld [vmem:[%s9051_s3 + $0x60] sm:$0xff] }
 0x49b   : > { %v2655_v27 = vunpack.c.l.b16 %v2630_v33  ;;  %v2656_v24 = vunpack.c.h.b16 %v2630_v33  ;;  %v6736_v33 = vld [vmem:[%s9051_s3 + $0x68] sm:$0xff] }
 0x49d   : > { %v2657_v9 = vpack.c.b16 %v2655_v27, %v2653_v48  ;;  %v2658_v19 = vpack.c.b16 %v2656_v24, %v2654_v40  ;;  %v6739_v48 = vld [vmem:[%s9051_s3 + $0x80] sm:$0xff]  ;;  %v3300_v40 = vld [vmem:[%s9052_s4 + $0x10] sm:$0xff] }
 0x49f   : > { %2783 = vrot.lane.b32.xlu0 %v2658_v19, %s6985_s27  ;;  %2661 = vrot.lane.b32.xlu1 %v2658_v19, %s6984_s26 }
 0x4a0   : > { %2754 = vmatpush.bf16.msrb.mxu0 %v2658_v19  ;;  %2659 = vrot.lane.b32.xlu2 %v2657_v9, %s6984_s26 }
 0x4a1   : > { %2735 = vmatpush.bf16.msrb.mxu3 %v2657_v9 }
 0x4a3   : > { %5890 = vmatmul.msk.bf16.vlgmr.msrb.gmra.mxu0 %vm2024_vm15, %v6723_v58 }
 0x4a4   : > { %5888 = vmatmul.msk.bf16.vlgmr.msrb.gmra.mxu3 %vm2024_vm15, %v6723_v58 }
 0x4a7   : > { %2857 = vrot.lane.b32.xlu0 %v2658_v19, %s7003_s22  ;;  %2781 = vrot.lane.b32.xlu1 %v2657_v9, %s6985_s27  ;;  %s7012_s27 = smov 42  }
 0x4a8   : > { %2855 = vrot.lane.b32.xlu2 %v2657_v9, %s7003_s22 }
 0x4af   : > { %3005 = vrot.lane.b32.xlu0 %v2657_v9, %s7004_s23  ;;  %2932 = vrot.lane.b32.xlu1 %v2658_v19, %s7005_s24 }
 0x4b0   : > { %2930 = vrot.lane.b32.xlu2 %v2657_v9, %s7005_s24  ;;  %s7009_s24 = smov 21  }
 0x4b3   : > { %5891 = vmatmul.msk.bf16.gmra.mxu0 %vm2024_vm15, %v6724_v5 }
 0x4b4   : > { %5889 = vmatmul.msk.bf16.gmra.mxu3 %vm2024_vm15, %v6724_v5 }
 0x4b7   : > { %3080 = vrot.lane.b32.xlu0 %v2657_v9, %s9059_s28  ;;  %3007 = vrot.lane.b32.xlu1 %v2658_v19, %s7004_s23  ;;  %s7008_s23 = smov 7  }
 0x4b8   : > { %3082 = vrot.lane.b32.xlu2 %v2658_v19, %s9059_s28  ;;  %s6940_s28 = scalar_lea.hbm %s9057_s9, 2 }
 0x4bf   : > { %3238 = vrot.lane.b32.xlu0 %v2658_v19, %s6988_s14  ;;  %3159 = vrot.lane.b32.xlu1 %v2657_v9, %s6987_s29 }
 0x4c0   : > { %3161 = vrot.lane.b32.xlu2 %v2658_v19, %s6987_s29 }
 0x4c7   : > { %3236 = vrot.lane.b32.xlu0 %v2657_v9, %s6988_s14  ;;  %3240 = vrot.lane.b32.xlu1 %v3158_v21, %s6988_s14  ;;  %s7011_s14 = smov 35  }
 0x4c8   : > { %3163 = vrot.lane.b32.xlu2 %v3158_v21, %s6987_s29  ;;  %s7010_s29 = smov 28  }
 0x4cf   : > { %3304 = vperm.xlu1 %6917, %v3298_v59   ;;  %3314 = vperm.xlu0 %6919, %v3300_v40  }
 0x4d0   : > { %3309 = vperm.xlu2 %6918, %v3299_v1  }
 0x4d7   : > { %3319 = vperm.xlu1 %6917, %v3301_v36  }
 0x4fa   : > { %v2660_v28 = vpop.permute.xlu2 %2659 }
 0x502   : > { %v2856_v4 = vpop.permute.xlu2 %2855 }
 0x50a   : > { %v2931_v18 = vpop.permute.xlu2 %2930 }
 0x511   : > { %v2784_v46 = vpop.permute.xlu0 %2783  ;;  %v2662_v14 = vpop.permute.xlu1 %2661 }
 0x512   : > { %v2663_v55 = vsel %vm381_vm0, %v2660_v28, %v2662_v14  ;;  %2698 = vmatpush.bf16.msrb.mxu2 %v2662_v14  ;;  %v3083_v2 = vpop.permute.xlu2 %3082 }
 0x513   : > { %2679 = vmatpush.bf16.msrb.mxu1 %v2663_v55 }
 0x515   : > { %5878 = vmatmul.msk.bf16.vlgmr.msrb.gmra.mxu2 %vm2024_vm15, %v6725_v39 }
 0x516   : > { %2820 = vmatpush.bf16.msra.mxu2 %v2784_v46  ;;  %5876 = vmatmul.msk.bf16.vlgmr.msrb.gmra.mxu1 %vm2024_vm15, %v6725_v39 }
 0x519   : > { %v2858_v41 = vpop.permute.xlu0 %2857  ;;  %v2782_v20 = vpop.permute.xlu1 %2781 }
 0x51a   : > { %v2860_v7 = vsel %vm2859_vm1, %v2856_v4, %v2858_v41  ;;  %v2785_v49 = vsel %vm664_vm3, %v2782_v20, %v2784_v46  ;;  %2895 = vmatpush.bf16.msra.mxu0 %v2858_v41  ;;  %v3162_v8 = vpop.permute.xlu2 %3161  ;;  %vm3009_vm3 = vcmask 900096  }
 0x51b   : > { %2801 = vmatpush.bf16.msra.mxu1 %v2785_v49  ;;  %2876 = vmatpush.bf16.msra.mxu3 %v2860_v7 }
 0x51d   : > { %5922 = vmatmul.msk.bf16.vlgmr.msra.gmra.mxu0 %vm2024_vm15, %v6729_v15 }
 0x51e   : > { %5920 = vmatmul.msk.bf16.vlgmr.msra.gmra.mxu3 %vm2024_vm15, %v6729_v15 }
 0x520   : > { %v2756_v27 = vpop.f32.mrf.mxu0 }
 0x521   : > { %v2933_v31 = vpop.permute.xlu1 %2932  ;;  %v3006_v11 = vpop.permute.xlu0 %3005 }
 0x522   : > { %v2935_v57 = vsel %vm2934_vm2, %v2931_v18, %v2933_v31  ;;  %2970 = vmatpush.bf16.msrb.mxu2 %v2933_v31  ;;  %v3164_v35 = vpop.permute.xlu2 %3163 }
 0x523   : > { %2951 = vmatpush.bf16.msrb.mxu1 %v2935_v57  ;;  %v3166_v26 = vsel %vm1000_vm5, %v3162_v8, %v3164_v35 }
 0x525   : > { %5879 = vmatmul.msk.bf16.gmra.mxu2 %vm2024_vm15, %v6726_v50 }
 0x526   : > { %5877 = vmatmul.msk.bf16.gmra.mxu1 %vm2024_vm15, %v6726_v50 }
 0x527   : > { %v2737_v9 = vpop.f32.mrf.mxu3 }
 0x528   : > { %v8310_v13 = vpop.f32.mrf.mxu0 }
 0x529   : > { %v3008_v42 = vpop.permute.xlu1 %3007  ;;  %v3081_v45 = vpop.permute.xlu0 %3080 }
 0x52a   : > { %v3010_v10 = vsel %vm3009_vm3, %v3006_v11, %v3008_v42  ;;  %3045 = vmatpush.bf16.msrb.mxu0 %v3008_v42  ;;  %v3084_v53 = vsel %vm832_vm4, %v3081_v45, %v3083_v2  ;;  %vm3440_vm4 = vcmask 1044480  }
 0x52b   : > { %3026 = vmatpush.bf16.msrb.mxu3 %v3010_v10 }
 0x52d   : > { %5923 = vmatmul.msk.bf16.gmra.mxu0 %vm2024_vm15, %v6730_v51 }
 0x52e   : > { %3201 = vmatpush.bf16.msra.mxu0 %v3166_v26  ;;  %5921 = vmatmul.msk.bf16.gmra.mxu3 %vm2024_vm15, %v6730_v51 }
 0x52f   : > { %v2739_v32 = vpop.f32.mrf.mxu3 }
 0x530   : > { %v2761_v59 = vpop.f32.mrf.mxu0 }
 0x531   : > { %v3160_v38 = vpop.permute.xlu1 %3159  ;;  %v3239_v63 = vpop.permute.xlu0 %3238 }
 0x532   : > { %v3165_v29 = vsel %vm1000_vm5, %v3160_v38, %v3162_v8  ;;  %vm3473_vm5 = vcmask 56320  }
 0x533   : > { %3182 = vmatpush.bf16.msra.mxu3 %v3165_v29 }
 0x535   : > { %5906 = vmatmul.msk.bf16.vlgmr.msra.gmra.mxu2 %vm2024_vm15, %v6727_v25 }
 0x536   : > { %3119 = vmatpush.bf16.msra.mxu2 %v3083_v2  ;;  %5904 = vmatmul.msk.bf16.vlgmr.msra.gmra.mxu1 %vm2024_vm15, %v6727_v25 }
 0x537   : > { %3100 = vmatpush.bf16.msra.mxu1 %v3084_v53  ;;  %v2742_v1 = vpop.f32.mrf.mxu3 }
 0x538   : > { %v8325_v39 = vpop.f32.mrf.mxu0 }
 0x539   : > { %v3241_v3 = vpop.permute.xlu1 %3240  ;;  %v3237_v62 = vpop.permute.xlu0 %3236 }
 0x53a   : > { %v3243_v0 = vsel %vm1168_vm6, %v3239_v63, %v3241_v3  ;;  %v3242_v12 = vsel %vm1168_vm6, %v3237_v62, %v3239_v63  ;;  %vm3905_vm6 = vcmask 1040384  }
 0x53d   : > { %5954 = vmatmul.msk.bf16.vlgmr.msrb.gmra.mxu0 %vm2024_vm15, %v6733_v6 }
 0x53e   : > { %5952 = vmatmul.msk.bf16.vlgmr.msrb.gmra.mxu3 %vm2024_vm15, %v6733_v6 }
 0x53f   : > { %v8323_v4 = vpop.f32.mrf.mxu3 }
 0x545   : > { %5907 = vmatmul.msk.bf16.gmra.mxu2 %vm2024_vm15, %v6728_v16 }
 0x546   : > { %5905 = vmatmul.msk.bf16.gmra.mxu1 %vm2024_vm15, %v6728_v16 }
 0x54d   : > { %5955 = vmatmul.msk.bf16.gmra.mxu0 %vm2024_vm15, %v6734_v37 }
 0x54e   : > { %5953 = vmatmul.msk.bf16.gmra.mxu3 %vm2024_vm15, %v6734_v37 }
 0x555   : > { %5938 = vmatmul.msk.bf16.vlgmr.msrb.gmra.mxu2 %vm2024_vm15, %v6731_v23 }
 0x556   : > { %3278 = vmatpush.bf16.msrb.mxu2 %v3243_v0  ;;  %5936 = vmatmul.msk.bf16.vlgmr.msrb.gmra.mxu1 %vm2024_vm15, %v6731_v23 }
 0x557   : > { %3259 = vmatpush.bf16.msrb.mxu1 %v3242_v12 }
 0x55d   : > { %5986 = vmatmul.msk.bf16.vlgmr.msra.gmra.mxu0 %vm2024_vm15, %v6737_v60 }
 0x55e   : > { %5984 = vmatmul.msk.bf16.vlgmr.msra.gmra.mxu3 %vm2024_vm15, %v6737_v60 }
 0x565   : > { %5939 = vmatmul.msk.bf16.gmra.mxu2 %vm2024_vm15, %v6732_v30 }
 0x566   : > { %5937 = vmatmul.msk.bf16.gmra.mxu1 %vm2024_vm15, %v6732_v30 }
 0x56d   : > { %5987 = vmatmul.msk.bf16.gmra.mxu0 %vm2024_vm15, %v6738_v44 }
 0x56e   : > { %5985 = vmatmul.msk.bf16.gmra.mxu3 %vm2024_vm15, %v6738_v44 }
 0x575   : > { %5970 = vmatmul.msk.bf16.vlgmr.msra.gmra.mxu2 %vm2024_vm15, %v6735_v22 }
 0x576   : > { %5968 = vmatmul.msk.bf16.vlgmr.msra.gmra.mxu1 %vm2024_vm15, %v6735_v22 }
 0x585   : > { %5971 = vmatmul.msk.bf16.gmra.mxu2 %vm2024_vm15, %v6736_v33 }
 0x586   : > { %5969 = vmatmul.msk.bf16.gmra.mxu1 %vm2024_vm15, %v6736_v33 }
 0x593   : > { %v2681_v24 = vpop.f32.mrf.mxu1 }
 0x594   : > { %v2738_v18 = vadd.f32 %v2737_v9, %v2681_v24 }
 0x595   : > { %6002 = vmatmul.msk.bf16.vlgmr.msrb.gmra.mxu2 %vm2024_vm15, %v6739_v48 }
 0x596   : > { %6000 = vmatmul.msk.bf16.vlgmr.msrb.gmra.mxu1 %vm2024_vm15, %v6739_v48 }
 0x598   : > { %v2700_v19 = vpop.f32.mrf.mxu2 }
 0x599   : > { %v2757_v52 = vadd.f32 %v2756_v27, %v2700_v19 }
 0x59a   : > { %v2897_v15 = vpop.f32.mrf.mxu0 }
 0x59b   : > { %v2683_v47 = vpop.f32.mrf.mxu1 }
 0x59c   : > { %v2740_v19 = vadd.f32 %v2739_v32, %v2683_v47 }
 0x5a0   : > { %v8312_v56 = vpop.f32.mrf.mxu2 }
 0x5a1   : > { %v2878_v2 = vpop.f32.mrf.mxu3 }
 0x5a2   : > { %v2899_v57 = vpop.f32.mrf.mxu0 }
 0x5a3   : > { %v2686_v21 = vpop.f32.mrf.mxu1 }
 0x5a4   : > { %v2743_v49 = vadd.f32 %v2742_v1, %v2686_v21 }
 0x5a5   : > { %6003 = vmatmul.msk.bf16.gmra.mxu2 %vm2024_vm15, %v6740_v54 }
 0x5a6   : > { %6001 = vmatmul.msk.bf16.gmra.mxu1 %vm2024_vm15, %v6740_v54 }
 0x5a8   : > { %v2705_v36 = vpop.f32.mrf.mxu2 }
 0x5a9   : > { %v2762_v58 = vadd.f32 %v2761_v59, %v2705_v36  ;;  %v2880_v8 = vpop.f32.mrf.mxu3 }
 0x5aa   : > { %v8333_v51 = vpop.f32.mrf.mxu0 }
 0x5ab   : > { %v8319_v28 = vpop.f32.mrf.mxu1 }
 0x5b0   : > { %v8321_v5 = vpop.f32.mrf.mxu2 }
 0x5b1   : > { %v2883_v26 = vpop.f32.mrf.mxu3 }
 0x5b2   : > { %v8337_v53 = vpop.f32.mrf.mxu0 }
 0x5b3   : > { %v2803_v46 = vpop.f32.mrf.mxu1 }
 0x5b4   : > { %v2832_v14 = vadd.f32 %v2803_v46, %v2738_v18  ;;  %v2759_v18 = vadd.f32 %v8310_v13, %v8312_v56 }
 0x5b6   : > { %v2907_v9 = vadd.f32 %v2878_v2, %v2832_v14 }
 0x5b8   : > { %v2822_v55 = vpop.f32.mrf.mxu2 }
 0x5b9   : > { %v2833_v41 = vadd.f32 %v2822_v55, %v2757_v52  ;;  %v8335_v25 = vpop.f32.mrf.mxu3 }
 0x5ba   : > { %v3047_v37 = vpop.f32.mrf.mxu0 }
 0x5bb   : > { %v2805_v20 = vpop.f32.mrf.mxu1  ;;  %v2908_v1 = vadd.f32 %v2897_v15, %v2833_v41 }
 0x5bc   : > { %v2834_v59 = vadd.f32 %v2805_v20, %v2740_v19 }
 0x5be   : > { %v2909_v55 = vadd.f32 %v2880_v8, %v2834_v59 }
 0x5c0   : > { %v2824_v7 = vpop.f32.mrf.mxu2 }
 0x5c1   : > { %v3028_v16 = vpop.f32.mrf.mxu3 }
 0x5c2   : > { %v3049_v0 = vpop.f32.mrf.mxu0 }
 0x5c3   : > { %v2808_v31 = vpop.f32.mrf.mxu1 }
 0x5c4   : > { %v2836_v50 = vadd.f32 %v2808_v31, %v2743_v49 }
 0x5c8   : > { %v2827_v35 = vpop.f32.mrf.mxu2 }
 0x5c9   : > { %v8327_v11 = vadd.f32 %v2827_v35, %v2762_v58  ;;  %v3030_v3 = vpop.f32.mrf.mxu3  ;;  %v2835_v35 = vadd.f32 %v2824_v7, %v2759_v18  ;;  %v2745_v7 = vadd.f32 %v8323_v4, %v8319_v28 }
 0x5ca   : > { %v8345_v22 = vpop.f32.mrf.mxu0 }
 0x5cb   : > { %v8329_v42 = vpop.f32.mrf.mxu1  ;;  %v2910_v2 = vadd.f32 %v2899_v57, %v2835_v35 }
 0x5d0   : > { %v8331_v10 = vpop.f32.mrf.mxu2 }
 0x5d1   : > { %v3033_v30 = vpop.f32.mrf.mxu3 }
 0x5d2   : > { %v8349_v24 = vpop.f32.mrf.mxu0 }
 0x5d3   : > { %v2953_v38 = vpop.f32.mrf.mxu1 }
 0x5d4   : > { %v2982_v52 = vadd.f32 %v2953_v38, %v2907_v9 }
 0x5d6   : > { %v3057_v58 = vadd.f32 %v3028_v16, %v2982_v52  ;;  %v3305_v16 = vpop.permute.xlu1 %3304  ;;  %v2911_v52 = vadd.f32 %v2883_v26, %v2836_v50  ;;  %v2912_v50 = vadd.f32 %v8333_v51, %v8327_v11 }
 0x5d8   : > { %v2972_v29 = vpop.f32.mrf.mxu2 }
 0x5d9   : > { %v8347_v48 = vpop.f32.mrf.mxu3  ;;  %v2983_v46 = vadd.f32 %v2972_v29, %v2908_v1 }
 0x5da   : > { %v3203_v31 = vpop.f32.mrf.mxu0 }
 0x5db   : > { %v2955_v45 = vpop.f32.mrf.mxu1  ;;  %v3058_v47 = vadd.f32 %v3047_v37, %v2983_v46 }
 0x5dc   : > { %v2984_v61 = vadd.f32 %v2955_v45, %v2909_v55 }
 0x5de   : > { %v3059_v15 = vadd.f32 %v3030_v3, %v2984_v61  ;;  %v2838_v61 = vadd.f32 %v8329_v42, %v2745_v7 }
 0x5e0   : > { %v2974_v6 = vpop.f32.mrf.mxu2  ;;  %v2913_v1 = vadd.f32 %v8335_v25, %v2838_v61 }
 0x5e1   : > { %v3184_v21 = vpop.f32.mrf.mxu3  ;;  %v2985_v19 = vadd.f32 %v2974_v6, %v2910_v2 }
 0x5e2   : > { %v3205_v45 = vpop.f32.mrf.mxu0 }
 0x5e3   : > { %v2958_v63 = vpop.f32.mrf.mxu1 }
 0x5e4   : > { %v2986_v29 = vadd.f32 %v2958_v63, %v2911_v52 }
 0x5e6   : > { %v3061_v4 = vadd.f32 %v3033_v30, %v2986_v29 }
 0x5e8   : > { %v8339_v23 = vpop.f32.mrf.mxu2 }
 0x5e9   : > { %v3186_v20 = vpop.f32.mrf.mxu3  ;;  %v2987_v42 = vadd.f32 %v8339_v23, %v2912_v50 }
 0x5ea   : > { %v3208_v55 = vpop.f32.mrf.mxu0 }
 0x5eb   : > { %v8341_v62 = vpop.f32.mrf.mxu1 }
 0x5ec   : > { %v2988_v30 = vadd.f32 %v8341_v62, %v2913_v1 }
 0x5ee   : > { %v3063_v35 = vadd.f32 %v8347_v48, %v2988_v30 }
 0x5f0   : > { %v8343_v12 = vpop.f32.mrf.mxu2 }
 0x5f3   : > { %v3102_v60 = vpop.f32.mrf.mxu1 }
 0x5f4   : > { %v3131_v49 = vadd.f32 %v3102_v60, %v3057_v58  ;;  %v3060_v60 = vadd.f32 %v3049_v0, %v2985_v19  ;;  %v2764_v0 = vadd.f32 %v8325_v39, %v8321_v5  ;;  %v3062_v5 = vadd.f32 %v8345_v22, %v2987_v42  ;;  %v3210_v19 = vpop.f32.mrf.mxu0 }
 0x5f6   : > { %v3213_v32 = vadd.f32 %v3184_v21, %v3131_v49  ;;  %v3189_v21 = vpop.f32.mrf.mxu3  ;;  %v2839_v11 = vadd.f32 %v8331_v10, %v2764_v0 }
 0x5f8   : > { %v3121_v44 = vpop.f32.mrf.mxu2  ;;  %v2914_v25 = vadd.f32 %v8337_v53, %v2839_v11  ;;  %v5777_v11 = vsel %vm7926_vm14, 1.0, %v6993_v17  ;;  %vm3605_vm14 = vcmask 171120  }
 0x5f9   : > { %v3132_v38 = vadd.f32 %v3121_v44, %v3058_v47  ;;  %6004 = vmatpush.msk.msrb.mxu3 %vm3440_vm4, %v5777_v11  ;;  %6016 = vmatpush.msk.msra.mxu1 %vm3440_vm4, %v5777_v11 }
 0x5fa   : > { %v2989_v62 = vadd.f32 %v8343_v12, %v2914_v25  ;;  %6010 = vmatpush.msk.msrb.mxu0 %vm3440_vm4, %v5777_v11  ;;  %6022 = vmatpush.msk.msra.mxu2 %vm3440_vm4, %v5777_v11 }
 0x5fb   : > { %v3104_v33 = vpop.f32.mrf.mxu1  ;;  %v3214_v8 = vadd.f32 %v3203_v31, %v3132_v38  ;;  %v3315_v31 = vpop.permute.xlu0 %3314 }
 0x5fc   : > { %v3133_v13 = vadd.f32 %v3104_v33, %v3059_v15  ;;  %v3310_v33 = vpop.permute.xlu2 %3309 }
 0x5fe   : > { %v3215_v3 = vadd.f32 %v3186_v20, %v3133_v13  ;;  %v3191_v20 = vpop.f32.mrf.mxu3 }
 0x600   : > { %v3123_v40 = vpop.f32.mrf.mxu2 }
 0x601   : > { %v3134_v26 = vadd.f32 %v3123_v40, %v3060_v60 }
 0x603   : > { %v3107_v27 = vpop.f32.mrf.mxu1  ;;  %v3216_v51 = vadd.f32 %v3205_v45, %v3134_v26 }
 0x604   : > { %v3135_v58 = vadd.f32 %v3107_v27, %v3061_v4 }
 0x606   : > { %v3217_v23 = vadd.f32 %v3189_v21, %v3135_v58 }
 0x608   : > { %v8351_v54 = vpop.f32.mrf.mxu2 }
 0x609   : > { %v3136_v27 = vadd.f32 %v8351_v54, %v3062_v5  ;;  %v3064_v54 = vadd.f32 %v8349_v24, %v2989_v62 }
 0x60b   : > { %v8353_v36 = vpop.f32.mrf.mxu1  ;;  %v3218_v38 = vadd.f32 %v3208_v55, %v3136_v27 }
 0x60c   : > { %v3137_v22 = vadd.f32 %v8353_v36, %v3063_v35  ;;  %v3320_v36 = vpop.permute.xlu1 %3319 }
 0x610   : > { %v8357_v14 = vpop.f32.mrf.mxu2 }
 0x611   : > { %v3138_v48 = vadd.f32 %v8357_v14, %v3064_v54 }
 0x613   : > { %v3261_v41 = vpop.f32.mrf.mxu1  ;;  %v3220_v7 = vadd.f32 %v3210_v19, %v3138_v48 }
 0x614   : > { %v3290_v9 = vadd.f32 %v3261_v41, %v3213_v32 }
 0x616   : > { %v8359_v56 = vadd.f32 %v3305_v16, %v3290_v9  ;;  %v3219_v9 = vadd.f32 %v3191_v20, %v3137_v22 }
 0x618   : > { %v3330_v37 = vmax.f32 %v8359_v56, 0.0  ;;  %v3280_v57 = vpop.f32.mrf.mxu2 }
 0x619   : > { %v3291_v44 = vadd.f32 %v3280_v57, %v3214_v8 }
 0x61a   : > { %3346 = vrot.lane.b32.xlu2 %v3330_v37, %s6984_s26 }
 0x61b   : > { %v8370_v6 = vadd.f32 %v3305_v16, %v3291_v44  ;;  %v3263_v28 = vpop.f32.mrf.mxu1 }
 0x61c   : > { %v3292_v63 = vadd.f32 %v3263_v28, %v3215_v3 }
 0x61d   : > { %v3331_v59 = vmax.f32 %v8370_v6, 0.0 }
 0x61e   : > { %v3324_v18 = vadd.f32 %v3310_v33, %v3292_v63 }
 0x61f   : > { %3348 = vrot.lane.b32.xlu1 %v3331_v59, %s6984_s26 }
 0x620   : > { %v3332_v40 = vmax.f32 %v3324_v18, 0.0  ;;  %v3282_v46 = vpop.f32.mrf.mxu2 }
 0x621   : > { %v3293_v39 = vadd.f32 %v3282_v46, %v3216_v51  ;;  %v9083_v51 = vmov 1.0  }
 0x622   : > { %3350 = vrot.lane.b32.xlu2 %v3332_v40, %s6984_s26  ;;  %6005 = vmatpush.msk.msrb.mxu3 %vm7922_vm13, %v9083_v51 }
 0x623   : > { %v3325_v49 = vadd.f32 %v3310_v33, %v3293_v39  ;;  %v3266_v10 = vpop.f32.mrf.mxu1  ;;  %6017 = vmatpush.msk.msra.mxu1 %vm7922_vm13, %v9083_v51  ;;  %6011 = vmatpush.msk.msrb.mxu0 %vm7922_vm13, %v9083_v51 }
 0x624   : > { %v3294_v47 = vadd.f32 %v3266_v10, %v3217_v23  ;;  %6028 = vmatpush.msk.msra.mxu3 %vm3440_vm4, %v5777_v11  ;;  %6023 = vmatpush.msk.msra.mxu2 %vm7922_vm13, %v9083_v51 }
 0x625   : > { %v3333_v32 = vmax.f32 %v3325_v49, 0.0  ;;  %6034 = vmatpush.msk.msra.mxu0 %vm3440_vm4, %v5777_v11  ;;  %6040 = vmatpush.msk.msrb.mxu1 %vm3440_vm4, %v5777_v11 }
 0x626   : > { %v3326_v2 = vadd.f32 %v3315_v31, %v3294_v47  ;;  %6029 = vmatpush.msk.msra.mxu3 %vm7922_vm13, %v9083_v51 }
 0x627   : > { %3352 = vrot.lane.b32.xlu0 %v3333_v32, %s6984_s26  ;;  %6035 = vmatpush.msk.msra.mxu0 %vm7922_vm13, %v9083_v51 }
 0x628   : > { %v3334_v41 = vmax.f32 %v3326_v2, 0.0  ;;  %v3285_v53 = vpop.f32.mrf.mxu2  ;;  %6041 = vmatpush.msk.msrb.mxu1 %vm7922_vm13, %v9083_v51  ;;  %vm3539_vm13 = vcmask 113720  }
 0x629   : > { %v3295_v15 = vadd.f32 %v3285_v53, %v3218_v38 }
 0x62a   : > { %3354 = vrot.lane.b32.xlu1 %v3334_v41, %s6984_s26 }
 0x62b   : > { %v3327_v16 = vadd.f32 %v3315_v31, %v3295_v15  ;;  %v3268_v12 = vpop.f32.mrf.mxu1 }
 0x62c   : > { %v3296_v52 = vadd.f32 %v3268_v12, %v3219_v9 }
 0x62d   : > { %v3335_v13 = vmax.f32 %v3327_v16, 0.0 }
 0x62e   : > { %v3328_v8 = vadd.f32 %v3320_v36, %v3296_v52 }
 0x62f   : > { %3356 = vrot.lane.b32.xlu2 %v3335_v13, %s6984_s26 }
 0x630   : > { %v3336_v29 = vmax.f32 %v3328_v8, 0.0  ;;  %v3287_v45 = vpop.f32.mrf.mxu2 }
 0x631   : > { %v3297_v57 = vadd.f32 %v3287_v45, %v3220_v7 }
 0x632   : > { %3358 = vrot.lane.b32.xlu0 %v3336_v29, %s6984_s26 }
 0x633   : > { %v3329_v24 = vadd.f32 %v3320_v36, %v3297_v57 }
 0x635   : > { %v3337_v60 = vmax.f32 %v3329_v24, 0.0 }
 0x637   : > { %3360 = vrot.lane.b32.xlu1 %v3337_v60, %s6984_s26  ;;  %s9084_s26 = smov 64  }
 0x674   : > { %v3347_v14 = vpop.permute.xlu2 %3346 }
 0x67c   : > { %v3351_v26 = vpop.permute.xlu2 %3350 }
 0x689   : > { %v3357_v33 = vpop.permute.xlu2 %3356 }
 0x691   : > { %v3349_v44 = vpop.permute.xlu1 %3348 }
 0x692   : > { %v3362_v61 = vsel %vm381_vm0, %v3347_v14, %v3349_v44  ;;  %v8395_v3 = vmax.f32 %v3331_v59, %v3349_v44 }
 0x693   : > { %v3374_v50 = vmax.f32 %v3330_v37, %v3362_v61  ;;  %v8410_v37 = vmax.f32 %v3335_v13, %v3357_v33 }
 0x694   : > { %3392 = vrot.lane.b32.xlu0 %v8395_v3, %s7003_s22 }
 0x695   : > { %3390 = vrot.lane.b32.xlu2 %v3374_v50, %s7003_s22 }
 0x699   : > { %v3353_v6 = vpop.permute.xlu0 %3352 }
 0x69a   : > { %v3363_v28 = vsel %vm381_vm0, %v3351_v26, %v3353_v6  ;;  %v8403_v4 = vmax.f32 %v3333_v32, %v3353_v6 }
 0x69b   : > { %v3376_v63 = vmax.f32 %v3332_v40, %v3363_v28 }
 0x69c   : > { %v3355_v0 = vpop.permute.xlu1 %3354 }
 0x69d   : > { %v3364_v42 = vsel %vm381_vm0, %v3355_v0, %v3357_v33  ;;  %3396 = vrot.lane.b32.xlu2 %v8403_v4, %s7003_s22  ;;  %3394 = vrot.lane.b32.xlu1 %v3376_v63, %s7003_s22 }
 0x69e   : > { %v3378_v56 = vmax.f32 %v3334_v41, %v3364_v42 }
 0x6a0   : > { %3398 = vrot.lane.b32.xlu0 %v3378_v56, %s7003_s22 }
 0x6a4   : > { %v3359_v21 = vpop.permute.xlu0 %3358 }
 0x6a5   : > { %3400 = vrot.lane.b32.xlu1 %v8410_v37, %s7003_s22 }
 0x6a9   : > { %v3361_v59 = vpop.permute.xlu1 %3360 }
 0x6aa   : > { %v3365_v1 = vsel %vm381_vm0, %v3359_v21, %v3361_v59  ;;  %v8415_v58 = vmax.f32 %v3337_v60, %v3361_v59  ;;  %vm3427_vm0 = vcmask 105472  }
 0x6ab   : > { %v3380_v18 = vmax.f32 %v3336_v29, %v3365_v1 }
 0x6ac   : > { %3404 = vrot.lane.b32.xlu0 %v8415_v58, %s7003_s22 }
 0x6ad   : > { %3402 = vrot.lane.b32.xlu2 %v3380_v18, %s7003_s22  ;;  %s9085_s22 = smov 96  }
 0x6ef   : > { %v3391_v17 = vpop.permute.xlu2 %3390 }
 0x6f7   : > { %v3397_v46 = vpop.permute.xlu2 %3396 }
 0x6f8   : > { %v3422_v62 = vmax.f32 %v8403_v4, %v3397_v46 }
 0x706   : > { %v3393_v43 = vpop.permute.xlu0 %3392 }
 0x707   : > { %v3407_v30 = vsel %vm2859_vm1, %v3391_v17, %v3393_v43  ;;  %v3403_v49 = vpop.permute.xlu2 %3402  ;;  %v3420_v47 = vmax.f32 %v8395_v3, %v3393_v43 }
 0x708   : > { %v3419_v40 = vmax.f32 %v3374_v50, %v3407_v30 }
 0x70a   : > { %3544 = vrot.lane.b32.xlu2 %v3419_v40, %s9084_s26  ;;  %3478 = vrot.lane.b32.xlu1 %v3419_v40, %s9085_s22 }
 0x70b   : > { %6006 = vmatmul.msk.f32.vlgmr.msrb.gmra.mxu3 %vm3427_vm0, %v3419_v40 }
 0x70f   : > { %v3395_v5 = vpop.permute.xlu1 %3394 }
 0x710   : > { %v3408_v39 = vsel %vm2859_vm1, %v3395_v5, %v3397_v46  ;;  %v3879_v46 = vld [vmem:[%s9053_s5 + $0x18] sm:$0x1]  ;;  %v6065_v5 = vld [vmem:[%s9053_s5 + $0x34] sm:$0x1] }
 0x711   : > { %v3421_v23 = vmax.f32 %v3376_v63, %v3408_v39  ;;  %v6085_v39 = vld [vmem:[%s9053_s5 + $0x50] sm:$0x1] }
 0x712   : > { %v3399_v34 = vpop.permute.xlu0 %3398 }
 0x713   : > { %3546 = vrot.lane.b32.xlu1 %v3421_v23, %s9084_s26  ;;  %3480 = vrot.lane.b32.xlu0 %v3421_v23, %s9085_s22 }
 0x714   : > { %6007 = vmatmul.msk.f32.gmra.mxu3 %vm3427_vm0, %v3421_v23 }
 0x717   : > { %v3401_v55 = vpop.permute.xlu1 %3400 }
 0x718   : > { %v3409_v25 = vsel %vm2859_vm1, %v3399_v34, %v3401_v55  ;;  %v3424_v32 = vmax.f32 %v8410_v37, %v3401_v55  ;;  %v3948_v34 = vunpack.c.l.b16 %v6065_v5  ;;  %v3999_v55 = vunpack.c.l.b16 %v6085_v39 }
 0x719   : > { %v3423_v27 = vmax.f32 %v3378_v56, %v3409_v25  ;;  %v6165_v25 = vld [vmem:[%s9053_s5 + $0xc0] sm:$0x1] }
 0x71b   : > { %3482 = vrot.lane.b32.xlu2 %v3423_v27, %s9085_s22  ;;  %3548 = vrot.lane.b32.xlu0 %v3423_v27, %s9084_s26 }
 0x71c   : > { %6008 = vmatmul.msk.f32.gmra.mxu3 %vm3427_vm0, %v3423_v27 }
 0x71e   : > { %v3405_v10 = vpop.permute.xlu0 %3404 }
 0x71f   : > { %v3410_v31 = vsel %vm2859_vm1, %v3403_v49, %v3405_v10  ;;  %v3426_v22 = vmax.f32 %v8415_v58, %v3405_v10  ;;  %v4203_v10 = vunpack.c.l.b16 %v6165_v25  ;;  %v6225_v25 = vld [vmem:[%s9053_s5 + $0x114] sm:$0x1] }
 0x720   : > { %v3425_v35 = vmax.f32 %v3380_v18, %v3410_v31 }
 0x722   : > { %3484 = vrot.lane.b32.xlu1 %v3425_v35, %s9085_s22 }
 0x723   : > { %3610 = vrot.lane.b32.xlu2 %v3419_v40, %s7006_s17  ;;  %3550 = vrot.lane.b32.xlu0 %v3425_v35, %s9084_s26 }
 0x724   : > { %6009 = vmatmul.msk.f32.gmra.mxu3 %vm3427_vm0, %v3425_v35 }
 0x72a   : > { %3738 = vrot.lane.b32.xlu1 %v3420_v47, %s9085_s22 }
 0x72b   : > { %3804 = vrot.lane.b32.xlu2 %v3420_v47, %s9084_s26  ;;  %3612 = vrot.lane.b32.xlu0 %v3421_v23, %s7006_s17  ;;  %v3893_v23 = vunpack.c.l.b16 %v3879_v46  ;;  %v6771_v46 = vld [vmem:[%s9053_s5 + $0x118] sm:$0xff] }
 0x72c   : > { %6030 = vmatmul.msk.f32.vlgmr.msra.gmra.mxu3 %vm3427_vm0, %v3420_v47  ;;  %v4003_v47 = vpack.c.b16 %v3999_v55, %v3999_v55 }
 0x72d   : > { %v3897_v31 = vpack.c.b16 %v3893_v23, %v3893_v23  ;;  %v6185_v23 = vld [vmem:[%s9053_s5 + $0xdc] sm:$0x1] }
 0x732   : > { %3740 = vrot.lane.b32.xlu1 %v3422_v62, %s9085_s22 }
 0x733   : > { %3806 = vrot.lane.b32.xlu2 %v3422_v62, %s9084_s26  ;;  %3614 = vrot.lane.b32.xlu0 %v3423_v27, %s7006_s17  ;;  %v9086_v27 = vmov 0  }
 0x734   : > { %6031 = vmatmul.msk.f32.gmra.mxu3 %vm3427_vm0, %v3422_v62  ;;  %v8521_v49 = vsel %vm3905_vm6, 65535, %v9086_v27  ;;  %v4207_v62 = vpack.c.b16 %v4203_v10, %v4203_v10  ;;  %v6325_v27 = vld [vmem:[%s9053_s5 + $0x1a0] sm:$0x1]  ;;  %v4254_v10 = vunpack.c.l.b16 %v6185_v23 }
 0x73a   : > { %3742 = vrot.lane.b32.xlu1 %v3424_v32, %s9085_s22 }
 0x73b   : > { %3808 = vrot.lane.b32.xlu2 %v3424_v32, %s9084_s26  ;;  %3616 = vrot.lane.b32.xlu0 %v3425_v35, %s7006_s17  ;;  %v3952_v35 = vpack.c.b16 %v3948_v34, %v3948_v34  ;;  %v6205_v34 = vld [vmem:[%s9053_s5 + $0xf8] sm:$0x1] }
 0x73c   : > { %6032 = vmatmul.msk.f32.gmra.mxu3 %vm3427_vm0, %v3424_v32  ;;  %v3909_v32 = vand.u32 %v8521_v49, %v3897_v31  ;;  %v4305_v31 = vunpack.c.l.b16 %v6205_v34 }
 0x73e   : > { %3915 = vmatpush.bf16.msrb.mxu2 %v3909_v32  ;;  %v4309_v32 = vpack.c.b16 %v4305_v31, %v4305_v31  ;;  %v6776_v31 = vld [vmem:[%s9053_s5 + $0x144] sm:$0xff] }
 0x742   : > { %3744 = vrot.lane.b32.xlu1 %v3426_v22, %s9085_s22 }
 0x743   : > { %3810 = vrot.lane.b32.xlu2 %v3426_v22, %s9084_s26 }
 0x744   : > { %6033 = vmatmul.msk.f32.gmra.mxu3 %vm3427_vm0, %v3426_v22  ;;  %v3960_v22 = vand.u32 %v3952_v35, %v8521_v49  ;;  %v4356_v35 = vunpack.c.l.b16 %v6225_v25 }
 0x746   : > { %3966 = vmatpush.bf16.msrb.mxu3 %v3960_v22 }
 0x764   : > { %v3545_v2 = vpop.permute.xlu2 %3544 }
 0x765   : > { %6018 = vmatmul.msk.f32.vlgmr.msra.gmra.mxu1 %vm3427_vm0, %v3545_v2  ;;  %v4011_v2 = vand.u32 %v4003_v47, %v8521_v49  ;;  %v4611_v47 = vunpack.c.l.b16 %v6325_v27 }
 0x775   : > { %v3483_v38 = vpop.permute.xlu2 %3482 }
 0x77c   : > { %v3479_v20 = vpop.permute.xlu1 %3478 }
 0x77d   : > { %6012 = vmatmul.msk.f32.vlgmr.msrb.gmra.mxu0 %vm3427_vm0, %v3479_v20  ;;  %v3611_v41 = vpop.permute.xlu2 %3610 }
 0x77e   : > { %6024 = vmatmul.msk.f32.vlgmr.msra.gmra.mxu2 %vm3427_vm0, %v3611_v41  ;;  %4017 = vmatpush.bf16.msrb.mxu0 %v4011_v2  ;;  %v4360_v2 = vpack.c.b16 %v4356_v35, %v4356_v35  ;;  %v6779_v35 = vld [vmem:[%s9053_s5 + $0x160] sm:$0xff] }
 0x785   : > { %v3547_v53 = vpop.permute.xlu1 %3546  ;;  %v3481_v54 = vpop.permute.xlu0 %3480 }
 0x786   : > { %6013 = vmatmul.msk.f32.gmra.mxu0 %vm3427_vm0, %v3481_v54  ;;  %6019 = vmatmul.msk.f32.gmra.mxu1 %vm3427_vm0, %v3547_v53  ;;  %v3805_v19 = vpop.permute.xlu2 %3804  ;;  %v6743_v54 = vld [vmem:[%s9053_s5 + $0x10] sm:$0xff] }
 0x787   : > { %3916 = vmatpush.bf16.msrb.mxu2 %v6743_v54 }
 0x78d   : > { %v3549_v15 = vpop.permute.xlu0 %3548 }
 0x78e   : > { %v3461_v9 = vpop.f32.mrf.mxu3  ;;  %6014 = vmatmul.msk.f32.gmra.mxu0 %vm3427_vm0, %v3483_v38  ;;  %6020 = vmatmul.msk.f32.gmra.mxu1 %vm3427_vm0, %v3549_v15  ;;  %v3807_v8 = vpop.permute.xlu2 %3806  ;;  %v4215_v38 = vand.u32 %v4207_v62, %v8521_v49  ;;  %v6746_v15 = vld [vmem:[%s9053_s5 + $0x2c] sm:$0xff]  ;;  %v4258_v62 = vpack.c.b16 %v4254_v10, %v4254_v10 }
 0x78f   : > { %3474 = vst.msk [vmem:[#allocation3] sm:$0xff] %vm3473_vm5, %v3461_v9  ;;  %v6749_v9 = vld [vmem:[%s9053_s5 + $0x48] sm:$0xff]  ;;  %3967 = vmatpush.bf16.msrb.mxu3 %v6746_v15 }
 0x790   : > { %4221 = vmatpush.bf16.msra.mxu1 %v4215_v38  ;;  %4018 = vmatpush.bf16.msrb.mxu0 %v6749_v9  ;;  %v4615_v38 = vpack.c.b16 %v4611_v47, %v4611_v47  ;;  %v6782_v47 = vld [vmem:[%s9053_s5 + $0x17c] sm:$0xff] }
 0x794   : > { %v3485_v48 = vpop.permute.xlu1 %3484 }
 0x795   : > { %v3551_v16 = vpop.permute.xlu0 %3550 }
 0x796   : > { %6015 = vmatmul.msk.f32.gmra.mxu0 %vm3427_vm0, %v3485_v48  ;;  %6021 = vmatmul.msk.f32.gmra.mxu1 %vm3427_vm0, %v3551_v16  ;;  %v3809_v57 = vpop.permute.xlu2 %3808  ;;  %v6761_v48 = vld [vmem:[%s9053_s5 + $0xb8] sm:$0xff]  ;;  %v6742_v16 = vld [vmem:[%s9053_s5 + $0x8] sm:$0xff] }
 0x797   : > { %v3464_v12 = vpop.f32.mrf.mxu3  ;;  %4222 = vmatpush.bf16.msra.mxu1 %v6761_v48  ;;  %3917 = vmatpush.bf16.msrb.mxu2 %v6742_v16 }
 0x798   : > { %3475 = vst.msk [vmem:[#allocation3 + $0x8] sm:$0xff] %vm3473_vm5, %v3464_v12  ;;  %v6745_v12 = vld [vmem:[%s9053_s5 + $0x24] sm:$0xff] }
 0x799   : > { %3968 = vmatpush.bf16.msrb.mxu3 %v6745_v12  ;;  %v4266_v12 = vand.u32 %v4258_v62, %v8521_v49  ;;  %v6797_v62 = vld [vmem:[%s9053_s5 + $0x208] sm:$0xff] }
 0x79c   : > { %v3739_v52 = vpop.permute.xlu1 %3738 }
 0x79d   : > { %v3613_v36 = vpop.permute.xlu0 %3612 }
 0x79e   : > { %6025 = vmatmul.msk.f32.gmra.mxu2 %vm3427_vm0, %v3613_v36  ;;  %6036 = vmatmul.msk.f32.vlgmr.msra.gmra.mxu0 %vm3427_vm0, %v3739_v52  ;;  %v3811_v44 = vpop.permute.xlu2 %3810  ;;  %v6760_v52 = vld [vmem:[%s9053_s5 + $0xb0] sm:$0xff] }
 0x79f   : > { %v3467_v13 = vpop.f32.mrf.mxu3  ;;  %6042 = vmatmul.msk.f32.vlgmr.msrb.gmra.mxu1 %vm3427_vm0, %v3805_v19  ;;  %v6748_v19 = vld [vmem:[%s9053_s5 + $0x40] sm:$0xff] }
 0x7a0   : > { %3476 = vst.msk [vmem:[#allocation3 + $0x10] sm:$0xff] %vm3473_vm5, %v3467_v13  ;;  %4019 = vmatpush.bf16.msrb.mxu0 %v6748_v19  ;;  %4223 = vmatpush.bf16.msra.mxu1 %v6760_v52  ;;  %v6105_v13 = vld [vmem:[%s9053_s5 + $0x6c] sm:$0x1]  ;;  %v4317_v19 = vand.u32 %v4309_v32, %v8521_v49  ;;  %v6345_v32 = vld [vmem:[%s9053_s5 + $0x1bc] sm:$0x1] }
 0x7a4   : > { %v3741_v7 = vpop.permute.xlu1 %3740 }
 0x7a5   : > { %v3615_v29 = vpop.permute.xlu0 %3614 }
 0x7a6   : > { %6026 = vmatmul.msk.f32.gmra.mxu2 %vm3427_vm0, %v3615_v29  ;;  %6037 = vmatmul.msk.f32.gmra.mxu0 %vm3427_vm0, %v3741_v7  ;;  %v6741_v7 = vld [vmem:[%s9053_s5] sm:$0xff] }
 0x7a7   : > { %v3470_v45 = vpop.f32.mrf.mxu3  ;;  %6043 = vmatmul.msk.f32.gmra.mxu1 %vm3427_vm0, %v3807_v8  ;;  %v6125_v8 = vld [vmem:[%s9053_s5 + $0x88] sm:$0x1]  ;;  %v6744_v29 = vld [vmem:[%s9053_s5 + $0x1c] sm:$0xff]  ;;  %3918 = vmatpush.bf16.msrb.mxu2 %v6741_v7  ;;  %v6764_v7 = vld [vmem:[%s9053_s5 + $0xd4] sm:$0xff] }
 0x7a8   : > { %3477 = vst.msk [vmem:[#allocation3 + $0x18] sm:$0xff] %vm3473_vm5, %v3470_v45  ;;  %v6747_v45 = vld [vmem:[%s9053_s5 + $0x38] sm:$0xff]  ;;  %3969 = vmatpush.bf16.msrb.mxu3 %v6744_v29  ;;  %v6767_v29 = vld [vmem:[%s9053_s5 + $0xf0] sm:$0xff] }
 0x7a9   : > { %4020 = vmatpush.bf16.msrb.mxu0 %v6747_v45  ;;  %v6770_v45 = vld [vmem:[%s9053_s5 + $0x10c] sm:$0xff] }
 0x7ac   : > { %v3743_v24 = vpop.permute.xlu1 %3742 }
 0x7ad   : > { %v3617_v60 = vpop.permute.xlu0 %3616 }
 0x7ae   : > { %6027 = vmatmul.msk.f32.gmra.mxu2 %vm3427_vm0, %v3617_v60  ;;  %6038 = vmatmul.msk.f32.gmra.mxu0 %vm3427_vm0, %v3743_v24  ;;  %v4101_v24 = vunpack.c.l.b16 %v6125_v8  ;;  %v6759_v60 = vld [vmem:[%s9053_s5 + $0xa8] sm:$0xff]  ;;  %v4623_v8 = vand.u32 %v4615_v38, %v8521_v49  ;;  %v6385_v38 = vld [vmem:[%s9053_s5 + $0x1f4] sm:$0x1] }
 0x7af   : > { %6044 = vmatmul.msk.f32.gmra.mxu1 %vm3427_vm0, %v3809_v57  ;;  %v3705_v26 = vpop.f32.mrf.mxu3  ;;  %v4050_v57 = vunpack.c.l.b16 %v6105_v13  ;;  %v4368_v13 = vand.u32 %v4360_v2, %v8521_v49 }
 0x7b0   : > { %4224 = vmatpush.bf16.msra.mxu1 %v6759_v60  ;;  %v6265_v60 = vld [vmem:[%s9053_s5 + $0x14c] sm:$0x1] }
 0x7b4   : > { %v3745_v14 = vpop.permute.xlu1 %3744 }
 0x7b6   : > { %6039 = vmatmul.msk.f32.gmra.mxu0 %vm3427_vm0, %v3745_v14  ;;  %v6145_v14 = vld [vmem:[%s9053_s5 + $0xa4] sm:$0x1] }
 0x7b7   : > { %6045 = vmatmul.msk.f32.gmra.mxu1 %vm3427_vm0, %v3811_v44  ;;  %v3708_v33 = vpop.f32.mrf.mxu3  ;;  %v6245_v44 = vld [vmem:[%s9053_s5 + $0x130] sm:$0x1] }
 0x7bf   : > { %v3711_v21 = vpop.f32.mrf.mxu3 }
 0x7c7   : > { %v3714_v18 = vpop.f32.mrf.mxu3 }
 0x7e2   : > { %v3577_v61 = vpop.f32.mrf.mxu1 }
 0x7e3   : > { %3593 = vrot.lane.b32.xlu1 %v3577_v61, %s7007_s21  ;;  %v4054_v61 = vpack.c.b16 %v4050_v57, %v4050_v57 }
 0x7fa   : > { %v3511_v3 = vpop.f32.mrf.mxu0 }
 0x7fb   : > { %3527 = vrot.lane.b32.xlu0 %v3511_v3, %s7008_s23  ;;  %v4105_v3 = vpack.c.b16 %v4101_v24, %v4101_v24  ;;  %v6785_v24 = vld [vmem:[%s9053_s5 + $0x198] sm:$0xff] }
 0x801   : > { %v3643_v50 = vpop.f32.mrf.mxu2 }
 0x802   : > { %3659 = vrot.lane.b32.xlu2 %v3643_v50, %s7009_s24  ;;  %v4152_v50 = vunpack.c.l.b16 %v6145_v14  ;;  %v6285_v14 = vld [vmem:[%s9053_s5 + $0x168] sm:$0x1] }
 0x803   : > { %v3514_v6 = vpop.f32.mrf.mxu0  ;;  %3721 = vrot.lane.b32.xlu0 %v3705_v26, %s7010_s29  ;;  %v3580_v28 = vpop.f32.mrf.mxu1  ;;  %v4407_v26 = vunpack.c.l.b16 %v6245_v44 }
 0x80b   : > { %3529 = vrot.lane.b32.xlu0 %v3514_v6, %s7008_s23  ;;  %v3517_v4 = vpop.f32.mrf.mxu0  ;;  %v3583_v63 = vpop.f32.mrf.mxu1  ;;  %v4062_v6 = vand.u32 %v4054_v61, %v8521_v49  ;;  %v6305_v61 = vld [vmem:[%s9053_s5 + $0x184] sm:$0x1] }
 0x80d   : > { %4068 = vmatpush.bf16.msra.mxu2 %v4062_v6  ;;  %v4458_v6 = vunpack.c.l.b16 %v6265_v60 }
 0x813   : > { %3723 = vrot.lane.b32.xlu0 %v3708_v33, %s7010_s29  ;;  %v3520_v0 = vpop.f32.mrf.mxu0  ;;  %v3586_v42 = vpop.f32.mrf.mxu1 }
 0x81b   : > { %3531 = vrot.lane.b32.xlu0 %v3517_v4, %s7008_s23  ;;  %v3771_v56 = vpop.f32.mrf.mxu0  ;;  %v4156_v4 = vpack.c.b16 %v4152_v50, %v4152_v50  ;;  %v6763_v50 = vld [vmem:[%s9053_s5 + $0xcc] sm:$0xff] }
 0x81c   : > { %v3837_v37 = vpop.f32.mrf.mxu1  ;;  %3787 = vrot.lane.b32.xlu1 %v3771_v56, %s7011_s14  ;;  %v6752_v56 = vld [vmem:[%s9053_s5 + $0x64] sm:$0xff] }
 0x81d   : > { %3853 = vrot.lane.b32.xlu2 %v3837_v37, %s7012_s27  ;;  %v6755_v37 = vld [vmem:[%s9053_s5 + $0x80] sm:$0xff]  ;;  %4069 = vmatpush.bf16.msra.mxu2 %v6752_v56 }
 0x81e   : > { %v6762_v56 = vld [vmem:[%s9053_s5 + $0xc4] sm:$0xff] }
 0x821   : > { %v3646_v59 = vpop.f32.mrf.mxu2 }
 0x823   : > { %3725 = vrot.lane.b32.xlu0 %v3711_v21, %s7010_s29  ;;  %v3774_v1 = vpop.f32.mrf.mxu0  ;;  %v6758_v21 = vld [vmem:[%s9053_s5 + $0x9c] sm:$0xff] }
 0x824   : > { %3595 = vrot.lane.b32.xlu1 %v3580_v28, %s7007_s21  ;;  %v3840_v58 = vpop.f32.mrf.mxu1  ;;  %v4113_v28 = vand.u32 %v4105_v3, %v8521_v49  ;;  %v6405_v3 = vld [vmem:[%s9053_s5 + $0x210] sm:$0x1] }
 0x825   : > { %3661 = vrot.lane.b32.xlu2 %v3646_v59, %s7009_s24  ;;  %v6773_v59 = vld [vmem:[%s9053_s5 + $0x128] sm:$0xff] }
 0x826   : > { %4119 = vmatpush.bf16.msra.mxu3 %v4113_v28  ;;  %v4509_v28 = vunpack.c.l.b16 %v6285_v14 }
 0x829   : > { %v3649_v11 = vpop.f32.mrf.mxu2 }
 0x82a   : > { %4120 = vmatpush.bf16.msra.mxu3 %v6755_v37 }
 0x82b   : > { %3533 = vrot.lane.b32.xlu0 %v3520_v0, %s7008_s23  ;;  %v3777_v51 = vpop.f32.mrf.mxu0  ;;  %v4164_v0 = vand.u32 %v4156_v4, %v8521_v49 }
 0x82c   : > { %3789 = vrot.lane.b32.xlu1 %v3774_v1, %s7011_s14  ;;  %v3843_v17 = vpop.f32.mrf.mxu1  ;;  %v6751_v1 = vld [vmem:[%s9053_s5 + $0x5c] sm:$0xff] }
 0x82d   : > { %3855 = vrot.lane.b32.xlu2 %v3840_v58, %s7012_s27  ;;  %4170 = vmatpush.bf16.msra.mxu0 %v4164_v0  ;;  %v6754_v58 = vld [vmem:[%s9053_s5 + $0x78] sm:$0xff]  ;;  %v4560_v0 = vunpack.c.l.b16 %v6305_v61 }
 0x82e   : > { %4070 = vmatpush.bf16.msra.mxu2 %v6751_v1  ;;  %4121 = vmatpush.bf16.msra.mxu3 %v6754_v58  ;;  %v4462_v1 = vpack.c.b16 %v4458_v6, %v4458_v6  ;;  %v4513_v58 = vpack.c.b16 %v4509_v28, %v4509_v28 }
 0x830   : > { %v4470_v23 = vand.u32 %v4462_v1, %v8521_v49  ;;  %v4521_v34 = vand.u32 %v4513_v58, %v8521_v49  ;;  %v6445_v1 = vld [vmem:[%s9053_s5 + $0x248] sm:$0x1] }
 0x831   : > { %v3652_v43 = vpop.f32.mrf.mxu2  ;;  %4171 = vmatpush.bf16.msra.mxu0 %v6758_v21 }
 0x833   : > { %3727 = vrot.lane.b32.xlu0 %v3714_v18, %s7010_s29  ;;  %v3780_v30 = vpop.f32.mrf.mxu0 }
 0x834   : > { %3597 = vrot.lane.b32.xlu1 %v3583_v63, %s7007_s21  ;;  %v3846_v40 = vpop.f32.mrf.mxu1  ;;  %v4411_v63 = vpack.c.b16 %v4407_v26, %v4407_v26  ;;  %v6766_v26 = vld [vmem:[%s9053_s5 + $0xe8] sm:$0xff] }
 0x835   : > { %3663 = vrot.lane.b32.xlu2 %v3649_v11, %s7009_s24  ;;  %v6757_v11 = vld [vmem:[%s9053_s5 + $0x94] sm:$0xff] }
 0x836   : > { %4172 = vmatpush.bf16.msra.mxu0 %v6757_v11  ;;  %v6783_v11 = vld [vmem:[%s9053_s5 + $0x188] sm:$0xff] }
 0x83c   : > { %3791 = vrot.lane.b32.xlu1 %v3777_v51, %s7011_s14  ;;  %v6772_v51 = vld [vmem:[%s9053_s5 + $0x120] sm:$0xff] }
 0x83d   : > { %3857 = vrot.lane.b32.xlu2 %v3843_v17, %s7012_s27 }
 0x844   : > { %3599 = vrot.lane.b32.xlu1 %v3586_v42, %s7007_s21  ;;  %v4419_v42 = vand.u32 %v4411_v63, %v8521_v49  ;;  %v6769_v63 = vld [vmem:[%s9053_s5 + $0x104] sm:$0xff]  ;;  %s5600_s21 = sshll.u32 %s5596_s16, 4  ;;  %s5601_s21 = int_to_ptr.hbm [resolvable:$true] %s5600_s21 }
 0x845   : > { %3665 = vrot.lane.b32.xlu2 %v3652_v43, %s7009_s24  ;;  %v6750_v43 = vld [vmem:[%s9053_s5 + $0x54] sm:$0xff]  ;;  %s6934_s24 = sshra.s32 %s5601_s21, 4  ;;  %s6935_s24 = int_to_ptr.hbm [resolvable:$true] %s6934_s24 }
 0x846   : > { %4425 = vmatpush.bf16.msrb.mxu1 %v4419_v42  ;;  %4071 = vmatpush.bf16.msra.mxu2 %v6750_v43  ;;  %v4815_v42 = vunpack.c.l.b16 %v6405_v3  ;;  %s6936_s29 = scalar_lea.hbm %s6935_s24, 1  ;;  %p6941_p0 = scmp.lt.s32.totalorder %s6935_s24, %s9057_s9 }
 0x847   : > { %p6937_p11 = scmp.ne.s32.totalorder %s6935_s24, %s6936_s29  ;;  %p6942_p1 = scmp.lt.s32.totalorder %s6940_s28, %s6936_s29 }
 0x849   : > { %p6938_p12 = pnand %p6937_p11, %p7101_p5  ;;  %p6943_p2 = por %p6942_p1, %p6941_p0 }
 0x84a   : > { %4426 = vmatpush.bf16.msrb.mxu1 %v6773_v59  ;;  %v6765_v59 = vld [vmem:[%s9053_s5 + $0xe0] sm:$0xff] }
 0x84b   : > { %p6939_p13 = pneg %p6938_p12 }
 0x84c   : > { %3793 = vrot.lane.b32.xlu1 %v3780_v30, %s7011_s14  ;;  %v6753_v30 = vld [vmem:[%s9053_s5 + $0x70] sm:$0xff]  ;;  %s323_s14 = sand.u32 1, %s6974_s10  }
 0x84d   : > { %3859 = vrot.lane.b32.xlu2 %v3846_v40, %s7012_s27  ;;  %v6756_v40 = vld [vmem:[%s9053_s5 + $0x8c] sm:$0xff]  ;;  %4122 = vmatpush.bf16.msra.mxu3 %v6753_v30  ;;  %s324_s22 = scalar_lea.vmem [#allocation4], %s323_s14  ;;  %s5588_s23 = scalar_lea.sflag [#allocation5], %s323_s14 }
 0x84e   : > { %4427 = vmatpush.bf16.msrb.mxu1 %v6772_v51  ;;  %4173 = vmatpush.bf16.msra.mxu0 %v6756_v40  ;;  %v4564_v51 = vpack.c.b16 %v4560_v0, %v4560_v0  ;;  %s5598_s17 = sshll.u32 %s324_s22, 4  ;;  %p6944_p3 = pnand %p6943_p2, %p6939_p13  ;;  %s5599_s17 = int_to_ptr.vmem [resolvable:$true] %s5598_s17 }
 0x850   : > { %v4572_v25 = vand.u32 %v4564_v51, %v8521_v49 }
 0x852   : > { %4428 = vmatpush.bf16.msrb.mxu1 %v6771_v46 }
 0x855   : > { %v3594_v41 = vpop.permute.xlu1 %3593 }
 0x85c   : > { %v3660_v53 = vpop.permute.xlu2 %3659 }
 0x86d   : > { %v3528_v20 = vpop.permute.xlu0 %3527 }
 0x86e   : > { %3540 = vst.msk [vmem:[#allocation3] sm:$0xff] %vm3539_vm13, %v3528_v20 }
 0x86f   : > { %3606 = vst.msk [vmem:[#allocation3] sm:$0xff] %vm3605_vm14, %v3594_v41 }
 0x870   : > { %3672 = vst.msk [vmem:[#allocation3] sm:$0xff] %vm3671_vm7, %v3660_v53 }
 0x875   : > { %v3722_v36 = vpop.permute.xlu0 %3721 }
 0x876   : > { %3734 = vst.msk [vmem:[#allocation3] sm:$0xff] %vm3733_vm8, %v3722_v36 }
 0x877   : > { %v3854_v18 = vpop.permute.xlu2 %3853 }
 0x87d   : > { %v3530_v33 = vpop.permute.xlu0 %3529 }
 0x87e   : > { %3541 = vst.msk [vmem:[#allocation3 + $0x8] sm:$0xff] %vm3539_vm13, %v3530_v33  ;;  %v6784_v33 = vld [vmem:[%s9053_s5 + $0x190] sm:$0xff] }
 0x87f   : > { %v3662_v5 = vpop.permute.xlu2 %3661 }
 0x885   : > { %v3724_v17 = vpop.permute.xlu0 %3723 }
 0x887   : > { %v3856_v41 = vpop.permute.xlu2 %3855 }
 0x88d   : > { %v3532_v39 = vpop.permute.xlu0 %3531 }
 0x88e   : > { %3542 = vst.msk [vmem:[#allocation3 + $0x10] sm:$0xff] %vm3539_vm13, %v3532_v39  ;;  %v3788_v55 = vpop.permute.xlu1 %3787 }
 0x88f   : > { %3800 = vst.msk [vmem:[#allocation3] sm:$0xff] %vm3799_vm9, %v3788_v55  ;;  %v3664_v4 = vpop.permute.xlu2 %3663 }
 0x890   : > { %3866 = vst.msk [vmem:[#allocation3] sm:$0xff] %vm3865_vm10, %v3854_v18  ;;  %v6768_v18 = vld [vmem:[%s9053_s5 + $0xfc] sm:$0xff] }
 0x895   : > { %v8635_v22 = vpop.permute.xlu0 %3725 }
 0x896   : > { %v3596_v20 = vpop.permute.xlu1 %3595 }
 0x897   : > { %3607 = vst.msk [vmem:[#allocation3 + $0x8] sm:$0xff] %vm3605_vm14, %v3596_v20  ;;  %v3871_v53 = vld [vmem:[#allocation3] sm:$0x1]  ;;  %v3925_v54 = vld [vmem:[#allocation3 + $0x1] sm:$0x1]  ;;  %v3858_v10 = vpop.permute.xlu2 %3857 }
 0x898   : > { %3673 = vst.msk [vmem:[#allocation3 + $0x8] sm:$0xff] %vm3671_vm7, %v3662_v5  ;;  %v3872_v15 = vpack.c.bf16 %v3871_v53, %v3871_v53  ;;  %v3926_v9 = vpack.c.bf16 %v3925_v54, %v3925_v54  ;;  %v3976_v48 = vld [vmem:[#allocation3 + $0x2] sm:$0x1]  ;;  %v4180_v16 = vld [vmem:[#allocation3 + $0x6] sm:$0x1]  ;;  %v6778_v53 = vld [vmem:[%s9053_s5 + $0x158] sm:$0xff]  ;;  %v4662_v54 = vunpack.c.l.b16 %v6345_v32 }
 0x899   : > { %3735 = vst.msk [vmem:[#allocation3 + $0x8] sm:$0xff] %vm3733_vm8, %v3724_v17  ;;  %v3977_v52 = vpack.c.bf16 %v3976_v48, %v3976_v48  ;;  %v4181_v36 = vpack.c.bf16 %v4180_v16, %v4180_v16  ;;  %v4027_v37 = vld [vmem:[#allocation3 + $0x3] sm:$0x1]  ;;  %v4078_v21 = vld [vmem:[#allocation3 + $0x4] sm:$0x1]  ;;  %v4819_v17 = vpack.c.b16 %v4815_v42, %v4815_v42  ;;  %v6796_v48 = vld [vmem:[%s9053_s5 + $0x200] sm:$0xff]  ;;  %v4764_v16 = vunpack.c.l.b16 %v6385_v38 }
 0x89a   : > { %6058 = vmatmul.msk.bf16.vlgmr.msrb.gmra.mxu2 %vm3901_vm11, %v3872_v15  ;;  %6078 = vmatmul.msk.bf16.vlgmr.msrb.gmra.mxu3 %vm3901_vm11, %v3926_v9  ;;  %v4129_v30 = vld [vmem:[#allocation3 + $0x5] sm:$0x1]  ;;  %v4028_v40 = vpack.c.bf16 %v4027_v37, %v4027_v37  ;;  %v4079_v46 = vpack.c.bf16 %v4078_v21, %v4078_v21  ;;  %v6485_v20 = vld [vmem:[%s9053_s5 + $0x280] sm:$0x1]  ;;  %v6794_v37 = vld [vmem:[%s9053_s5 + $0x1ec] sm:$0xff] }
 0x89b   : > { %6098 = vmatmul.msk.bf16.vlgmr.msrb.gmra.mxu0 %vm3901_vm11, %v3977_v52  ;;  %6178 = vmatmul.msk.bf16.vlgmr.msra.gmra.mxu1 %vm3901_vm11, %v4181_v36  ;;  %v4130_v55 = vpack.c.bf16 %v4129_v30, %v4129_v30  ;;  %v4827_v27 = vand.u32 %v4819_v17, %v8521_v49  ;;  %v6781_v9 = vld [vmem:[%s9053_s5 + $0x174] sm:$0xff]  ;;  %v4768_v60 = vpack.c.b16 %v4764_v16, %v4764_v16  ;;  %v6787_v17 = vld [vmem:[%s9053_s5 + $0x1ac] sm:$0xff]  ;;  %v6800_v16 = vld [vmem:[%s9053_s5 + $0x224] sm:$0xff] }
 0x89c   : > { %4272 = vmatpush.bf16.msrb.mxu2 %v4266_v12  ;;  %4323 = vmatpush.bf16.msrb.mxu3 %v4317_v19  ;;  %v5019_v12 = vunpack.c.l.b16 %v6485_v20  ;;  %v4231_v19 = vld [vmem:[#allocation3 + $0x7] sm:$0x1]  ;;  %v6809_v21 = vld [vmem:[%s9053_s5 + $0x278] sm:$0xff] }
 0x89d   : > { %v3534_v57 = vpop.permute.xlu0 %3533  ;;  %4374 = vmatpush.bf16.msrb.mxu0 %v4368_v13  ;;  %4629 = vmatpush.bf16.msra.mxu1 %v4623_v8  ;;  %v6774_v36 = vld [vmem:[%s9053_s5 + $0x134] sm:$0xff]  ;;  %v4666_v8 = vpack.c.b16 %v4662_v54, %v4662_v54  ;;  %v4232_v3 = vpack.c.bf16 %v4231_v19, %v4231_v19  ;;  %v6806_v19 = vld [vmem:[%s9053_s5 + $0x25c] sm:$0xff] }
 0x89e   : > { %3543 = vst.msk [vmem:[#allocation3 + $0x18] sm:$0xff] %vm3539_vm13, %v3534_v57  ;;  %v3790_v44 = vpop.permute.xlu1 %3789  ;;  %v6777_v13 = vld [vmem:[%s9053_s5 + $0x150] sm:$0xff]  ;;  %v5023_v14 = vpack.c.b16 %v5019_v12, %v5019_v12  ;;  %v6803_v12 = vld [vmem:[%s9053_s5 + $0x240] sm:$0xff] }
 0x89f   : > { %3801 = vst.msk [vmem:[#allocation3 + $0x8] sm:$0xff] %vm3799_vm9, %v3790_v44  ;;  %v6780_v57 = vld [vmem:[%s9053_s5 + $0x16c] sm:$0xff]  ;;  %v4674_v28 = vand.u32 %v4666_v8, %v8521_v49  ;;  %v6788_v42 = vld [vmem:[%s9053_s5 + $0x1b4] sm:$0xff] }
 0x8a0   : > { %3867 = vst.msk [vmem:[#allocation3 + $0x8] sm:$0xff] %vm3865_vm10, %v3856_v41  ;;  %4273 = vmatpush.bf16.msrb.mxu2 %v6764_v7  ;;  %4324 = vmatpush.bf16.msrb.mxu3 %v6767_v29  ;;  %v6775_v41 = vld [vmem:[%s9053_s5 + $0x13c] sm:$0xff]  ;;  %v3666_v29 = vpop.permute.xlu2 %3665  ;;  %v5031_v0 = vand.u32 %v5023_v14, %v8521_v49  ;;  %v6545_v8 = vld [vmem:[%s9053_s5 + $0x2d4] sm:$0x1] }
 0x8a1   : > { %4375 = vmatpush.bf16.msrb.mxu0 %v6770_v45  ;;  %4630 = vmatpush.bf16.msra.mxu1 %v6785_v24  ;;  %v6795_v24 = vld [vmem:[%s9053_s5 + $0x1f8] sm:$0xff]  ;;  %v6820_v14 = vld [vmem:[%s9053_s5 + $0x2e0] sm:$0xff] }
 0x8a4   : > { %4274 = vmatpush.bf16.msrb.mxu2 %v6763_v50  ;;  %4325 = vmatpush.bf16.msrb.mxu3 %v6766_v26 }
 0x8a5   : > { %4376 = vmatpush.bf16.msrb.mxu0 %v6769_v63  ;;  %4631 = vmatpush.bf16.msra.mxu1 %v6784_v33  ;;  %v3728_v26 = vpop.permute.xlu0 %3727  ;;  %v4776_v33 = vand.u32 %v4768_v60, %v8521_v49  ;;  %v6805_v60 = vld [vmem:[%s9053_s5 + $0x254] sm:$0xff] }
 0x8a6   : > { %v3598_v43 = vpop.permute.xlu1 %3597 }
 0x8a7   : > { %3608 = vst.msk [vmem:[#allocation3 + $0x10] sm:$0xff] %vm3605_vm14, %v3598_v43  ;;  %v4384_v5 = vld [vmem:[#allocation3 + $0xa] sm:$0x1]  ;;  %v4282_v52 = vld [vmem:[#allocation3 + $0x8] sm:$0x1]  ;;  %v6790_v43 = vld [vmem:[%s9053_s5 + $0x1c8] sm:$0xff] }
 0x8a8   : > { %3674 = vst.msk [vmem:[#allocation3 + $0x10] sm:$0xff] %vm3671_vm7, %v3664_v4  ;;  %v4385_v39 = vpack.c.bf16 %v4384_v5, %v4384_v5  ;;  %4275 = vmatpush.bf16.msrb.mxu2 %v6762_v56  ;;  %4326 = vmatpush.bf16.msrb.mxu3 %v6765_v59  ;;  %v4333_v45 = vld [vmem:[#allocation3 + $0x9] sm:$0x1]  ;;  %v4588_v61 = vld [vmem:[#allocation3 + $0xe] sm:$0x1]  ;;  %v4283_v50 = vpack.c.bf16 %v4282_v52, %v4282_v52  ;;  %v6791_v56 = vld [vmem:[%s9053_s5 + $0x1d0] sm:$0xff]  ;;  %v3860_v51 = vpop.permute.xlu2 %3859 }
 0x8a9   : > { %3736 = vst.msk [vmem:[#allocation3 + $0x10] sm:$0xff] %vm3733_vm8, %v8635_v22  ;;  %4377 = vmatpush.bf16.msrb.mxu0 %v6768_v18  ;;  %4632 = vmatpush.bf16.msra.mxu1 %v6783_v11  ;;  %v6365_v22 = vld [vmem:[%s9053_s5 + $0x1d8] sm:$0x1]  ;;  %v4334_v6 = vpack.c.bf16 %v4333_v45, %v4333_v45  ;;  %v4589_v63 = vpack.c.bf16 %v4588_v61, %v4588_v61  ;;  %v6425_v59 = vld [vmem:[%s9053_s5 + $0x22c] sm:$0x1]  ;;  %v6808_v5 = vld [vmem:[%s9053_s5 + $0x270] sm:$0xff] }
 0x8aa   : > { %6118 = vmatmul.msk.bf16.vlgmr.msra.gmra.mxu2 %vm3901_vm11, %v4028_v40  ;;  %6138 = vmatmul.msk.bf16.vlgmr.msra.gmra.mxu3 %vm3901_vm11, %v4079_v46  ;;  %v4713_v15 = vunpack.c.l.b16 %v6365_v22  ;;  %v6465_v18 = vld [vmem:[%s9053_s5 + $0x264] sm:$0x1]  ;;  %v6565_v11 = vld [vmem:[%s9053_s5 + $0x2f0] sm:$0x1]  ;;  %v4866_v30 = vunpack.c.l.b16 %v6425_v59  ;;  %v4917_v40 = vunpack.c.l.b16 %v6445_v1  ;;  %v6821_v52 = vld [vmem:[%s9053_s5 + $0x2e8] sm:$0xff] }
 0x8ab   : > { %6158 = vmatmul.msk.bf16.vlgmr.msra.gmra.mxu0 %vm3901_vm11, %v4130_v55  ;;  %6258 = vmatmul.msk.bf16.vlgmr.msrb.gmra.mxu1 %vm3901_vm11, %v4385_v39  ;;  %v6793_v46 = vld [vmem:[%s9053_s5 + $0x1e4] sm:$0xff]  ;;  %v4968_v39 = vunpack.c.l.b16 %v6465_v18  ;;  %v4486_v55 = vld [vmem:[#allocation3 + $0xc] sm:$0x1] }
 0x8ac   : > { %4476 = vmatpush.bf16.msra.mxu2 %v4470_v23  ;;  %4527 = vmatpush.bf16.msra.mxu3 %v4521_v34  ;;  %v4717_v7 = vpack.c.b16 %v4713_v15, %v4713_v15  ;;  %v5223_v23 = vunpack.c.l.b16 %v6565_v11  ;;  %v4435_v34 = vld [vmem:[#allocation3 + $0xb] sm:$0x1]  ;;  %v4487_v20 = vpack.c.bf16 %v4486_v55, %v4486_v55  ;;  %v6814_v55 = vld [vmem:[%s9053_s5 + $0x2a8] sm:$0xff] }
 0x8ad   : > { %4578 = vmatpush.bf16.msra.mxu0 %v4572_v25  ;;  %4833 = vmatpush.bf16.msrb.mxu1 %v4827_v27  ;;  %v6786_v25 = vld [vmem:[%s9053_s5 + $0x1a4] sm:$0xff]  ;;  %v4972_v32 = vpack.c.b16 %v4968_v39, %v4968_v39  ;;  %v4436_v38 = vpack.c.bf16 %v4435_v34, %v4435_v34  ;;  %v6802_v45 = vld [vmem:[%s9053_s5 + $0x238] sm:$0xff]  ;;  %v6811_v34 = vld [vmem:[%s9053_s5 + $0x28c] sm:$0xff] }
 0x8ae   : > { %v3792_v2 = vpop.permute.xlu1 %3791  ;;  %v4725_v4 = vand.u32 %v4717_v7, %v8521_v49  ;;  %v6789_v27 = vld [vmem:[%s9053_s5 + $0x1c0] sm:$0xff]  ;;  %v5227_v22 = vpack.c.b16 %v5223_v23, %v5223_v23  ;;  %v6605_v39 = vld [vmem:[%s9053_s5 + $0x328] sm:$0x1] }
 0x8af   : > { %3802 = vst.msk [vmem:[#allocation3 + $0x10] sm:$0xff] %vm3799_vm9, %v3792_v2  ;;  %v6645_v7 = vld [vmem:[%s9053_s5 + $0x360] sm:$0x1]  ;;  %v6625_v23 = vld [vmem:[%s9053_s5 + $0x344] sm:$0x1] }
 0x8b0   : > { %3868 = vst.msk [vmem:[#allocation3 + $0x10] sm:$0xff] %vm3865_vm10, %v3858_v10  ;;  %4477 = vmatpush.bf16.msra.mxu2 %v6776_v31  ;;  %4528 = vmatpush.bf16.msra.mxu3 %v6779_v35  ;;  %v4870_v10 = vpack.c.b16 %v4866_v30, %v4866_v30  ;;  %v4921_v31 = vpack.c.b16 %v4917_v40, %v4917_v40  ;;  %v4537_v35 = vld [vmem:[#allocation3 + $0xd] sm:$0x1]  ;;  %v5427_v61 = vunpack.c.l.b16 %v6645_v7  ;;  %v6815_v30 = vld [vmem:[%s9053_s5 + $0x2b0] sm:$0xff] }
 0x8b1   : > { %4579 = vmatpush.bf16.msra.mxu0 %v6782_v47  ;;  %4834 = vmatpush.bf16.msrb.mxu1 %v6797_v62  ;;  %v6792_v47 = vld [vmem:[%s9053_s5 + $0x1dc] sm:$0xff]  ;;  %v6807_v62 = vld [vmem:[%s9053_s5 + $0x268] sm:$0xff] }
 0x8b2   : > { %v4929_v54 = vand.u32 %v4921_v31, %v8521_v49  ;;  %v6818_v40 = vld [vmem:[%s9053_s5 + $0x2cc] sm:$0xff]  ;;  %v6830_v7 = vld [vmem:[%s9053_s5 + $0x33c] sm:$0xff] }
 0x8b3   : > { %v6832_v31 = vld [vmem:[%s9053_s5 + $0x350] sm:$0xff] }
 0x8b4   : > { %4478 = vmatpush.bf16.msra.mxu2 %v6775_v41  ;;  %4529 = vmatpush.bf16.msra.mxu3 %v6778_v53  ;;  %v4538_v41 = vpack.c.bf16 %v4537_v35, %v4537_v35  ;;  %v4878_v53 = vand.u32 %v4870_v10, %v8521_v49  ;;  %v6817_v10 = vld [vmem:[%s9053_s5 + $0x2c4] sm:$0xff]  ;;  %v5376_v35 = vunpack.c.l.b16 %v6625_v23 }
 0x8b5   : > { %4580 = vmatpush.bf16.msra.mxu0 %v6781_v9  ;;  %4835 = vmatpush.bf16.msrb.mxu1 %v6796_v48  ;;  %v4980_v9 = vand.u32 %v4972_v32, %v8521_v49  ;;  %v5235_v48 = vand.u32 %v5227_v22, %v8521_v49  ;;  %v6813_v32 = vld [vmem:[%s9053_s5 + $0x2a0] sm:$0xff] }
 0x8b6   : > { %v3600_v44 = vpop.permute.xlu1 %3599 }
 0x8b7   : > { %3609 = vst.msk [vmem:[#allocation3 + $0x18] sm:$0xff] %vm3605_vm14, %v3600_v44  ;;  %v4792_v2 = vld [vmem:[#allocation3 + $0x12] sm:$0x1]  ;;  %v5172_v44 = vunpack.c.l.b16 %v6545_v8 }
 0x8b8   : > { %3675 = vst.msk [vmem:[#allocation3 + $0x18] sm:$0xff] %vm3671_vm7, %v3666_v29  ;;  %4479 = vmatpush.bf16.msra.mxu2 %v6774_v36  ;;  %4530 = vmatpush.bf16.msra.mxu3 %v6777_v13  ;;  %v4793_v15 = vpack.c.bf16 %v4792_v2, %v4792_v2  ;;  %v6505_v36 = vld [vmem:[%s9053_s5 + $0x29c] sm:$0x1]  ;;  %v6525_v13 = vld [vmem:[%s9053_s5 + $0x2b8] sm:$0x1]  ;;  %v6827_v8 = vld [vmem:[%s9053_s5 + $0x320] sm:$0xff] }
 0x8b9   : > { %3737 = vst.msk [vmem:[#allocation3 + $0x18] sm:$0xff] %vm3733_vm8, %v3728_v26  ;;  %4581 = vmatpush.bf16.msra.mxu0 %v6780_v57  ;;  %4836 = vmatpush.bf16.msrb.mxu1 %v6795_v24  ;;  %v6799_v29 = vld [vmem:[%s9053_s5 + $0x21c] sm:$0xff]  ;;  %v5070_v57 = vunpack.c.l.b16 %v6505_v36  ;;  %v5121_v24 = vunpack.c.l.b16 %v6525_v13  ;;  %v6798_v26 = vld [vmem:[%s9053_s5 + $0x214] sm:$0xff]  ;;  %v6824_v13 = vld [vmem:[%s9053_s5 + $0x304] sm:$0xff] }
 0x8ba   : > { %6198 = vmatmul.msk.bf16.vlgmr.msrb.gmra.mxu2 %vm3901_vm11, %v4232_v3  ;;  %6218 = vmatmul.msk.bf16.vlgmr.msrb.gmra.mxu3 %vm3901_vm11, %v4283_v50  ;;  %v4639_v3 = vld [vmem:[#allocation3 + $0xf] sm:$0x1]  ;;  %v4690_v50 = vld [vmem:[#allocation3 + $0x10] sm:$0x1] }
 0x8bb   : > { %6238 = vmatmul.msk.bf16.vlgmr.msrb.gmra.mxu0 %vm3901_vm11, %v4334_v6  ;;  %6338 = vmatmul.msk.bf16.vlgmr.msra.gmra.mxu1 %vm3901_vm11, %v4589_v63  ;;  %v6801_v6 = vld [vmem:[%s9053_s5 + $0x230] sm:$0xff]  ;;  %v4741_v63 = vld [vmem:[#allocation3 + $0x11] sm:$0x1]  ;;  %v4691_v59 = vpack.c.bf16 %v4690_v50, %v4690_v50 }
 0x8bc   : > { %4680 = vmatpush.bf16.msrb.mxu2 %v4674_v28  ;;  %4731 = vmatpush.bf16.msrb.mxu3 %v4725_v4  ;;  %v5074_v28 = vpack.c.b16 %v5070_v57, %v5070_v57  ;;  %v5125_v4 = vpack.c.b16 %v5121_v24, %v5121_v24  ;;  %v4742_v1 = vpack.c.bf16 %v4741_v63, %v4741_v63  ;;  %v6826_v57 = vld [vmem:[%s9053_s5 + $0x318] sm:$0xff] }
 0x8bd   : > { %4782 = vmatpush.bf16.msrb.mxu0 %v4776_v33  ;;  %5037 = vmatpush.bf16.msra.mxu1 %v5031_v0  ;;  %v6804_v33 = vld [vmem:[%s9053_s5 + $0x24c] sm:$0xff]  ;;  %v6819_v0 = vld [vmem:[%s9053_s5 + $0x2d8] sm:$0xff] }
 0x8be   : > { %v3794_v58 = vpop.permute.xlu1 %3793  ;;  %v5133_v18 = vand.u32 %v5125_v4, %v8521_v49 }
 0x8bf   : > { %3803 = vst.msk [vmem:[#allocation3 + $0x18] sm:$0xff] %vm3799_vm9, %v3794_v58  ;;  %v5082_v58 = vand.u32 %v5074_v28, %v8521_v49 }
 0x8c0   : > { %3869 = vst.msk [vmem:[#allocation3 + $0x18] sm:$0xff] %vm3865_vm10, %v3860_v51  ;;  %4681 = vmatpush.bf16.msrb.mxu2 %v6788_v42  ;;  %4732 = vmatpush.bf16.msrb.mxu3 %v6791_v56  ;;  %v5176_v42 = vpack.c.b16 %v5172_v44, %v5172_v44  ;;  %v5431_v56 = vpack.c.b16 %v5427_v61, %v5427_v61  ;;  %v6825_v44 = vld [vmem:[%s9053_s5 + $0x310] sm:$0xff] }
 0x8c1   : > { %4783 = vmatpush.bf16.msrb.mxu0 %v6794_v37  ;;  %5038 = vmatpush.bf16.msra.mxu1 %v6809_v21  ;;  %v4996_v37 = vld [vmem:[#allocation3 + $0x16] sm:$0x1]  ;;  %v4640_v21 = vpack.c.bf16 %v4639_v3, %v4639_v3  ;;  %v5047_v3 = vld [vmem:[#allocation3 + $0x17] sm:$0x1] }
 0x8c2   : > { %v4997_v11 = vpack.c.bf16 %v4996_v37, %v4996_v37  ;;  %v5184_v51 = vand.u32 %v5176_v42, %v8521_v49  ;;  %v5048_v4 = vpack.c.bf16 %v5047_v3, %v5047_v3  ;;  %v6834_v37 = vld [vmem:[%s9053_s5 + $0x364] sm:$0xff] }
 0x8c4   : > { %4682 = vmatpush.bf16.msrb.mxu2 %v6787_v17  ;;  %4733 = vmatpush.bf16.msrb.mxu3 %v6790_v43  ;;  %v5439_v17 = vand.u32 %v5431_v56, %v8521_v49  ;;  %v6812_v43 = vld [vmem:[%s9053_s5 + $0x294] sm:$0xff] }
 0x8c5   : > { %4784 = vmatpush.bf16.msrb.mxu0 %v6793_v46  ;;  %5039 = vmatpush.bf16.msra.mxu1 %v6808_v5  ;;  %v6833_v46 = vld [vmem:[%s9053_s5 + $0x358] sm:$0xff]  ;;  %v6585_v5 = vld [vmem:[%s9053_s5 + $0x30c] sm:$0x1] }
 0x8c6   : > { %v6836_v56 = vld [vmem:[%s9053_s5 + $0x374] sm:$0xff] }
 0x8c7   : > { %v5098_v50 = vld [vmem:[#allocation3 + $0x18] sm:$0x1]  ;;  %v5404_v28 = vld [vmem:[#allocation3 + $0x1e] sm:$0x1] }
 0x8c8   : > { %4683 = vmatpush.bf16.msrb.mxu2 %v6786_v25  ;;  %4734 = vmatpush.bf16.msrb.mxu3 %v6789_v27  ;;  %v5274_v25 = vunpack.c.l.b16 %v6585_v5  ;;  %v5325_v27 = vunpack.c.l.b16 %v6605_v39  ;;  %v5099_v63 = vpack.c.bf16 %v5098_v50, %v5098_v50  ;;  %v5405_v42 = vpack.c.bf16 %v5404_v28, %v5404_v28 }
 0x8c9   : > { %4785 = vmatpush.bf16.msrb.mxu0 %v6792_v47  ;;  %5040 = vmatpush.bf16.msra.mxu1 %v6807_v62  ;;  %v4843_v47 = vld [vmem:[#allocation3 + $0x13] sm:$0x1]  ;;  %v6810_v62 = vld [vmem:[%s9053_s5 + $0x284] sm:$0xff] }
 0x8ca   : > { %6278 = vmatmul.msk.bf16.vlgmr.msra.gmra.mxu2 %vm3901_vm11, %v4436_v38  ;;  %6298 = vmatmul.msk.bf16.vlgmr.msra.gmra.mxu3 %vm3901_vm11, %v4487_v20  ;;  %v5278_v22 = vpack.c.b16 %v5274_v25, %v5274_v25  ;;  %v5329_v2 = vpack.c.b16 %v5325_v27, %v5325_v27  ;;  %v4894_v38 = vld [vmem:[#allocation3 + $0x14] sm:$0x1]  ;;  %v6816_v20 = vld [vmem:[%s9053_s5 + $0x2bc] sm:$0xff] }
 0x8cb   : > { %6318 = vmatmul.msk.bf16.vlgmr.msra.gmra.mxu0 %vm3901_vm11, %v4538_v41  ;;  %6418 = vmatmul.msk.bf16.vlgmr.msrb.gmra.mxu1 %vm3901_vm11, %v4793_v15  ;;  %v6831_v41 = vld [vmem:[%s9053_s5 + $0x348] sm:$0xff] }
 0x8cc   : > { %4884 = vmatpush.bf16.msra.mxu2 %v4878_v53  ;;  %4935 = vmatpush.bf16.msra.mxu3 %v4929_v54  ;;  %v5380_v53 = vpack.c.b16 %v5376_v35, %v5376_v35  ;;  %v4945_v54 = vld [vmem:[#allocation3 + $0x15] sm:$0x1]  ;;  %v5200_v15 = vld [vmem:[#allocation3 + $0x1a] sm:$0x1] }
 0x8cd   : > { %4986 = vmatpush.bf16.msra.mxu0 %v4980_v9  ;;  %5241 = vmatpush.bf16.msrb.mxu1 %v5235_v48  ;;  %v4844_v9 = vpack.c.bf16 %v4843_v47, %v4843_v47  ;;  %v4895_v48 = vpack.c.bf16 %v4894_v38, %v4894_v38 }
 0x8ce   : > { %v5388_v36 = vand.u32 %v5380_v53, %v8521_v49 }
 0x8d0   : > { %4885 = vmatpush.bf16.msra.mxu2 %v6800_v16  ;;  %4936 = vmatpush.bf16.msra.mxu3 %v6803_v12  ;;  %v5286_v16 = vand.u32 %v5278_v22, %v8521_v49  ;;  %v5337_v12 = vand.u32 %v5329_v2, %v8521_v49 }
 0x8d1   : > { %4987 = vmatpush.bf16.msra.mxu0 %v6806_v19  ;;  %5242 = vmatpush.bf16.msrb.mxu1 %v6821_v52  ;;  %v4946_v19 = vpack.c.bf16 %v4945_v54, %v4945_v54  ;;  %v5201_v52 = vpack.c.bf16 %v5200_v15, %v5200_v15 }
 0x8d4   : > { %4886 = vmatpush.bf16.msra.mxu2 %v6799_v29  ;;  %4937 = vmatpush.bf16.msra.mxu3 %v6802_v45  ;;  %v6665_v29 = vld [vmem:[%s9053_s5 + $0x37c] sm:$0x1] }
 0x8d5   : > { %4988 = vmatpush.bf16.msra.mxu0 %v6805_v60  ;;  %5243 = vmatpush.bf16.msrb.mxu1 %v6820_v14  ;;  %v6823_v45 = vld [vmem:[%s9053_s5 + $0x2fc] sm:$0xff]  ;;  %v5478_v24 = vunpack.c.l.b16 %v6665_v29  ;;  %v6829_v60 = vld [vmem:[%s9053_s5 + $0x334] sm:$0xff] }
 0x8d6   : > { %v6822_v14 = vld [vmem:[%s9053_s5 + $0x2f4] sm:$0xff] }
 0x8d7   : > { %v5482_v61 = vpack.c.b16 %v5478_v24, %v5478_v24 }
 0x8d8   : > { %4887 = vmatpush.bf16.msra.mxu2 %v6798_v26  ;;  %4938 = vmatpush.bf16.msra.mxu3 %v6801_v6  ;;  %v6828_v26 = vld [vmem:[%s9053_s5 + $0x32c] sm:$0xff]  ;;  %v5149_v6 = vld [vmem:[#allocation3 + $0x19] sm:$0x1] }
 0x8d9   : > { %4989 = vmatpush.bf16.msra.mxu0 %v6804_v33  ;;  %5244 = vmatpush.bf16.msrb.mxu1 %v6819_v0  ;;  %v5490_v33 = vand.u32 %v5482_v61, %v8521_v49  ;;  %v5150_v0 = vpack.c.bf16 %v5149_v6, %v5149_v6  ;;  %v6835_v49 = vld [vmem:[%s9053_s5 + $0x36c] sm:$0xff] }
 0x8da   : > { %6358 = vmatmul.msk.bf16.vlgmr.msrb.gmra.mxu2 %vm3901_vm11, %v4640_v21  ;;  %6378 = vmatmul.msk.bf16.vlgmr.msrb.gmra.mxu3 %vm3901_vm11, %v4691_v59  ;;  %v5251_v21 = vld [vmem:[#allocation3 + $0x1b] sm:$0x1]  ;;  %v5302_v59 = vld [vmem:[#allocation3 + $0x1c] sm:$0x1] }
 0x8db   : > { %6398 = vmatmul.msk.bf16.vlgmr.msrb.gmra.mxu0 %vm3901_vm11, %v4742_v1  ;;  %6498 = vmatmul.msk.bf16.vlgmr.msra.gmra.mxu1 %vm3901_vm11, %v4997_v11  ;;  %v5353_v1 = vld [vmem:[#allocation3 + $0x1d] sm:$0x1] }
 0x8dc   : > { %5088 = vmatpush.bf16.msrb.mxu2 %v5082_v58  ;;  %5139 = vmatpush.bf16.msrb.mxu3 %v5133_v18  ;;  %v5252_v58 = vpack.c.bf16 %v5251_v21, %v5251_v21  ;;  %v5303_v18 = vpack.c.bf16 %v5302_v59, %v5302_v59  ;;  %v5354_v11 = vpack.c.bf16 %v5353_v1, %v5353_v1  ;;  %v6844_v21 = vld [vmem:[%s9055_s7 + $0x38] sm:$0xff] }
 0x8dd   : > { %5190 = vmatpush.bf16.msrb.mxu0 %v5184_v51  ;;  %5445 = vmatpush.bf16.msra.mxu1 %v5439_v17  ;;  %v5455_v51 = vld [vmem:[#allocation3 + $0x1f] sm:$0x1] }
 0x8e0   : > { %5089 = vmatpush.bf16.msrb.mxu2 %v6812_v43  ;;  %5140 = vmatpush.bf16.msrb.mxu3 %v6815_v30  ;;  %v5456_v30 = vpack.c.bf16 %v5455_v51, %v5455_v51 }
 0x8e1   : > { %5191 = vmatpush.bf16.msrb.mxu0 %v6818_v40  ;;  %5446 = vmatpush.bf16.msra.mxu1 %v6833_v46  ;;  %v3870_v40 = vld [vmem:[%s9054_s6] sm:$0x1] }
 0x8e4   : > { %5090 = vmatpush.bf16.msrb.mxu2 %v6811_v34  ;;  %5141 = vmatpush.bf16.msrb.mxu3 %v6814_v55 }
 0x8e5   : > { %5192 = vmatpush.bf16.msrb.mxu0 %v6817_v10  ;;  %5447 = vmatpush.bf16.msra.mxu1 %v6832_v31 }
 0x8e8   : > { %5091 = vmatpush.bf16.msrb.mxu2 %v6810_v62  ;;  %5142 = vmatpush.bf16.msrb.mxu3 %v6813_v32 }
 0x8e9   : > { %5193 = vmatpush.bf16.msrb.mxu0 %v6816_v20  ;;  %5448 = vmatpush.bf16.msra.mxu1 %v6831_v41 }
 0x8ea   : > { %6438 = vmatmul.msk.bf16.vlgmr.msra.gmra.mxu2 %vm3901_vm11, %v4844_v9  ;;  %6458 = vmatmul.msk.bf16.vlgmr.msra.gmra.mxu3 %vm3901_vm11, %v4895_v48 }
 0x8eb   : > { %6478 = vmatmul.msk.bf16.vlgmr.msra.gmra.mxu0 %vm3901_vm11, %v4946_v19  ;;  %6578 = vmatmul.msk.bf16.vlgmr.msrb.gmra.mxu1 %vm3901_vm11, %v5201_v52 }
 0x8ec   : > { %5292 = vmatpush.bf16.msra.mxu2 %v5286_v16  ;;  %5343 = vmatpush.bf16.msra.mxu3 %v5337_v12 }
 0x8ed   : > { %5394 = vmatpush.bf16.msra.mxu0 %v5388_v36 }
 0x8f0   : > { %5293 = vmatpush.bf16.msra.mxu2 %v6824_v13  ;;  %5344 = vmatpush.bf16.msra.mxu3 %v6827_v8 }
 0x8f1   : > { %5395 = vmatpush.bf16.msra.mxu0 %v6830_v7 }
 0x8f4   : > { %5294 = vmatpush.bf16.msra.mxu2 %v6823_v45  ;;  %5345 = vmatpush.bf16.msra.mxu3 %v6826_v57 }
 0x8f5   : > { %5396 = vmatpush.bf16.msra.mxu0 %v6829_v60 }
 0x8f8   : > { %5295 = vmatpush.bf16.msra.mxu2 %v6822_v14  ;;  %5346 = vmatpush.bf16.msra.mxu3 %v6825_v44 }
 0x8f9   : > { %5397 = vmatpush.bf16.msra.mxu0 %v6828_v26 }
 0x8fa   : > { %6518 = vmatmul.msk.bf16.vlgmr.msrb.gmra.mxu2 %vm3901_vm11, %v5048_v4  ;;  %6538 = vmatmul.msk.bf16.vlgmr.msrb.gmra.mxu3 %vm3901_vm11, %v5099_v63 }
 0x8fb   : > { %6558 = vmatmul.msk.bf16.vlgmr.msrb.gmra.mxu0 %vm3901_vm11, %v5150_v0  ;;  %6658 = vmatmul.msk.bf16.vlgmr.msra.gmra.mxu1 %vm3901_vm11, %v5405_v42 }
 0x8fc   : > { %5496 = vmatpush.bf16.msrb.mxu2 %v5490_v33  ;;  %5573 = vmatpush.bf16.msrb.mxu3 %v6844_v21 }
 0x900   : > { %5497 = vmatpush.bf16.msrb.mxu2 %v6836_v56 }
 0x904   : > { %5498 = vmatpush.bf16.msrb.mxu2 %v6835_v49 }
 0x908   : > { %5499 = vmatpush.bf16.msrb.mxu2 %v6834_v37 }
 0x90a   : > { %6598 = vmatmul.msk.bf16.vlgmr.msra.gmra.mxu2 %vm3901_vm11, %v5252_v58  ;;  %6618 = vmatmul.msk.bf16.vlgmr.msra.gmra.mxu3 %vm3901_vm11, %v5303_v18  ;;  %v6843_v18 = vld [vmem:[%s9055_s7 + $0x30] sm:$0xff] }
 0x90b   : > { %6638 = vmatmul.msk.bf16.vlgmr.msra.gmra.mxu0 %vm3901_vm11, %v5354_v11  ;;  %5574 = vmatpush.bf16.msrb.mxu3 %v6843_v18 }
 0x918   : > { %v4022_v17 = vpop.f32.mrf.mxu0  ;;  %v4226_v43 = vpop.f32.mrf.mxu1 }
 0x91a   : > { %6678 = vmatmul.msk.bf16.vlgmr.msrb.gmra.mxu2 %vm3901_vm11, %v5456_v30 }
 0x91d   : > { %v3920_v46 = vpop.f32.mrf.mxu2  ;;  %v3971_v5 = vpop.f32.mrf.mxu3 }
 0x91e   : > { %v3924_v39 = vadd.f32 %v3920_v46, %v3870_v40 }
 0x920   : > { %v3975_v23 = vadd.f32 %v3971_v5, %v3924_v39  ;;  %v4024_v34 = vpop.f32.mrf.mxu0  ;;  %v4228_v55 = vpop.f32.mrf.mxu1  ;;  %v6842_v5 = vld [vmem:[%s9055_s7 + $0x28] sm:$0xff] }
 0x921   : > { %5575 = vmatpush.bf16.msrb.mxu3 %v6842_v5 }
 0x922   : > { %v4026_v25 = vadd.f32 %v4022_v17, %v3975_v23  ;;  %v6841_v23 = vld [vmem:[%s9055_s7 + $0x20] sm:$0xff] }
 0x925   : > { %v3922_v27 = vpop.f32.mrf.mxu2  ;;  %v3973_v10 = vpop.f32.mrf.mxu3  ;;  %5576 = vmatpush.bf16.msrb.mxu3 %v6841_v23 }
 0x928   : > { %v4175_v31 = vpop.f32.mrf.mxu0  ;;  %v4430_v35 = vpop.f32.mrf.mxu1 }
 0x92d   : > { %v4073_v47 = vpop.f32.mrf.mxu2  ;;  %v4124_v62 = vpop.f32.mrf.mxu3 }
 0x92e   : > { %v4077_v32 = vadd.f32 %v4073_v47, %v4026_v25  ;;  %v6839_v47 = vld [vmem:[%s9055_s7 + $0x10] sm:$0xff] }
 0x930   : > { %v4128_v22 = vadd.f32 %v4124_v62, %v4077_v32  ;;  %v4177_v2 = vpop.f32.mrf.mxu0  ;;  %v4432_v38 = vpop.f32.mrf.mxu1 }
 0x932   : > { %v4179_v20 = vadd.f32 %v4175_v31, %v4128_v22  ;;  %v6840_v31 = vld [vmem:[%s9055_s7 + $0x18] sm:$0xff] }
 0x933   : > { %5577 = vmatpush.bf16.msrb.mxu3 %v6840_v31 }
 0x934   : > { %v4230_v41 = vadd.f32 %v4226_v43, %v4179_v20 }
 0x935   : > { %v4075_v53 = vpop.f32.mrf.mxu2  ;;  %v4126_v54 = vpop.f32.mrf.mxu3 }
 0x936   : > { %v6837_v53 = vld [vmem:[%s9055_s7] sm:$0xff] }
 0x937   : > { %5578 = vmatpush.bf16.msrb.mxu3 %v6839_v47 }
 0x938   : > { %v4379_v15 = vpop.f32.mrf.mxu0  ;;  %v4634_v9 = vpop.f32.mrf.mxu1 }
 0x93d   : > { %v4277_v48 = vpop.f32.mrf.mxu2  ;;  %v4328_v16 = vpop.f32.mrf.mxu3 }
 0x93e   : > { %v4281_v12 = vadd.f32 %v4277_v48, %v4230_v41  ;;  %v6838_v41 = vld [vmem:[%s9055_s7 + $0x8] sm:$0xff] }
 0x93f   : > { %5579 = vmatpush.bf16.msrb.mxu3 %v6838_v41 }
 0x940   : > { %v4332_v19 = vadd.f32 %v4328_v16, %v4281_v12  ;;  %v4381_v52 = vpop.f32.mrf.mxu0  ;;  %v4636_v36 = vpop.f32.mrf.mxu1 }
 0x942   : > { %v4383_v13 = vadd.f32 %v4379_v15, %v4332_v19 }
 0x943   : > { %5580 = vmatpush.bf16.msrb.mxu3 %v6837_v53 }
 0x944   : > { %v4434_v8 = vadd.f32 %v4430_v35, %v4383_v13 }
 0x945   : > { %v4279_v7 = vpop.f32.mrf.mxu2  ;;  %v4330_v29 = vpop.f32.mrf.mxu3 }
 0x948   : > { %v4583_v45 = vpop.f32.mrf.mxu0  ;;  %v4838_v57 = vpop.f32.mrf.mxu1 }
 0x94d   : > { %v4481_v24 = vpop.f32.mrf.mxu2  ;;  %v4532_v60 = vpop.f32.mrf.mxu3 }
 0x94e   : > { %v4485_v14 = vadd.f32 %v4481_v24, %v4434_v8 }
 0x950   : > { %v4536_v44 = vadd.f32 %v4532_v60, %v4485_v14  ;;  %v4585_v61 = vpop.f32.mrf.mxu0  ;;  %v4840_v3 = vpop.f32.mrf.mxu1 }
 0x951   : > { %v5524_v3 = vld [vmem:[%s9056_s8] sm:$0x1] }
 0x952   : > { %v4587_v50 = vadd.f32 %v4583_v45, %v4536_v44 }
 0x954   : > { %v4638_v26 = vadd.f32 %v4634_v9, %v4587_v50 }
 0x955   : > { %v4483_v6 = vpop.f32.mrf.mxu2  ;;  %v4534_v28 = vpop.f32.mrf.mxu3 }
 0x958   : > { %v4787_v4 = vpop.f32.mrf.mxu0  ;;  %v5042_v63 = vpop.f32.mrf.mxu1 }
 0x95d   : > { %v4685_v33 = vpop.f32.mrf.mxu2  ;;  %v4736_v0 = vpop.f32.mrf.mxu3 }
 0x95e   : > { %v4689_v59 = vadd.f32 %v4685_v33, %v4638_v26 }
 0x960   : > { %v4789_v42 = vpop.f32.mrf.mxu0  ;;  %v5044_v56 = vpop.f32.mrf.mxu1  ;;  %v4740_v11 = vadd.f32 %v4736_v0, %v4689_v59 }
 0x962   : > { %v4791_v43 = vadd.f32 %v4787_v4, %v4740_v11 }
 0x964   : > { %v4842_v46 = vadd.f32 %v4838_v57, %v4791_v43 }
 0x965   : > { %v4687_v49 = vpop.f32.mrf.mxu2  ;;  %v4738_v37 = vpop.f32.mrf.mxu3 }
 0x968   : > { %v4991_v1 = vpop.f32.mrf.mxu0  ;;  %v5246_v58 = vpop.f32.mrf.mxu1 }
 0x96d   : > { %v4889_v51 = vpop.f32.mrf.mxu2  ;;  %v4940_v17 = vpop.f32.mrf.mxu3 }
 0x96e   : > { %v4893_v39 = vadd.f32 %v4889_v51, %v4842_v46 }
 0x970   : > { %v4993_v30 = vpop.f32.mrf.mxu0  ;;  %v5248_v40 = vpop.f32.mrf.mxu1  ;;  %v4944_v25 = vadd.f32 %v4940_v17, %v4893_v39 }
 0x972   : > { %v4995_v35 = vadd.f32 %v4991_v1, %v4944_v25 }
 0x974   : > { %v5046_v22 = vadd.f32 %v5042_v63, %v4995_v35 }
 0x975   : > { %v4891_v34 = vpop.f32.mrf.mxu2  ;;  %v4942_v55 = vpop.f32.mrf.mxu3 }
 0x978   : > { %v5195_v27 = vpop.f32.mrf.mxu0  ;;  %v5450_v10 = vpop.f32.mrf.mxu1 }
 0x97d   : > { %v5093_v62 = vpop.f32.mrf.mxu2  ;;  %v5144_v32 = vpop.f32.mrf.mxu3 }
 0x97e   : > { %v5097_v20 = vadd.f32 %v5093_v62, %v5046_v22 }
 0x980   : > { %v5197_v2 = vpop.f32.mrf.mxu0  ;;  %v5452_v38 = vpop.f32.mrf.mxu1  ;;  %v5148_v9 = vadd.f32 %v5144_v32, %v5097_v20 }
 0x982   : > { %v5199_v16 = vadd.f32 %v5195_v27, %v5148_v9 }
 0x984   : > { %v5250_v52 = vadd.f32 %v5246_v58, %v5199_v16 }
 0x985   : > { %v5095_v54 = vpop.f32.mrf.mxu2  ;;  %v5146_v15 = vpop.f32.mrf.mxu3 }
 0x988   : > { %v5399_v48 = vpop.f32.mrf.mxu0 }
 0x98d   : > { %v5297_v12 = vpop.f32.mrf.mxu2  ;;  %v5348_v19 = vpop.f32.mrf.mxu3 }
 0x98e   : > { %v5301_v36 = vadd.f32 %v5297_v12, %v5250_v52 }
 0x990   : > { %v5401_v13 = vpop.f32.mrf.mxu0  ;;  %v5352_v8 = vadd.f32 %v5348_v19, %v5301_v36 }
 0x992   : > { %v5403_v45 = vadd.f32 %v5399_v48, %v5352_v8 }
 0x994   : > { %v5454_v57 = vadd.f32 %v5450_v10, %v5403_v45 }
 0x995   : > { %v5299_v7 = vpop.f32.mrf.mxu2  ;;  %v5350_v29 = vpop.f32.mrf.mxu3 }
 0x99d   : > { %v5501_v24 = vpop.f32.mrf.mxu2 }
 0x99e   : > { %v5505_v60 = vadd.f32 %v5501_v24, %v5454_v57 }
 0x9a0   : > { %v5506_v14 = vmax.f32 %v5505_v60, 0.0 }
 0x9a2   : > { %v5507_v44 = vpack.c.bf16 %v5506_v14, %v5506_v14 }
 0x9a4   : > { %5581 = vmatmul.bf16.vlgmr.msrb.gmra.mxu3 %v5507_v44 }
 0x9a5   : > { %v5503_v61 = vpop.f32.mrf.mxu2 }
 0xa27   : > { %v5582_v50 = vpop.f32.mrf.mxu3 }
 0xa28   : > { %v5583_v26 = vadd.f32 %v5582_v50, %v5524_v3 }
 0xa2a   : > { %5586 = vst [vmem:[%s324_s22] sm:$0x1] %v5583_v26 }
 0xa2b   : > { %6947 = shalt.err (!%p6944_p3)
}
 0xa2c   : > { %6849 = dma.vmem_to_hbm [thread:$0]  (%p7101_p5), %s5599_s17, 16, %s5601_s21, %s5588_s23  }
 0xa2f   : > { %v5584_v6 = vpop.f32.mrf.mxu3 }
 0xa30 PF: > { %p6855_p4 = scmp.ge.s32.totalorder %s6982_s12, 2  ;;  %s5612_s14 = sand.u32 1, %s6970_s30  }
 0xa31   : > { %s5613_s16 = scalar_lea.sflag [#allocation5], %s5612_s14 }
 0xa32   : > { %p6852_p7 = pnand %p6855_p4, %p7105_p6 }
 0xa34   : > { %p6853_p8 = pneg %p6852_p7 }
 0xa36   : > { %6965 = dma.done.wait (%p6853_p8), %s5613_s16, 16  }
 0xa37   : > { %6967 = vsyncadd (%p6853_p8), %s5613_s16, 4294967280  ;;  %p19_p9 = scmp.ge.s32.totalorder %s7088_s15, 4   ;;  %s9087_s30 = smov %s6974_s10 }
 0xa38   : > { %s9088_s10 = smov %s6978_s11  ;;  %s9089_s11 = smov %s7099_s18 }
 0xa39   : > { %s9090_s12 = smov %s7088_s15  ;;  %21 = sbr.rel (!%p19_p9) target bundleno = 3 (0x3), region = 138 }
 0xa3e   :  { %5618 = vsyncpa [#allocation5], 1 }
 0xa3f   :  { %5620 = vsyncpa [#allocation5 + $0x1], 1 }

</bundles_post_ra>
